<compile_context>
chip_gen: v5e
topology: v5e:2x2
jax: 0.10.0
libtpu: 0.0.40
codegen_flags: <defaults>
</compile_context>

<pallas_src>
import functools
import math

import jax
import jax.numpy as jnp
from jax.experimental import pallas as pl
from jax.experimental.pallas import tpu as pltpu


def _round_up(x, m):
    return ((x + m - 1) // m) * m


def _vmem_capacity_bytes():
    """Physical VMEM per TensorCore (128 MiB on v5e/v6e, 64 MiB on v7x)."""
    try:
        return int(pltpu.get_tpu_info().vmem_capacity_bytes)
    except Exception:          # conservative fallback if the query is unavailable
        return 64 << 20


def plan_tiles(num_nodes, *, tm=512, tk=512):
    """Pick MXU-friendly tiles and the padded node count Np they divide."""
    n128 = _round_up(num_nodes, 128)
    tm = max(128, min((tm // 128) * 128, n128))
    tk = max(128, min((tk // 128) * 128, n128))
    # v7x has 2 TensorCores: keep >= 2 row blocks so the "parallel" row axis
    # can still be sharded across them.
    if n128 // tm < 2 and n128 >= 256:
        tm = max(128, (n128 // 2) // 128 * 128)
    blk = math.lcm(tm, tk)
    return tm, tk, _round_up(num_nodes, blk)


# ----------------------------- Pallas kernels ----------------------------- #

def gcn_layer_kernel(a_ref, x_ref, o_f32_ref, o_bf16_ref):
    """One LightGCN layer: o[i] = sum_k A[i, k] @ x[k].

    a_ref:      (TM, TK) bf16 normalized-adjacency tile (dest-row, src-col)
    x_ref:      full (Np, Dp) bf16 x_l resident in VMEM, or a streamed
                (TK, Dp) tile -- distinguished statically by its shape.
    o_f32_ref:  (TM, Dp) f32 output block, resident across K (accumulator).
    o_bf16_ref: (TM, Dp) bf16 copy of x_{l+1}, written on the last K step
                (feeds the next layer without a separate XLA astype pass).
    """
    k = pl.program_id(1)
    tk = a_ref.shape[1]

    @pl.when(k == 0)
    def _():
        o_f32_ref[...] = jnp.zeros_like(o_f32_ref)

    if x_ref.shape[0] == tk:                 # streamed (TK, Dp) tile
        xk = x_ref[...]
    else:                                    # VMEM-resident x: slice k-chunk
        start = pl.multiple_of(k * tk, tk)
        xk = x_ref[pl.ds(start, tk), :]

    o_f32_ref[...] += jnp.dot(a_ref[...], xk,
                              preferred_element_type=jnp.float32)

    @pl.when(k == pl.num_programs(1) - 1)
    def _():
        o_bf16_ref[...] = o_f32_ref[...].astype(jnp.bfloat16)


def score_kernel(item_ref, samp_ref, out_ref):
    """scores[b, s] = <item[b], sample[b, s]> as a VPU multiply + D-reduce.

    (An M=1 batched MXU matmul wastes 127/128+ of the MXU rows; this is pure
    VPU/XLU work with a sublane/lane-dense (Bp, Sp) output.)
    """
    item = item_ref[...]                     # (Bp, Dp) f32
    samp = samp_ref[...]                     # (Bp, Sp, Dp) f32
    out_ref[...] = jnp.sum(item[:, None, :] * samp, axis=-1)


# ------------------------------ wrappers ----------------------------------- #

def _propagate_layer(a_bf16, x_bf16, tm, tk):
    """x_{l+1} = A_norm @ x_l, tiled over (rows, K); x_l resident in VMEM."""
    Np, Dp = x_bf16.shape
    grid = (Np // tm, Np // tk)

    budget = int(_vmem_capacity_bytes() * 0.85)   # ~108 MiB v5e/v6e, ~54 MiB v7x
    fixed = (2 * tm * tk * 2          # A tile, double-buffered
             + 2 * tm * Dp * 4        # f32 output block (2 buffers)
             + 2 * tm * Dp * 2        # bf16 output block (2 buffers)
             + (4 << 20))             # compiler scratch margin
    x_bytes = Np * Dp * 2
    x_resident = fixed + x_bytes <= budget

    if x_resident:
        x_spec = pl.BlockSpec(memory_space=pltpu.MemorySpace.VMEM)
        need = fixed + x_bytes
    else:
        # Fallback for very large graphs: stream x in (TK, Dp) tiles.
        x_spec = pl.BlockSpec((tk, Dp), lambda i, k: (k, 0))
        need = fixed + 2 * tk * Dp * 2
    if need > budget:
        raise ValueError(
            f"propagation tile plan needs {need} B of VMEM but only {budget} B "
            f"are available on this TPU generation; reduce tm/tk")
    vmem_limit = min(budget, max(need, 32 << 20))

    return pl.pallas_call(
        gcn_layer_kernel,
        grid=grid,
        out_shape=(jax.ShapeDtypeStruct((Np, Dp), jnp.float32),
                   jax.ShapeDtypeStruct((Np, Dp), jnp.bfloat16)),
        in_specs=[pl.BlockSpec((tm, tk), lambda i, k: (i, k)),
                  x_spec],
        out_specs=(pl.BlockSpec((tm, Dp), lambda i, k: (i, 0)),
                   pl.BlockSpec((tm, Dp), lambda i, k: (i, 0))),
        compiler_params=pltpu.CompilerParams(
            dimension_semantics=("parallel", "arbitrary"),
            vmem_limit_bytes=vmem_limit,
        ),
    )(a_bf16, x_bf16)


def graph_embeddings_pallas(a_bf16, x0, num_layers, *, tm, tk):
    """LightGCN propagation; mean over layers 0..num_layers (matches torch)."""
    Np = a_bf16.shape[0]
    N, D = x0.shape
    Dp = _round_up(D, 128)
    x_f32 = jnp.pad(x0.astype(jnp.float32), ((0, Np - N), (0, Dp - D)))
    x_bf16 = x_f32.astype(jnp.bfloat16)
    acc = x_f32
    for _ in range(num_layers):                   # re-streams A once per layer
        x_f32, x_bf16 = _propagate_layer(a_bf16, x_bf16, tm, tk)
        acc = acc + x_f32                         # tiny Np*Dp add, left to XLA
    emb = acc * (1.0 / float(num_layers + 1))
    return emb[:N, :D]


def scores_pallas(item_emb, samp_emb):
    """torch.bmm(item_emb, sample_emb.transpose(1, 2)).squeeze(1)."""
    B, D = item_emb.shape
    S = samp_emb.shape[1]
    Bp = _round_up(B, 8)                          # sublane-dense output rows
    Sp = _round_up(S, 128)                        # lane-dense output stores
    Dp = _round_up(D, 128)
    item_p = jnp.pad(item_emb.astype(jnp.float32),
                     ((0, Bp - B), (0, Dp - D)))
    samp_p = jnp.pad(samp_emb.astype(jnp.float32),
                     ((0, Bp - B), (0, Sp - S), (0, Dp - D)))
    out = pl.pallas_call(
        score_kernel,
        out_shape=jax.ShapeDtypeStruct((Bp, Sp), jnp.float32),
        in_specs=[pl.BlockSpec(memory_space=pltpu.MemorySpace.VMEM),
                  pl.BlockSpec(memory_space=pltpu.MemorySpace.VMEM)],
        out_specs=pl.BlockSpec(memory_space=pltpu.MemorySpace.VMEM),
    )(item_p, samp_p)
    return out[:B, :S]


# --------------------------- graph preprocessing --------------------------- #

def build_norm_adj_padded(edge_index, num_nodes, padded_nodes):
    """Dense normalized adjacency matching LightGCNConv(aggr='mean'), built
    directly at the padded size and cast to bf16 once.

    out[i] = (1 / in_count[i]) * sum_{(j->i)} deg[j]^-0.5 * deg[i]^-0.5 * x[j]
    with self-loops added, deg counted on edge_index[0].
    """
    src, dst = edge_index[0], edge_index[1]
    loop = jnp.arange(num_nodes, dtype=src.dtype)
    src = jnp.concatenate([src, loop])
    dst = jnp.concatenate([dst, loop])
    ones = jnp.ones_like(src, dtype=jnp.float32)

    deg = jnp.zeros((padded_nodes,), jnp.float32).at[src].add(ones)
    dinv = jnp.where(deg > 0, deg ** -0.5, 0.0)
    norm = dinv[src] * dinv[dst]

    in_cnt = jnp.zeros((padded_nodes,), jnp.float32).at[dst].add(ones)
    a = jnp.zeros((padded_nodes, padded_nodes), jnp.float32).at[dst, src].add(norm)
    a = a * (1.0 / jnp.maximum(in_cnt, 1.0))[:, None]
    return a.astype(jnp.bfloat16)


def prepare_graph(edge_index, num_nodes, *, tm=512, tk=512):
    """One-time preprocessing (hoisted out of the per-forward path)."""
    tm, tk, Np = plan_tiles(num_nodes, tm=tm, tk=tk)
    a_bf16 = build_norm_adj_padded(edge_index, num_nodes, Np)
    return a_bf16, tm, tk


def graph_item2vec_forward(emb_weight, a_bf16, items, samples,
                           *, num_layers, tm, tk):
    emb = graph_embeddings_pallas(a_bf16, emb_weight, num_layers, tm=tm, tk=tk)
    item_emb = emb[items[:, 0]]       # (B, D)   (items has shape (B, 1))
    samp_emb = emb[samples]           # (B, S, D)
    return scores_pallas(item_emb, samp_emb)


# ---------------------------------- main ----------------------------------- #

if __name__ == "__main__":
    N, D, L = 1024, 128, 2     # vocab_size, embed_dim (module default), layers
    B, S = 4, 8                # batch, num samples per item

    key = jax.random.PRNGKey(0)
    k_emb, k_items, k_samples = jax.random.split(key, 3)

    # nn.Embedding weight with xavier_uniform_ init.
    limit = (6.0 / (N + D)) ** 0.5
    emb_weight = jax.random.uniform(k_emb, (N, D), jnp.float32, -limit, limit)

    # Deterministic undirected ring graph as edge_index (2, E).
    idx = jnp.arange(N, dtype=jnp.int32)
    edge_index = jnp.stack([
        jnp.concatenate([idx, (idx + 1) % N]),
        jnp.concatenate([(idx + 1) % N, idx]),
    ])

    items = jax.random.randint(k_items, (B, 1), 0, N)      # (B, 1)
    samples = jax.random.randint(k_samples, (B, S), 0, N)  # (B, S)

    # Graph prep is done once (cached outside the forward path).
    a_bf16, tm, tk = prepare_graph(edge_index, N)           # -> tm=tk=512, 2x2 grid

    fwd = jax.jit(functools.partial(graph_item2vec_forward,
                                    num_layers=L, tm=tm, tk=tk))
    scores = jax.block_until_ready(fwd(emb_weight, a_bf16, items, samples))

    # Pure-JAX reference with the same bf16-input / f32-accumulate path.
    a_nn = a_bf16[:N, :N]
    x = emb_weight.astype(jnp.float32)
    acc = x
    for _ in range(L):
        x = jnp.dot(a_nn, x.astype(jnp.bfloat16),
                    preferred_element_type=jnp.float32)
        acc = acc + x
    emb_ref = acc * (1.0 / (L + 1))
    ref = jnp.sum(emb_ref[items[:, 0]][:, None, :] * emb_ref[samples], axis=-1)

    assert scores.shape == (B, S)
    err = float(jnp.max(jnp.abs(scores - ref)))
    assert jnp.allclose(scores, ref, atol=1e-3, rtol=1e-2), err
    print("KERNEL_OK")
</pallas_src>

<mosaic_0001>
module attributes {stable_mosaic.version = 11 : i64} {
  func.func @gcn_layer_kernel(%arg0: i32, %arg1: i32, %arg2: memref<512x512xbf16, #tpu.memory_space<vmem>>, %arg3: memref<1024x128xbf16, #tpu.memory_space<vmem>>, %arg4: memref<512x128xf32, #tpu.memory_space<vmem>>, %arg5: memref<512x128xbf16, #tpu.memory_space<vmem>>) attributes {dimension_semantics = [#tpu.dimension_semantics<parallel>, #tpu.dimension_semantics<arbitrary>], iteration_bounds = array<i64: 2, 2>, scalar_prefetch = 0 : i64, scratch_operands = 0 : i64, tpu.core_type = #tpu.core_type<tc>, window_params = [{transform_indices = @transform_0, window_bounds = array<i64: 512, 512>}, {pipeline_mode = #tpu.pipeline_mode<synchronous>, transform_indices = @transform_1, window_bounds = array<i64: 1024, 128>}, {transform_indices = @transform_2, window_bounds = array<i64: 512, 128>}, {transform_indices = @transform_3, window_bounds = array<i64: 512, 128>}]} {
    %c0_i32 = arith.constant 0 : i32
    %0 = arith.cmpi eq, %arg1, %c0_i32 : i32
    %1 = arith.extui %0 : i1 to i32
    %c0_i32_0 = arith.constant 0 : i32
    %2 = arith.cmpi ne, %1, %c0_i32_0 : i32
    scf.if %2 {
      %cst_8 = arith.constant 0.000000e+00 : f32
      %15 = vector.broadcast %cst_8 : f32 to vector<512x128xf32>
      %c0_9 = arith.constant 0 : index
      %c0_10 = arith.constant 0 : index
      %16 = vector.load %arg4[%c0_9, %c0_10] : memref<512x128xf32, #tpu.memory_space<vmem>>, vector<512x128xf32>
      tpu.vector_store %arg4[%c0_9, %c0_10], %15 {strides = array<i32>} : memref<512x128xf32, #tpu.memory_space<vmem>>, vector<512x128xf32>,
    } else {
    }
    %c512_i32 = arith.constant 512 : i32
    %3 = arith.muli %arg1, %c512_i32 : i32
    %4 = tpu.assume_multiple %3, 512 : i32
    %5 = arith.index_cast %4 : i32 to index
    %c0 = arith.constant 0 : index
    %6 = vector.load %arg3[%5, %c0] : memref<1024x128xbf16, #tpu.memory_space<vmem>>, vector<512x128xbf16>
    %c0_1 = arith.constant 0 : index
    %c0_2 = arith.constant 0 : index
    %7 = vector.load %arg4[%c0_1, %c0_2] : memref<512x128xf32, #tpu.memory_space<vmem>>, vector<512x128xf32>
    %c0_3 = arith.constant 0 : index
    %c0_4 = arith.constant 0 : index
    %8 = vector.load %arg2[%c0_3, %c0_4] : memref<512x512xbf16, #tpu.memory_space<vmem>>, vector<512x512xbf16>
    %cst = arith.constant dense<0.000000e+00> : vector<512x128xf32>
    %9 = tpu.matmul %8, %6, %cst {dimension_numbers = #tpu.dot_dimension_numbers<[1], [0], [0], [1], [0, 0, 1, 1], [], []>} : vector<512x512xbf16>, vector<512x128xbf16>, vector<512x128xf32> -> vector<512x128xf32>
    %10 = arith.addf %7, %9 : vector<512x128xf32>
    %c0_5 = arith.constant 0 : index
    %c0_6 = arith.constant 0 : index
    %11 = vector.load %arg4[%c0_5, %c0_6] : memref<512x128xf32, #tpu.memory_space<vmem>>, vector<512x128xf32>
    tpu.vector_store %arg4[%c0_5, %c0_6], %10 {strides = array<i32>} : memref<512x128xf32, #tpu.memory_space<vmem>>, vector<512x128xf32>,
    %c1_i32 = arith.constant 1 : i32
    %12 = arith.cmpi eq, %arg1, %c1_i32 : i32
    %13 = arith.extui %12 : i1 to i32
    %c0_i32_7 = arith.constant 0 : i32
    %14 = arith.cmpi ne, %13, %c0_i32_7 : i32
    scf.if %14 {
      %c0_8 = arith.constant 0 : index
      %c0_9 = arith.constant 0 : index
      %15 = vector.load %arg4[%c0_8, %c0_9] : memref<512x128xf32, #tpu.memory_space<vmem>>, vector<512x128xf32>
      %16 = arith.truncf %15 : vector<512x128xf32> to vector<512x128xbf16>
      %c0_10 = arith.constant 0 : index
      %c0_11 = arith.constant 0 : index
      %17 = vector.load %arg5[%c0_10, %c0_11] : memref<512x128xbf16, #tpu.memory_space<vmem>>, vector<512x128xbf16>
      tpu.vector_store %arg5[%c0_10, %c0_11], %16 {strides = array<i32>} : memref<512x128xbf16, #tpu.memory_space<vmem>>, vector<512x128xbf16>,
    } else {
    }
    return
  }
  func.func @transform_0(%arg0: i32, %arg1: i32) -> (i32, i32) {
    %c0_i32 = arith.constant 0 : i32
    return %arg0, %arg1 : i32, i32
  }
  func.func @transform_1(%arg0: i32, %arg1: i32) -> (i32, i32) {
    %c0_i32 = arith.constant 0 : i32
    %c0_i32_0 = arith.constant 0 : i32
    %c0_i32_1 = arith.constant 0 : i32
    return %c0_i32, %c0_i32_0 : i32, i32
  }
  func.func @transform_2(%arg0: i32, %arg1: i32) -> (i32, i32) {
    %c0_i32 = arith.constant 0 : i32
    %c0_i32_0 = arith.constant 0 : i32
    return %arg0, %c0_i32 : i32, i32
  }
  func.func @transform_3(%arg0: i32, %arg1: i32) -> (i32, i32) {
    %c0_i32 = arith.constant 0 : i32
    %c0_i32_0 = arith.constant 0 : i32
    return %arg0, %c0_i32 : i32, i32
  }
}

module attributes {stable_mosaic.version = 11 : i64} {
  func.func @gcn_layer_kernel(%arg0: i32, %arg1: i32, %arg2: memref<512x512xbf16, #tpu.memory_space<vmem>>, %arg3: memref<1024x128xbf16, #tpu.memory_space<vmem>>, %arg4: memref<512x128xf32, #tpu.memory_space<vmem>>, %arg5: memref<512x128xbf16, #tpu.memory_space<vmem>>) attributes {dimension_semantics = [#tpu.dimension_semantics<parallel>, #tpu.dimension_semantics<arbitrary>], iteration_bounds = array<i64: 2, 2>, scalar_prefetch = 0 : i64, scratch_operands = 0 : i64, tpu.core_type = #tpu.core_type<tc>, window_params = [{transform_indices = @transform_0, window_bounds = array<i64: 512, 512>}, {pipeline_mode = #tpu.pipeline_mode<synchronous>, transform_indices = @transform_1, window_bounds = array<i64: 1024, 128>}, {transform_indices = @transform_2, window_bounds = array<i64: 512, 128>}, {transform_indices = @transform_3, window_bounds = array<i64: 512, 128>}]} {
    %c0_i32 = arith.constant 0 : i32
    %0 = arith.cmpi eq, %arg1, %c0_i32 : i32
    %1 = arith.extui %0 : i1 to i32
    %c0_i32_0 = arith.constant 0 : i32
    %2 = arith.cmpi ne, %1, %c0_i32_0 : i32
    scf.if %2 {
      %cst_8 = arith.constant 0.000000e+00 : f32
      %15 = vector.broadcast %cst_8 : f32 to vector<512x128xf32>
      %c0_9 = arith.constant 0 : index
      %c0_10 = arith.constant 0 : index
      %16 = vector.load %arg4[%c0_9, %c0_10] : memref<512x128xf32, #tpu.memory_space<vmem>>, vector<512x128xf32>
      tpu.vector_store %arg4[%c0_9, %c0_10], %15 {strides = array<i32>} : memref<512x128xf32, #tpu.memory_space<vmem>>, vector<512x128xf32>,
    } else {
    }
    %c512_i32 = arith.constant 512 : i32
    %3 = arith.muli %arg1, %c512_i32 : i32
    %4 = tpu.assume_multiple %3, 512 : i32
    %5 = arith.index_cast %4 : i32 to index
    %c0 = arith.constant 0 : index
    %6 = vector.load %arg3[%5, %c0] : memref<1024x128xbf16, #tpu.memory_space<vmem>>, vector<512x128xbf16>
    %c0_1 = arith.constant 0 : index
    %c0_2 = arith.constant 0 : index
    %7 = vector.load %arg4[%c0_1, %c0_2] : memref<512x128xf32, #tpu.memory_space<vmem>>, vector<512x128xf32>
    %c0_3 = arith.constant 0 : index
    %c0_4 = arith.constant 0 : index
    %8 = vector.load %arg2[%c0_3, %c0_4] : memref<512x512xbf16, #tpu.memory_space<vmem>>, vector<512x512xbf16>
    %cst = arith.constant dense<0.000000e+00> : vector<512x128xf32>
    %9 = tpu.matmul %8, %6, %cst {dimension_numbers = #tpu.dot_dimension_numbers<[1], [0], [0], [1], [0, 0, 1, 1], [], []>} : vector<512x512xbf16>, vector<512x128xbf16>, vector<512x128xf32> -> vector<512x128xf32>
    %10 = arith.addf %7, %9 : vector<512x128xf32>
    %c0_5 = arith.constant 0 : index
    %c0_6 = arith.constant 0 : index
    %11 = vector.load %arg4[%c0_5, %c0_6] : memref<512x128xf32, #tpu.memory_space<vmem>>, vector<512x128xf32>
    tpu.vector_store %arg4[%c0_5, %c0_6], %10 {strides = array<i32>} : memref<512x128xf32, #tpu.memory_space<vmem>>, vector<512x128xf32>,
    %c1_i32 = arith.constant 1 : i32
    %12 = arith.cmpi eq, %arg1, %c1_i32 : i32
    %13 = arith.extui %12 : i1 to i32
    %c0_i32_7 = arith.constant 0 : i32
    %14 = arith.cmpi ne, %13, %c0_i32_7 : i32
    scf.if %14 {
      %c0_8 = arith.constant 0 : index
      %c0_9 = arith.constant 0 : index
      %15 = vector.load %arg4[%c0_8, %c0_9] : memref<512x128xf32, #tpu.memory_space<vmem>>, vector<512x128xf32>
      %16 = arith.truncf %15 : vector<512x128xf32> to vector<512x128xbf16>
      %c0_10 = arith.constant 0 : index
      %c0_11 = arith.constant 0 : index
      %17 = vector.load %arg5[%c0_10, %c0_11] : memref<512x128xbf16, #tpu.memory_space<vmem>>, vector<512x128xbf16>
      tpu.vector_store %arg5[%c0_10, %c0_11], %16 {strides = array<i32>} : memref<512x128xbf16, #tpu.memory_space<vmem>>, vector<512x128xbf16>,
    } else {
    }
    return
  }
  func.func @transform_0(%arg0: i32, %arg1: i32) -> (i32, i32) {
    %c0_i32 = arith.constant 0 : i32
    return %arg0, %arg1 : i32, i32
  }
  func.func @transform_1(%arg0: i32, %arg1: i32) -> (i32, i32) {
    %c0_i32 = arith.constant 0 : i32
    %c0_i32_0 = arith.constant 0 : i32
    %c0_i32_1 = arith.constant 0 : i32
    return %c0_i32, %c0_i32_0 : i32, i32
  }
  func.func @transform_2(%arg0: i32, %arg1: i32) -> (i32, i32) {
    %c0_i32 = arith.constant 0 : i32
    %c0_i32_0 = arith.constant 0 : i32
    return %arg0, %c0_i32 : i32, i32
  }
  func.func @transform_3(%arg0: i32, %arg1: i32) -> (i32, i32) {
    %c0_i32 = arith.constant 0 : i32
    %c0_i32_0 = arith.constant 0 : i32
    return %arg0, %c0_i32 : i32, i32
  }
}

module attributes {stable_mosaic.version = 11 : i64} {
  func.func @score_kernel(%arg0: memref<8x128xf32, #tpu.memory_space<vmem>>, %arg1: memref<8x128x128xf32, #tpu.memory_space<vmem>>, %arg2: memref<8x128xf32, #tpu.memory_space<vmem>>) attributes {dimension_semantics = [], scalar_prefetch = 0 : i64, scratch_operands = 0 : i64, tpu.core_type = #tpu.core_type<tc>} {
    %c0 = arith.constant 0 : index
    %c0_0 = arith.constant 0 : index
    %0 = vector.load %arg0[%c0, %c0_0] : memref<8x128xf32, #tpu.memory_space<vmem>>, vector<8x128xf32>
    %c0_1 = arith.constant 0 : index
    %c0_2 = arith.constant 0 : index
    %c0_3 = arith.constant 0 : index
    %1 = vector.load %arg1[%c0_1, %c0_2, %c0_3] : memref<8x128x128xf32, #tpu.memory_space<vmem>>, vector<8x128x128xf32>
    %2 = vector.shape_cast %0 : vector<8x128xf32> to vector<8x1x128xf32>
    %3 = vector.broadcast %2 : vector<8x1x128xf32> to vector<8x128x128xf32>
    %4 = arith.mulf %3, %1 : vector<8x128x128xf32>
    %cst = arith.constant dense<0.000000e+00> : vector<8x128xf32>
    %5 = vector.multi_reduction <add>, %4, %cst [2] : vector<8x128x128xf32> to vector<8x128xf32>
    %c0_4 = arith.constant 0 : index
    %c0_5 = arith.constant 0 : index
    %6 = vector.load %arg2[%c0_4, %c0_5] : memref<8x128xf32, #tpu.memory_space<vmem>>, vector<8x128xf32>
    tpu.vector_store %arg2[%c0_4, %c0_5], %5 {strides = array<i32>} : memref<8x128xf32, #tpu.memory_space<vmem>>, vector<8x128xf32>,
    return
  }
}

</mosaic_0001>

<bundles_post_ra>
// kernel: graph_item2vec_forward.4
= control target key start
LH: loop header
LB: loop body
LE: loop exit
PB: predicated region body
PF: predicated region fallthrough
CT: control target
= control target key end

     0   :  { %9 = vsyncpa [#allocation3], 0  ;;  %s4658_s0 = inlined_call_operand.hbm [shape: bf16[1024,1024], index: 0, kind: input, shape index: {}]   ;;  %s4659_s1 = inlined_call_operand.vmem [shape: bf16[1024,128], index: 1, kind: input, shape index: {}]   ;;  %s4660_s2 = inlined_call_operand.vmem [shape: f32[1024,128], index: 2, kind: output, shape index: {0}]   ;;  %s4661_s3 = inlined_call_operand.hbm [shape: bf16[1024,128], index: 3, kind: output, shape index: {1}]  }
   0x1   :  { %11 = vsyncpa [#allocation3 + $0x1], 0 }
   0x2   :  { %12 = vsyncpa [#allocation4], 0 }
   0x3   :  { %14 = vsyncpa [#allocation4 + $0x1], 0  ;;  %s3829_s12 = smov 0   ;;  %s3831_s13 = smov 0  }
   0x4   :  { %s3833_s14 = smov 0   ;;  %s3835_s15 = smov 0  }
   0x5   :  { %s3837_s16 = smov 0   ;;  %s3839_s17 = smov 0  }
   0x6   :  { %s3841_s18 = smov 0   ;;  %s3843_s19 = smov 0  }
   0x7   :  { %s3845_s20 = smov 0   ;;  %s3847_s21 = smov 0  }
   0x8   :  { %s3849_s22 = smov 0  }
   0x9 LB: > { %4667 = sst [smem:[#allocation8_spill]] %s3769_s14  ;;  %s2525_s23 = sadd.s32 4294967295, %s3801_s22   ;;  %s3801_s22 = sphi %s3849_s22, %s20_s22   ;;  %s3797_s21 = sphi %s3847_s21, %s4690_s21   ;;  %s3793_s20 = sphi %s3845_s20, %s4683_s20   ;;  %s3789_s19 = sphi %s3843_s19, %s4689_s19   ;;  %s3785_s18 = sphi %s3841_s18, %s4682_s18   ;;  %s3781_s17 = sphi %s3839_s17, %s4681_s17   ;;  %s3777_s16 = sphi %s3837_s16, %s4688_s16   ;;  %s3773_s15 = sphi %s3835_s15, %s4687_s15   ;;  %s3769_s14 = sphi %s3833_s14, %s4679_s14   ;;  %s3765_s13 = sphi %s3831_s13, %s4686_s13   ;;  %s3761_s12 = sphi %s3829_s12, %s4685_s12  }
   0xa   : > { %4668 = sst [smem:[#allocation9_spill]] %s3781_s17  ;;  %s2526_s24 = sadd.s32 4294967294, %s3801_s22  }
   0xb   : > { %4669 = sst [smem:[#allocation10_spill]] %s3793_s20  ;;  %s29_s25 = sadd.s32 1, %s3793_s20 }
   0xc   : > { %s32_s26 = sadd.s32 1, %s3797_s21  ;;  %p30_p0 = scmp.ge.s32.totalorder %s29_s25, 2 }
   0xd   : > { %s41_s27 = sadd.s32 1, %s3781_s17  ;;  %p48_p1 = scmp.ne.s32.totalorder %s3781_s17, %s3777_s16 }
   0xe   : > { %p49_p2 = scmp.eq.s32.totalorder %s3801_s22, 0  ;;  %s4692_s25 = smov (%p30_p0, %s29_s25), 0 }
   0xf   : > { %4670 = sst [smem:[#allocation11_spill]] %s4692_s25  ;;  %s4694_s26 = smov (!%p30_p0, %s32_s26), %s3797_s21 }
  0x10   : > { %s37_s28 = ssub.s32 %s3793_s20, %s4692_s25  ;;  %p3895_p3 = por %p49_p2, %p48_p1 }
  0x11   : > { %p34_p4 = scmp.ge.s32.totalorder %s4694_s26, 2  ;;  %p54_p5 = scmp.ne.s32.totalorder %s3777_s16, %s3773_s15 }
  0x12   : > { %p55_p6 = scmp.eq.s32.totalorder %s2525_s23, 0  ;;  %s114_s30 = sadd.s32 1, %s3769_s14 }
  0x13   : > { %s4696_s26 = smov (%p34_p4, %s4694_s26), 0  ;;  %p124_p8 = scmp.ne.s32.totalorder %s3769_s14, %s3765_s13 }
  0x14   : > { %4672 = sst [smem:[#allocation12_spill]] %s4696_s26  ;;  %p3903_p7 = por %p55_p6, %p54_p5 }
  0x15   : > { %s36_s5 = ssub.s32 %s3797_s21, %s4696_s26  ;;  %p125_p9 = scmp.eq.s32.totalorder %s2525_s23, 3 }
  0x16   : > { %s38_s6 = sor.u32 %s37_s28, %s36_s5  ;;  %p112_p10 = scmp.eq.s32.totalorder %s36_s5, 0 }
  0x17   : > { %p39_p11 = scmp.eq.s32.totalorder %s38_s6, 0  ;;  %p3911_p12 = por %p125_p9, %p124_p8 }
  0x18   : > { %s3916_s8 = scalar_select %p112_p10, %s3769_s14, %s114_s30  }
  0x19   : > { %s3919_s9 = scalar_select %p39_p11, %s3781_s17, %s41_s27  }
  0x1a   : > { %4675 = sst [smem:[#allocation13_spill]] %s3916_s8  ;;  %p130_p13 = scmp.ne.s32.totalorder %s3765_s13, %s3761_s12 }
  0x1b   : > { %4676 = sst [smem:[#allocation14_spill]] %s3919_s9  ;;  %p131_p0 = scmp.eq.s32.totalorder %s2526_s24, 3 }
  0x1c   : > { %p3553_p1 = scmp.lt.s32.totalorder %s3801_s22, 4  ;;  %s154_s11 = sand.u32 1, %s3781_s17  }
  0x1d   : > { %p3924_p2 = por %p131_p0, %p130_p13  ;;  %s2529_s15 = sshll.u32 %s154_s11, 10 }
  0x1e   : > { %s2531_s23 = sshll.u32 %s3793_s20, 2  ;;  %s3188_s28 = sshll.u32 %s3797_s21, 9 }
  0x1f   : > { %s158_s5 = scalar_lea.vmem [#allocation2], %s2529_s15  ;;  %s164_s26 = sadd.s32 %s3188_s28, %s2531_s23 }
  0x20   : > { %s169_s6 = sshll.u32 %s158_s5, 4  ;;  %s2533_s30 = sshll.u32 %s164_s26, 2  ;;  %s170_s6 = int_to_ptr.vmem [resolvable:$true] %s169_s6 }
  0x21   : > { %p3546_p4 = pnand %p3553_p1, %p3895_p3  ;;  %s166_s25 = scalar_lea.hbm %s4658_s0, %s2533_s30 }
  0x22   : > { %s167_s9 = sshll.u32 %s166_s25, 4  ;;  %p2534_p5 = scmp.ge.s32.totalorder %s3801_s22, 1  ;;  %s168_s9 = int_to_ptr.hbm [resolvable:$true] %s167_s9 }
  0x23   : > { %s155_s8 = scalar_lea.sflag [#allocation3], %s154_s11  ;;  %s3803_s17 = smov 512  }
  0x24   : > { %s3804_s14 = smov 256   ;;  %s3805_s20 = smov 16  }
  0x25   : > { %3548 = dma.hbm_to_vmem [thread:$0]  (!%p3546_p4), %s168_s9, 16384, %s170_s6, %s155_s8, %s3803_s17, %s3804_s14, %s3805_s20  }
  0x26   : > { %p177_p6 = scmp.lt.s32.totalorder %s3801_s22, 5 }
  0x28   : > { %p178_p8 = pnand %p2534_p5, %p177_p6 }
  0x29   : > { %s183_s26 = sand.u32 (!%p178_p8), 1, %s3777_s16  }
  0x2a   : > { %181 = sbr.rel (%p178_p8) target bundleno = 854 (0x356), region = 28  ;;  %s2535_s29 = sshll.u32 (!%p178_p8), %s183_s26, 10 }
  0x2b   : > { %s184_s15 = scalar_lea.sflag (!%p178_p8), [#allocation3], %s183_s26  ;;  %s3939_s23 = scalar_lea.vmem (!%p178_p8), [#allocation2], %s2535_s29 }
  0x2f   : > { %3752 = dma.done.wait (%p3903_p7), %s184_s15, 16384  }
  0x30   : > { %3754 = vsyncadd (%p3903_p7), %s184_s15, 4294950912  ;;  %s213_s25 = sand.u32 1, %s3765_s13   ;;  %s2537_s14 = sshll.u32 %s3789_s19, 6 }
  0x31   : > { %s2536_s17 = sshll.u32 %s213_s25, 8  ;;  %p219_p3 = scmp.lt.s32.totalorder %s2537_s14, 127 }
  0x32   : > { %s3954_s28 = scalar_lea.vmem [#allocation5], %s2536_s17  ;;  %p2539_p9 = scmp.ne.s32.totalorder %s3785_s18, 0 }
  0x33   : > { %s4698_s14 = smov (!%p219_p3, %s2537_s14), 127 }
  0x34   : > { %s2538_s20 = sshll.u32 %s4698_s14, 3  ;;  %228 = sbr.rel (%p2539_p9) target bundleno = 122 (0x7a), region = 36 }
  0x35   : > { %s3952_s11 = scalar_lea.vmem %s4660_s2, %s2538_s20 }
  0x39   : > { %v3806_v0 = vmov 0.0  }
  0x3a   : > { %229 = vst [vmem:[%s3952_s11] sm:$0xff] %v3806_v0 }
  0x3b   : > { %230 = vst [vmem:[%s3952_s11 + $0x8] sm:$0xff] %v3806_v0 }
  0x3c   : > { %231 = vst [vmem:[%s3952_s11 + $0x10] sm:$0xff] %v3806_v0 }
  0x3d   : > { %232 = vst [vmem:[%s3952_s11 + $0x18] sm:$0xff] %v3806_v0 }
  0x3e   : > { %233 = vst [vmem:[%s3952_s11 + $0x20] sm:$0xff] %v3806_v0 }
  0x3f   : > { %234 = vst [vmem:[%s3952_s11 + $0x28] sm:$0xff] %v3806_v0 }
  0x40   : > { %235 = vst [vmem:[%s3952_s11 + $0x30] sm:$0xff] %v3806_v0 }
  0x41   : > { %236 = vst [vmem:[%s3952_s11 + $0x38] sm:$0xff] %v3806_v0 }
  0x42   : > { %237 = vst [vmem:[%s3952_s11 + $0x40] sm:$0xff] %v3806_v0 }
  0x43   : > { %238 = vst [vmem:[%s3952_s11 + $0x48] sm:$0xff] %v3806_v0 }
  0x44   : > { %239 = vst [vmem:[%s3952_s11 + $0x50] sm:$0xff] %v3806_v0 }
  0x45   : > { %240 = vst [vmem:[%s3952_s11 + $0x58] sm:$0xff] %v3806_v0 }
  0x46   : > { %241 = vst [vmem:[%s3952_s11 + $0x60] sm:$0xff] %v3806_v0 }
  0x47   : > { %242 = vst [vmem:[%s3952_s11 + $0x68] sm:$0xff] %v3806_v0 }
  0x48   : > { %243 = vst [vmem:[%s3952_s11 + $0x70] sm:$0xff] %v3806_v0 }
  0x49   : > { %244 = vst [vmem:[%s3952_s11 + $0x78] sm:$0xff] %v3806_v0 }
  0x4a   : > { %245 = vst [vmem:[%s3952_s11 + $0x80] sm:$0xff] %v3806_v0 }
  0x4b   : > { %246 = vst [vmem:[%s3952_s11 + $0x88] sm:$0xff] %v3806_v0 }
  0x4c   : > { %247 = vst [vmem:[%s3952_s11 + $0x90] sm:$0xff] %v3806_v0 }
  0x4d   : > { %248 = vst [vmem:[%s3952_s11 + $0x98] sm:$0xff] %v3806_v0 }
  0x4e   : > { %249 = vst [vmem:[%s3952_s11 + $0xa0] sm:$0xff] %v3806_v0 }
  0x4f   : > { %250 = vst [vmem:[%s3952_s11 + $0xa8] sm:$0xff] %v3806_v0 }
  0x50   : > { %251 = vst [vmem:[%s3952_s11 + $0xb0] sm:$0xff] %v3806_v0 }
  0x51   : > { %252 = vst [vmem:[%s3952_s11 + $0xb8] sm:$0xff] %v3806_v0 }
  0x52   : > { %253 = vst [vmem:[%s3952_s11 + $0xc0] sm:$0xff] %v3806_v0 }
  0x53   : > { %254 = vst [vmem:[%s3952_s11 + $0xc8] sm:$0xff] %v3806_v0 }
  0x54   : > { %255 = vst [vmem:[%s3952_s11 + $0xd0] sm:$0xff] %v3806_v0 }
  0x55   : > { %256 = vst [vmem:[%s3952_s11 + $0xd8] sm:$0xff] %v3806_v0 }
  0x56   : > { %257 = vst [vmem:[%s3952_s11 + $0xe0] sm:$0xff] %v3806_v0 }
  0x57   : > { %258 = vst [vmem:[%s3952_s11 + $0xe8] sm:$0xff] %v3806_v0 }
  0x58   : > { %259 = vst [vmem:[%s3952_s11 + $0xf0] sm:$0xff] %v3806_v0 }
  0x59   : > { %260 = vst [vmem:[%s3952_s11 + $0xf8] sm:$0xff] %v3806_v0 }
  0x5a   : > { %261 = vst [vmem:[%s3952_s11 + $0x100] sm:$0xff] %v3806_v0 }
  0x5b   : > { %262 = vst [vmem:[%s3952_s11 + $0x108] sm:$0xff] %v3806_v0 }
  0x5c   : > { %263 = vst [vmem:[%s3952_s11 + $0x110] sm:$0xff] %v3806_v0 }
  0x5d   : > { %264 = vst [vmem:[%s3952_s11 + $0x118] sm:$0xff] %v3806_v0 }
  0x5e   : > { %265 = vst [vmem:[%s3952_s11 + $0x120] sm:$0xff] %v3806_v0 }
  0x5f   : > { %266 = vst [vmem:[%s3952_s11 + $0x128] sm:$0xff] %v3806_v0 }
  0x60   : > { %267 = vst [vmem:[%s3952_s11 + $0x130] sm:$0xff] %v3806_v0 }
  0x61   : > { %268 = vst [vmem:[%s3952_s11 + $0x138] sm:$0xff] %v3806_v0 }
  0x62   : > { %269 = vst [vmem:[%s3952_s11 + $0x140] sm:$0xff] %v3806_v0 }
  0x63   : > { %270 = vst [vmem:[%s3952_s11 + $0x148] sm:$0xff] %v3806_v0 }
  0x64   : > { %271 = vst [vmem:[%s3952_s11 + $0x150] sm:$0xff] %v3806_v0 }
  0x65   : > { %272 = vst [vmem:[%s3952_s11 + $0x158] sm:$0xff] %v3806_v0 }
  0x66   : > { %273 = vst [vmem:[%s3952_s11 + $0x160] sm:$0xff] %v3806_v0 }
  0x67   : > { %274 = vst [vmem:[%s3952_s11 + $0x168] sm:$0xff] %v3806_v0 }
  0x68   : > { %275 = vst [vmem:[%s3952_s11 + $0x170] sm:$0xff] %v3806_v0 }
  0x69   : > { %276 = vst [vmem:[%s3952_s11 + $0x178] sm:$0xff] %v3806_v0 }
  0x6a   : > { %277 = vst [vmem:[%s3952_s11 + $0x180] sm:$0xff] %v3806_v0 }
  0x6b   : > { %278 = vst [vmem:[%s3952_s11 + $0x188] sm:$0xff] %v3806_v0 }
  0x6c   : > { %279 = vst [vmem:[%s3952_s11 + $0x190] sm:$0xff] %v3806_v0 }
  0x6d   : > { %280 = vst [vmem:[%s3952_s11 + $0x198] sm:$0xff] %v3806_v0 }
  0x6e   : > { %281 = vst [vmem:[%s3952_s11 + $0x1a0] sm:$0xff] %v3806_v0 }
  0x6f   : > { %282 = vst [vmem:[%s3952_s11 + $0x1a8] sm:$0xff] %v3806_v0 }
  0x70   : > { %283 = vst [vmem:[%s3952_s11 + $0x1b0] sm:$0xff] %v3806_v0 }
  0x71   : > { %284 = vst [vmem:[%s3952_s11 + $0x1b8] sm:$0xff] %v3806_v0 }
  0x72   : > { %285 = vst [vmem:[%s3952_s11 + $0x1c0] sm:$0xff] %v3806_v0 }
  0x73   : > { %286 = vst [vmem:[%s3952_s11 + $0x1c8] sm:$0xff] %v3806_v0 }
  0x74   : > { %287 = vst [vmem:[%s3952_s11 + $0x1d0] sm:$0xff] %v3806_v0 }
  0x75   : > { %288 = vst [vmem:[%s3952_s11 + $0x1d8] sm:$0xff] %v3806_v0 }
  0x76   : > { %289 = vst [vmem:[%s3952_s11 + $0x1e0] sm:$0xff] %v3806_v0 }
  0x77   : > { %290 = vst [vmem:[%s3952_s11 + $0x1e8] sm:$0xff] %v3806_v0 }
  0x78   : > { %291 = vst [vmem:[%s3952_s11 + $0x1f0] sm:$0xff] %v3806_v0 }
  0x79   : > { %292 = vst [vmem:[%s3952_s11 + $0x1f8] sm:$0xff] %v3806_v0 }
  0x7a PF: > { %s2540_s4 = sshll.u32 %s3785_s18, 9  ;;  %v2544_v29 = vld [vmem:[%s3939_s23] sm:$0xf]  ;;  %v3223_v30 = vld [vmem:[%s3939_s23 + $0xc] sm:$0xf0]  ;;  %p3182_p7 = scmp.ne.s32.totalorder %s3785_s18, 1 }
  0x7b   : > { %s294_s5 = sshra.s32 %s2540_s4, 3  ;;  %v3221_v31 = vld [vmem:[%s3939_s23 + $0x4] sm:$0xf]  ;;  %v2546_v36 = vld [vmem:[%s3939_s23 + $0x10] sm:$0xf0]  ;;  %v2545_v41 = vor.u32 %v3223_v30, %v2544_v29 }
  0x7c   : > { %s2541_s6 = sshll.u32 %s294_s5, 2  ;;  %v2552_v37 = vld [vmem:[%s3939_s23 + $0x8] sm:$0xf]  ;;  %v3224_v38 = vld [vmem:[%s3939_s23 + $0x14] sm:$0xf0]  ;;  %v2549_v42 = vor.u32 %v3221_v31, %v2546_v36 }
  0x7d   : > { %s4089_s24 = scalar_lea.vmem %s4659_s1, %s2541_s6  ;;  %v3222_v39 = vld [vmem:[%s3939_s23 + $0xc] sm:$0xf]  ;;  %v2554_v40 = vld [vmem:[%s3939_s23 + $0x18] sm:$0xf0]  ;;  %v2553_v43 = vor.u32 %v3224_v38, %v2552_v37  ;;  %v2560_v45 = vld [vmem:[%s3939_s23 + $0x20] sm:$0xf] }
  0x7e   : > { %v3196_v1 = vld [vmem:[%s4089_s24 + $0x38] sm:$0xff]  ;;  %v3195_v5 = vld [vmem:[%s4089_s24 + $0x30] sm:$0xff]  ;;  %v3194_v9 = vld [vmem:[%s4089_s24 + $0x28] sm:$0xff]  ;;  %v2557_v44 = vor.u32 %v3222_v39, %v2554_v40 }
  0x7f   : > { %v3204_v2 = vld [vmem:[%s4089_s24 + $0x78] sm:$0xff]  ;;  %1386 = vmatpush.bf16.msra.mxu0 %v3196_v1  ;;  %v3203_v6 = vld [vmem:[%s4089_s24 + $0x70] sm:$0xff]  ;;  %v3202_v10 = vld [vmem:[%s4089_s24 + $0x68] sm:$0xff] }
  0x80   : > { %v3212_v3 = vld [vmem:[%s4089_s24 + $0xb8] sm:$0xff]  ;;  %1555 = vmatpush.bf16.msra.mxu1 %v3204_v2  ;;  %v3211_v7 = vld [vmem:[%s4089_s24 + $0xb0] sm:$0xff]  ;;  %v3210_v11 = vld [vmem:[%s4089_s24 + $0xa8] sm:$0xff] }
  0x81   : > { %v3220_v4 = vld [vmem:[%s4089_s24 + $0xf8] sm:$0xff]  ;;  %1724 = vmatpush.bf16.msra.mxu2 %v3212_v3  ;;  %v3219_v8 = vld [vmem:[%s4089_s24 + $0xf0] sm:$0xff]  ;;  %v3218_v12 = vld [vmem:[%s4089_s24 + $0xe8] sm:$0xff] }
  0x82   : > { %1893 = vmatpush.bf16.msra.mxu3 %v3220_v4  ;;  %v3193_v13 = vld [vmem:[%s4089_s24 + $0x20] sm:$0xff]  ;;  %v3192_v17 = vld [vmem:[%s4089_s24 + $0x18] sm:$0xff]  ;;  %v3191_v21 = vld [vmem:[%s4089_s24 + $0x10] sm:$0xff] }
  0x83   : > { %1387 = vmatpush.bf16.msra.mxu0 %v3195_v5  ;;  %v3201_v14 = vld [vmem:[%s4089_s24 + $0x60] sm:$0xff]  ;;  %v3200_v18 = vld [vmem:[%s4089_s24 + $0x58] sm:$0xff]  ;;  %v3199_v22 = vld [vmem:[%s4089_s24 + $0x50] sm:$0xff] }
  0x84   : > { %1556 = vmatpush.bf16.msra.mxu1 %v3203_v6  ;;  %v3209_v15 = vld [vmem:[%s4089_s24 + $0xa0] sm:$0xff]  ;;  %v3208_v19 = vld [vmem:[%s4089_s24 + $0x98] sm:$0xff]  ;;  %v3207_v23 = vld [vmem:[%s4089_s24 + $0x90] sm:$0xff] }
  0x85   : > { %1725 = vmatpush.bf16.msra.mxu2 %v3211_v7  ;;  %v3217_v16 = vld [vmem:[%s4089_s24 + $0xe0] sm:$0xff]  ;;  %v3216_v20 = vld [vmem:[%s4089_s24 + $0xd8] sm:$0xff]  ;;  %v3215_v24 = vld [vmem:[%s4089_s24 + $0xd0] sm:$0xff] }
  0x86   : > { %1894 = vmatpush.bf16.msra.mxu3 %v3219_v8  ;;  %v3190_v25 = vld [vmem:[%s4089_s24 + $0x8] sm:$0xff]  ;;  %v3189_v32 = vld [vmem:[%s4089_s24] sm:$0xff]  ;;  %v3227_v46 = vld [vmem:[%s3939_s23 + $0x2c] sm:$0xf0] }
  0x87   : > { %1388 = vmatpush.bf16.msra.mxu0 %v3194_v9  ;;  %v3198_v26 = vld [vmem:[%s4089_s24 + $0x48] sm:$0xff]  ;;  %v3197_v33 = vld [vmem:[%s4089_s24 + $0x40] sm:$0xff]  ;;  %v2562_v48 = vld [vmem:[%s3939_s23 + $0x30] sm:$0xf0]  ;;  %v2561_v53 = vor.u32 %v3227_v46, %v2560_v45 }
  0x88   : > { %1557 = vmatpush.bf16.msra.mxu1 %v3202_v10  ;;  %v3206_v27 = vld [vmem:[%s4089_s24 + $0x88] sm:$0xff]  ;;  %v3205_v34 = vld [vmem:[%s4089_s24 + $0x80] sm:$0xff]  ;;  %v3228_v50 = vld [vmem:[%s3939_s23 + $0x34] sm:$0xf0] }
  0x89   : > { %1726 = vmatpush.bf16.msra.mxu2 %v3210_v11  ;;  %v3214_v28 = vld [vmem:[%s4089_s24 + $0xc8] sm:$0xff]  ;;  %v3213_v35 = vld [vmem:[%s4089_s24 + $0xc0] sm:$0xff]  ;;  %v2570_v52 = vld [vmem:[%s3939_s23 + $0x38] sm:$0xf0] }
  0x8a   : > { %1895 = vmatpush.bf16.msra.mxu3 %v3218_v12  ;;  %v3225_v47 = vld [vmem:[%s3939_s23 + $0x24] sm:$0xf]  ;;  %v2568_v49 = vld [vmem:[%s3939_s23 + $0x28] sm:$0xf]  ;;  %v3226_v51 = vld [vmem:[%s3939_s23 + $0x2c] sm:$0xf] }
  0x8b   : > { %1389 = vmatpush.bf16.msra.mxu0 %v3193_v13  ;;  %v2565_v54 = vor.u32 %v3225_v47, %v2562_v48  ;;  %v2569_v55 = vor.u32 %v3228_v50, %v2568_v49  ;;  %v2573_v56 = vor.u32 %v3226_v51, %v2570_v52  ;;  %v2576_v57 = vld [vmem:[%s3939_s23 + $0x40] sm:$0xf]  ;;  %v3231_v58 = vld [vmem:[%s3939_s23 + $0x4c] sm:$0xf0]  ;;  %v3229_v59 = vld [vmem:[%s3939_s23 + $0x44] sm:$0xf] }
  0x8c   : > { %1558 = vmatpush.bf16.msra.mxu1 %v3201_v14  ;;  %v2578_v60 = vld [vmem:[%s3939_s23 + $0x50] sm:$0xf0]  ;;  %v2584_v61 = vld [vmem:[%s3939_s23 + $0x48] sm:$0xf]  ;;  %v3232_v62 = vld [vmem:[%s3939_s23 + $0x54] sm:$0xf0]  ;;  %v2577_v1 = vor.u32 %v3231_v58, %v2576_v57 }
  0x8d   : > { %1727 = vmatpush.bf16.msra.mxu2 %v3209_v15  ;;  %v3230_v63 = vld [vmem:[%s3939_s23 + $0x4c] sm:$0xf]  ;;  %v2586_v0 = vld [vmem:[%s3939_s23 + $0x58] sm:$0xf0]  ;;  %v2581_v2 = vor.u32 %v3229_v59, %v2578_v60  ;;  %v2585_v3 = vor.u32 %v3232_v62, %v2584_v61  ;;  %v2592_v5 = vld [vmem:[%s3939_s23 + $0x60] sm:$0xf] }
  0x8e   : > { %1896 = vmatpush.bf16.msra.mxu3 %v3217_v16  ;;  %v2589_v4 = vor.u32 %v3230_v63, %v2586_v0  ;;  %v3235_v6 = vld [vmem:[%s3939_s23 + $0x6c] sm:$0xf0]  ;;  %v3233_v7 = vld [vmem:[%s3939_s23 + $0x64] sm:$0xf]  ;;  %v2594_v8 = vld [vmem:[%s3939_s23 + $0x70] sm:$0xf0] }
  0x8f   : > { %1390 = vmatpush.bf16.msra.mxu0 %v3192_v17  ;;  %v2600_v9 = vld [vmem:[%s3939_s23 + $0x68] sm:$0xf]  ;;  %v3236_v10 = vld [vmem:[%s3939_s23 + $0x74] sm:$0xf0]  ;;  %v3234_v11 = vld [vmem:[%s3939_s23 + $0x6c] sm:$0xf]  ;;  %v2593_v13 = vor.u32 %v3235_v6, %v2592_v5  ;;  %v2597_v14 = vor.u32 %v3233_v7, %v2594_v8 }
  0x90   : > { %1559 = vmatpush.bf16.msra.mxu1 %v3200_v18  ;;  %v2602_v12 = vld [vmem:[%s3939_s23 + $0x78] sm:$0xf0]  ;;  %v2601_v15 = vor.u32 %v3236_v10, %v2600_v9  ;;  %v2608_v17 = vld [vmem:[%s3939_s23 + $0x80] sm:$0xf]  ;;  %v3239_v18 = vld [vmem:[%s3939_s23 + $0x8c] sm:$0xf0] }
  0x91   : > { %1728 = vmatpush.bf16.msra.mxu2 %v3208_v19  ;;  %v2605_v16 = vor.u32 %v3234_v11, %v2602_v12  ;;  %v3237_v19 = vld [vmem:[%s3939_s23 + $0x84] sm:$0xf]  ;;  %v2624_v29 = vld [vmem:[%s3939_s23 + $0xa0] sm:$0xf]  ;;  %v3243_v30 = vld [vmem:[%s3939_s23 + $0xac] sm:$0xf0] }
  0x92   : > { %1897 = vmatpush.bf16.msra.mxu3 %v3216_v20  ;;  %v2610_v20 = vld [vmem:[%s3939_s23 + $0x90] sm:$0xf0]  ;;  %v3241_v31 = vld [vmem:[%s3939_s23 + $0xa4] sm:$0xf]  ;;  %v2634_v36 = vld [vmem:[%s3939_s23 + $0xb8] sm:$0xf0]  ;;  %v2625_v37 = vor.u32 %v3243_v30, %v2624_v29 }
  0x93   : > { %1391 = vmatpush.bf16.msra.mxu0 %v3191_v21  ;;  %v2616_v21 = vld [vmem:[%s3939_s23 + $0x88] sm:$0xf]  ;;  %v3248_v46 = vld [vmem:[%s3939_s23 + $0xd4] sm:$0xf0]  ;;  %v3246_v47 = vld [vmem:[%s3939_s23 + $0xcc] sm:$0xf] }
  0x94   : > { %1560 = vmatpush.bf16.msra.mxu1 %v3199_v22  ;;  %v3240_v22 = vld [vmem:[%s3939_s23 + $0x94] sm:$0xf0]  ;;  %v2648_v45 = vld [vmem:[%s3939_s23 + $0xc8] sm:$0xf]  ;;  %v2650_v48 = vld [vmem:[%s3939_s23 + $0xd8] sm:$0xf0] }
  0x95   : > { %1729 = vmatpush.bf16.msra.mxu2 %v3207_v23  ;;  %v3238_v23 = vld [vmem:[%s3939_s23 + $0x8c] sm:$0xf]  ;;  %v2649_v51 = vor.u32 %v3248_v46, %v2648_v45  ;;  %v2653_v52 = vor.u32 %v3246_v47, %v2650_v48  ;;  %v2664_v57 = vld [vmem:[%s3939_s23 + $0xe8] sm:$0xf]  ;;  %v3252_v58 = vld [vmem:[%s3939_s23 + $0xf4] sm:$0xf0] }
  0x96   : > { %1898 = vmatpush.bf16.msra.mxu3 %v3215_v24  ;;  %v2618_v24 = vld [vmem:[%s3939_s23 + $0x98] sm:$0xf0]  ;;  %v3250_v59 = vld [vmem:[%s3939_s23 + $0xec] sm:$0xf]  ;;  %v2665_v63 = vor.u32 %v3252_v58, %v2664_v57  ;;  %v2680_v5 = vld [vmem:[%s3939_s23 + $0x108] sm:$0xf] }
  0x97   : > { %1392 = vmatpush.bf16.msra.mxu0 %v3190_v25  ;;  %v2609_v25 = vor.u32 %v3239_v18, %v2608_v17  ;;  %v2666_v60 = vld [vmem:[%s3939_s23 + $0xf8] sm:$0xf0]  ;;  %v3256_v6 = vld [vmem:[%s3939_s23 + $0x114] sm:$0xf0]  ;;  %v3254_v7 = vld [vmem:[%s3939_s23 + $0x10c] sm:$0xf] }
  0x98   : > { %1561 = vmatpush.bf16.msra.mxu1 %v3198_v26  ;;  %v2613_v26 = vor.u32 %v3237_v19, %v2610_v20  ;;  %v2669_v0 = vor.u32 %v3250_v59, %v2666_v60  ;;  %v2682_v8 = vld [vmem:[%s3939_s23 + $0x118] sm:$0xf0]  ;;  %v3260_v29 = vld [vmem:[%s3939_s23 + $0x134] sm:$0xf0]  ;;  %v3258_v30 = vld [vmem:[%s3939_s23 + $0x12c] sm:$0xf] }
  0x99   : > { %1730 = vmatpush.bf16.msra.mxu2 %v3206_v27  ;;  %v2617_v27 = vor.u32 %v3240_v22, %v2616_v21  ;;  %v362_v21 = vld [vmem:[%s3952_s11] sm:$0xff]  ;;  %v2706_v57 = vld [vmem:[%s3939_s23 + $0x150] sm:$0xf0]  ;;  %v2712_v58 = vld [vmem:[%s3939_s23 + $0x148] sm:$0xf] }
  0x9a   : > { %1899 = vmatpush.bf16.msra.mxu3 %v3214_v28  ;;  %v2621_v28 = vor.u32 %v3238_v23, %v2618_v24  ;;  %v2688_v23 = vld [vmem:[%s3939_s23 + $0x120] sm:$0xf]  ;;  %v3259_v24 = vld [vmem:[%s3939_s23 + $0x12c] sm:$0xf0]  ;;  %v3264_v59 = vld [vmem:[%s3939_s23 + $0x154] sm:$0xf0] }
  0x9b   : > { %1393 = vmatpush.bf16.msra.mxu0 %v3189_v32  ;;  %v2626_v32 = vld [vmem:[%s3939_s23 + $0xb0] sm:$0xf0]  ;;  %v3262_v60 = vld [vmem:[%s3939_s23 + $0x14c] sm:$0xf] }
  0x9c   : > { %1562 = vmatpush.bf16.msra.mxu1 %v3197_v33  ;;  %v2632_v33 = vld [vmem:[%s3939_s23 + $0xa8] sm:$0xf]  ;;  %v2629_v38 = vor.u32 %v3241_v31, %v2626_v32  ;;  %v2698_v31 = vld [vmem:[%s3939_s23 + $0x138] sm:$0xf0] }
  0x9d   : > { %1731 = vmatpush.bf16.msra.mxu2 %v3205_v34  ;;  %v3244_v34 = vld [vmem:[%s3939_s23 + $0xb4] sm:$0xf0] }
  0x9e   : > { %1900 = vmatpush.bf16.msra.mxu3 %v3213_v35  ;;  %1394 = vmatmul.bf16.vlgmr.msra.gmra.mxu0 %v2545_v41  ;;  %v3242_v35 = vld [vmem:[%s3939_s23 + $0xac] sm:$0xf]  ;;  %v2633_v39 = vor.u32 %v3244_v34, %v2632_v33  ;;  %v2640_v41 = vld [vmem:[%s3939_s23 + $0xc0] sm:$0xf] }
  0x9f   : > { %1563 = vmatmul.bf16.vlgmr.msra.gmra.mxu1 %v2549_v42  ;;  %v2637_v40 = vor.u32 %v3242_v35, %v2634_v36  ;;  %v3247_v42 = vld [vmem:[%s3939_s23 + $0xcc] sm:$0xf0]  ;;  %v2689_v35 = vor.u32 %v3259_v24, %v2688_v23  ;;  %v2722_v23 = vld [vmem:[%s3939_s23 + $0x170] sm:$0xf0]  ;;  %v2728_v24 = vld [vmem:[%s3939_s23 + $0x168] sm:$0xf] }
  0xa0   : > { %1732 = vmatmul.bf16.vlgmr.msra.gmra.mxu2 %v2553_v43  ;;  %v3245_v43 = vld [vmem:[%s3939_s23 + $0xc4] sm:$0xf]  ;;  %v2641_v49 = vor.u32 %v3247_v42, %v2640_v41  ;;  %v2701_v41 = vor.u32 %v3258_v30, %v2698_v31  ;;  %v363_v42 = vld [vmem:[%s3952_s11 + $0x8] sm:$0xff] }
  0xa1   : > { %1901 = vmatmul.bf16.vlgmr.msra.gmra.mxu3 %v2557_v44  ;;  %v2642_v44 = vld [vmem:[%s3939_s23 + $0xd0] sm:$0xf0] }
  0xa2   : > { %v2645_v50 = vor.u32 %v3245_v43, %v2642_v44 }
  0xae   : > { %1399 = vmatmul.bf16.gmra.mxu0 %v2561_v53  ;;  %v2656_v53 = vld [vmem:[%s3939_s23 + $0xe0] sm:$0xf] }
  0xaf   : > { %1568 = vmatmul.bf16.gmra.mxu1 %v2565_v54  ;;  %v3251_v54 = vld [vmem:[%s3939_s23 + $0xec] sm:$0xf0] }
  0xb0   : > { %1737 = vmatmul.bf16.gmra.mxu2 %v2569_v55  ;;  %v3249_v55 = vld [vmem:[%s3939_s23 + $0xe4] sm:$0xf]  ;;  %v2657_v61 = vor.u32 %v3251_v54, %v2656_v53  ;;  %v2704_v53 = vld [vmem:[%s3939_s23 + $0x140] sm:$0xf]  ;;  %v3263_v54 = vld [vmem:[%s3939_s23 + $0x14c] sm:$0xf0] }
  0xb1   : > { %1906 = vmatmul.bf16.gmra.mxu3 %v2573_v56  ;;  %v2658_v56 = vld [vmem:[%s3939_s23 + $0xf0] sm:$0xf0] }
  0xb2   : > { %v2661_v62 = vor.u32 %v3249_v55, %v2658_v56  ;;  %v3261_v56 = vld [vmem:[%s3939_s23 + $0x144] sm:$0xf] }
  0xbe   : > { %1404 = vmatmul.bf16.gmra.mxu0 %v2577_v1  ;;  %v2672_v1 = vld [vmem:[%s3939_s23 + $0x100] sm:$0xf] }
  0xbf   : > { %1573 = vmatmul.bf16.gmra.mxu1 %v2581_v2  ;;  %v3255_v2 = vld [vmem:[%s3939_s23 + $0x10c] sm:$0xf0] }
  0xc0   : > { %1742 = vmatmul.bf16.gmra.mxu2 %v2585_v3  ;;  %v3253_v3 = vld [vmem:[%s3939_s23 + $0x104] sm:$0xf]  ;;  %v2673_v9 = vor.u32 %v3255_v2, %v2672_v1  ;;  %v2705_v1 = vor.u32 %v3263_v54, %v2704_v53  ;;  %v2709_v2 = vor.u32 %v3261_v56, %v2706_v57  ;;  %v2738_v53 = vld [vmem:[%s3939_s23 + $0x190] sm:$0xf0]  ;;  %v2744_v54 = vld [vmem:[%s3939_s23 + $0x188] sm:$0xf] }
  0xc1   : > { %1911 = vmatmul.bf16.gmra.mxu3 %v2589_v4  ;;  %v2674_v4 = vld [vmem:[%s3939_s23 + $0x110] sm:$0xf0]  ;;  %v3270_v56 = vld [vmem:[%s3939_s23 + $0x18c] sm:$0xf]  ;;  %v2746_v57 = vld [vmem:[%s3939_s23 + $0x198] sm:$0xf0] }
  0xc2   : > { %v2677_v10 = vor.u32 %v3253_v3, %v2674_v4 }
  0xce   : > { %1409 = vmatmul.bf16.gmra.mxu0 %v2593_v13  ;;  %v2681_v13 = vor.u32 %v3256_v6, %v2680_v5  ;;  %v2713_v6 = vor.u32 %v3264_v59, %v2712_v58 }
  0xcf   : > { %1578 = vmatmul.bf16.gmra.mxu1 %v2597_v14  ;;  %v2685_v14 = vor.u32 %v3254_v7, %v2682_v8  ;;  %v365_v8 = vld [vmem:[%s3952_s11 + $0x18] sm:$0xff] }
  0xd0   : > { %1747 = vmatmul.bf16.gmra.mxu2 %v2601_v15 }
  0xd1   : > { %1916 = vmatmul.bf16.gmra.mxu3 %v2605_v16 }
  0xde   : > { %1414 = vmatmul.bf16.gmra.mxu0 %v2609_v25 }
  0xdf   : > { %1583 = vmatmul.bf16.gmra.mxu1 %v2613_v26  ;;  %v3257_v26 = vld [vmem:[%s3939_s23 + $0x124] sm:$0xf] }
  0xe0   : > { %1752 = vmatmul.bf16.gmra.mxu2 %v2617_v27  ;;  %v2690_v27 = vld [vmem:[%s3939_s23 + $0x130] sm:$0xf0] }
  0xe1   : > { %1921 = vmatmul.bf16.gmra.mxu3 %v2621_v28  ;;  %v2696_v28 = vld [vmem:[%s3939_s23 + $0x128] sm:$0xf]  ;;  %v2693_v36 = vor.u32 %v3257_v26, %v2690_v27  ;;  %v3266_v26 = vld [vmem:[%s3939_s23 + $0x16c] sm:$0xf]  ;;  %v2730_v27 = vld [vmem:[%s3939_s23 + $0x178] sm:$0xf0] }
  0xee   : > { %1419 = vmatmul.bf16.gmra.mxu0 %v2625_v37 }
  0xef   : > { %1588 = vmatmul.bf16.gmra.mxu1 %v2629_v38 }
  0xf0   : > { %1757 = vmatmul.bf16.gmra.mxu2 %v2633_v39 }
  0xf1   : > { %1926 = vmatmul.bf16.gmra.mxu3 %v2637_v40  ;;  %v2697_v40 = vor.u32 %v3260_v29, %v2696_v28 }
  0xfe   : > { %1424 = vmatmul.bf16.gmra.mxu0 %v2641_v49 }
  0xff   : > { %1593 = vmatmul.bf16.gmra.mxu1 %v2645_v50 }
 0x100   : > { %1762 = vmatmul.bf16.gmra.mxu2 %v2649_v51  ;;  %v364_v51 = vld [vmem:[%s3952_s11 + $0x10] sm:$0xff] }
 0x101   : > { %1931 = vmatmul.bf16.gmra.mxu3 %v2653_v52 }
 0x10e   : > { %1429 = vmatmul.bf16.gmra.mxu0 %v2657_v61  ;;  %v2714_v61 = vld [vmem:[%s3939_s23 + $0x158] sm:$0xf0] }
 0x10f   : > { %1598 = vmatmul.bf16.gmra.mxu1 %v2661_v62  ;;  %v2717_v7 = vor.u32 %v3262_v60, %v2714_v61 }
 0x110   : > { %1767 = vmatmul.bf16.gmra.mxu2 %v2665_v63 }
 0x111   : > { %1936 = vmatmul.bf16.gmra.mxu3 %v2669_v0 }
 0x11b   : > { %v1395_v11 = vpop.f32.mrf.mxu0 }
 0x11c   : > { %v1564_v12 = vpop.f32.mrf.mxu1 }
 0x11d   : > { %v1565_v15 = vadd.f32 %v1564_v12, %v1395_v11 }
 0x11e   : > { %1434 = vmatmul.bf16.gmra.mxu0 %v2673_v9 }
 0x11f   : > { %1603 = vmatmul.bf16.gmra.mxu1 %v2677_v10 }
 0x120   : > { %1772 = vmatmul.bf16.gmra.mxu2 %v2681_v13 }
 0x121   : > { %1941 = vmatmul.bf16.gmra.mxu3 %v2685_v14 }
 0x123   : > { %v1733_v16 = vpop.f32.mrf.mxu2  ;;  %v1397_v19 = vpop.f32.mrf.mxu0 }
 0x124   : > { %v1902_v17 = vpop.f32.mrf.mxu3  ;;  %v1734_v18 = vadd.f32 %v1733_v16, %v1565_v15  ;;  %v1566_v20 = vpop.f32.mrf.mxu1 }
 0x125   : > { %v1567_v32 = vadd.f32 %v1566_v20, %v1397_v19  ;;  %v2720_v19 = vld [vmem:[%s3939_s23 + $0x160] sm:$0xf]  ;;  %v3267_v20 = vld [vmem:[%s3939_s23 + $0x16c] sm:$0xf0] }
 0x126   : > { %v1903_v22 = vadd.f32 %v1902_v17, %v1734_v18  ;;  %v366_v17 = vld [vmem:[%s3952_s11 + $0x20] sm:$0xff]  ;;  %v2721_v31 = vor.u32 %v3267_v20, %v2720_v19  ;;  %v2754_v19 = vld [vmem:[%s3939_s23 + $0x1b0] sm:$0xf0]  ;;  %v2760_v20 = vld [vmem:[%s3939_s23 + $0x1a8] sm:$0xf] }
 0x128   : > { %v2062_v25 = vadd.f32 %v1903_v22, %v362_v21  ;;  %v3265_v22 = vld [vmem:[%s3939_s23 + $0x164] sm:$0xf] }
 0x12a   : > { %2126 = vst [vmem:[%s3952_s11] sm:$0xff] %v2062_v25  ;;  %v3268_v25 = vld [vmem:[%s3939_s23 + $0x174] sm:$0xf0] }
 0x12b   : > { %v1735_v33 = vpop.f32.mrf.mxu2  ;;  %v1400_v38 = vpop.f32.mrf.mxu0 }
 0x12c   : > { %v1904_v34 = vpop.f32.mrf.mxu3  ;;  %v1736_v37 = vadd.f32 %v1735_v33, %v1567_v32  ;;  %v1569_v39 = vpop.f32.mrf.mxu1  ;;  %v2725_v32 = vor.u32 %v3265_v22, %v2722_v23  ;;  %v3274_v22 = vld [vmem:[%s3939_s23 + $0x1ac] sm:$0xf]  ;;  %v2762_v23 = vld [vmem:[%s3939_s23 + $0x1b8] sm:$0xf0] }
 0x12d   : > { %v1570_v45 = vadd.f32 %v1569_v39, %v1400_v38  ;;  %v367_v38 = vld [vmem:[%s3952_s11 + $0x28] sm:$0xff] }
 0x12e   : > { %v1905_v43 = vadd.f32 %v1904_v34, %v1736_v37  ;;  %1439 = vmatmul.bf16.gmra.mxu0 %v2689_v35  ;;  %v2733_v37 = vor.u32 %v3266_v26, %v2730_v27 }
 0x12f   : > { %1608 = vmatmul.bf16.gmra.mxu1 %v2693_v36  ;;  %v2729_v36 = vor.u32 %v3268_v25, %v2728_v24 }
 0x130   : > { %v2063_v44 = vadd.f32 %v1905_v43, %v363_v42  ;;  %1777 = vmatmul.bf16.gmra.mxu2 %v2697_v40 }
 0x131   : > { %1946 = vmatmul.bf16.gmra.mxu3 %v2701_v41 }
 0x132   : > { %2127 = vst [vmem:[%s3952_s11 + $0x8] sm:$0xff] %v2063_v44 }
 0x133   : > { %v1738_v46 = vpop.f32.mrf.mxu2  ;;  %v1402_v49 = vpop.f32.mrf.mxu0 }
 0x134   : > { %v1907_v47 = vpop.f32.mrf.mxu3  ;;  %v1739_v48 = vadd.f32 %v1738_v46, %v1570_v45  ;;  %v1571_v50 = vpop.f32.mrf.mxu1 }
 0x135   : > { %v1572_v62 = vadd.f32 %v1571_v50, %v1402_v49  ;;  %v2736_v49 = vld [vmem:[%s3939_s23 + $0x180] sm:$0xf]  ;;  %v3271_v50 = vld [vmem:[%s3939_s23 + $0x18c] sm:$0xf0] }
 0x136   : > { %v1908_v52 = vadd.f32 %v1907_v47, %v1739_v48  ;;  %v368_v47 = vld [vmem:[%s3952_s11 + $0x30] sm:$0xff]  ;;  %v2737_v61 = vor.u32 %v3271_v50, %v2736_v49  ;;  %v2776_v50 = vld [vmem:[%s3939_s23 + $0x1c8] sm:$0xf] }
 0x137   : > { %v2770_v49 = vld [vmem:[%s3939_s23 + $0x1d0] sm:$0xf0] }
 0x138   : > { %v2064_v55 = vadd.f32 %v1908_v52, %v364_v51  ;;  %v3269_v52 = vld [vmem:[%s3939_s23 + $0x184] sm:$0xf] }
 0x13a   : > { %2128 = vst [vmem:[%s3952_s11 + $0x10] sm:$0xff] %v2064_v55  ;;  %v3272_v55 = vld [vmem:[%s3939_s23 + $0x194] sm:$0xf0] }
 0x13b   : > { %v1740_v63 = vpop.f32.mrf.mxu2  ;;  %v1405_v4 = vpop.f32.mrf.mxu0 }
 0x13c   : > { %v1909_v0 = vpop.f32.mrf.mxu3  ;;  %v1741_v3 = vadd.f32 %v1740_v63, %v1572_v62  ;;  %v1574_v5 = vpop.f32.mrf.mxu1  ;;  %v2741_v62 = vor.u32 %v3269_v52, %v2738_v53  ;;  %v3278_v52 = vld [vmem:[%s3939_s23 + $0x1cc] sm:$0xf]  ;;  %v2778_v53 = vld [vmem:[%s3939_s23 + $0x1d8] sm:$0xf0] }
 0x13d   : > { %v1575_v11 = vadd.f32 %v1574_v5, %v1405_v4  ;;  %v369_v4 = vld [vmem:[%s3952_s11 + $0x38] sm:$0xff] }
 0x13e   : > { %v1910_v9 = vadd.f32 %v1909_v0, %v1741_v3  ;;  %1444 = vmatmul.bf16.gmra.mxu0 %v2705_v1  ;;  %v2749_v3 = vor.u32 %v3270_v56, %v2746_v57 }
 0x13f   : > { %1613 = vmatmul.bf16.gmra.mxu1 %v2709_v2  ;;  %v2745_v2 = vor.u32 %v3272_v55, %v2744_v54 }
 0x140   : > { %v2065_v10 = vadd.f32 %v1910_v9, %v365_v8  ;;  %1782 = vmatmul.bf16.gmra.mxu2 %v2713_v6 }
 0x141   : > { %1951 = vmatmul.bf16.gmra.mxu3 %v2717_v7 }
 0x142   : > { %2129 = vst [vmem:[%s3952_s11 + $0x18] sm:$0xff] %v2065_v10 }
 0x143   : > { %v1743_v12 = vpop.f32.mrf.mxu2  ;;  %v1407_v15 = vpop.f32.mrf.mxu0 }
 0x144   : > { %v1912_v13 = vpop.f32.mrf.mxu3  ;;  %v1744_v14 = vadd.f32 %v1743_v12, %v1575_v11  ;;  %v1576_v16 = vpop.f32.mrf.mxu1 }
 0x145   : > { %v1577_v28 = vadd.f32 %v1576_v16, %v1407_v15  ;;  %v2752_v15 = vld [vmem:[%s3939_s23 + $0x1a0] sm:$0xf]  ;;  %v3275_v16 = vld [vmem:[%s3939_s23 + $0x1ac] sm:$0xf0] }
 0x146   : > { %v1913_v18 = vadd.f32 %v1912_v13, %v1744_v14  ;;  %v370_v13 = vld [vmem:[%s3952_s11 + $0x40] sm:$0xff]  ;;  %v2753_v27 = vor.u32 %v3275_v16, %v2752_v15  ;;  %v2786_v15 = vld [vmem:[%s3939_s23 + $0x1f0] sm:$0xf0]  ;;  %v2792_v16 = vld [vmem:[%s3939_s23 + $0x1e8] sm:$0xf] }
 0x148   : > { %v2066_v21 = vadd.f32 %v1913_v18, %v366_v17  ;;  %v3273_v18 = vld [vmem:[%s3939_s23 + $0x1a4] sm:$0xf] }
 0x14a   : > { %2130 = vst [vmem:[%s3952_s11 + $0x20] sm:$0xff] %v2066_v21  ;;  %v3276_v21 = vld [vmem:[%s3939_s23 + $0x1b4] sm:$0xf0] }
 0x14b   : > { %v1745_v29 = vpop.f32.mrf.mxu2  ;;  %v1410_v34 = vpop.f32.mrf.mxu0 }
 0x14c   : > { %v1914_v30 = vpop.f32.mrf.mxu3  ;;  %v1746_v33 = vadd.f32 %v1745_v29, %v1577_v28  ;;  %v1579_v35 = vpop.f32.mrf.mxu1  ;;  %v2757_v28 = vor.u32 %v3273_v18, %v2754_v19  ;;  %v3282_v18 = vld [vmem:[%s3939_s23 + $0x1ec] sm:$0xf]  ;;  %v2794_v19 = vld [vmem:[%s3939_s23 + $0x1f8] sm:$0xf0] }
 0x14d   : > { %v1580_v41 = vadd.f32 %v1579_v35, %v1410_v34  ;;  %v371_v34 = vld [vmem:[%s3952_s11 + $0x48] sm:$0xff] }
 0x14e   : > { %v1915_v39 = vadd.f32 %v1914_v30, %v1746_v33  ;;  %1449 = vmatmul.bf16.gmra.mxu0 %v2721_v31  ;;  %v2765_v33 = vor.u32 %v3274_v22, %v2762_v23 }
 0x14f   : > { %1618 = vmatmul.bf16.gmra.mxu1 %v2725_v32  ;;  %v2761_v32 = vor.u32 %v3276_v21, %v2760_v20 }
 0x150   : > { %v2067_v40 = vadd.f32 %v1915_v39, %v367_v38  ;;  %1787 = vmatmul.bf16.gmra.mxu2 %v2729_v36 }
 0x151   : > { %1956 = vmatmul.bf16.gmra.mxu3 %v2733_v37 }
 0x152   : > { %2131 = vst [vmem:[%s3952_s11 + $0x28] sm:$0xff] %v2067_v40 }
 0x153   : > { %v1748_v42 = vpop.f32.mrf.mxu2  ;;  %v1412_v45 = vpop.f32.mrf.mxu0 }
 0x154   : > { %v1917_v43 = vpop.f32.mrf.mxu3  ;;  %v1749_v44 = vadd.f32 %v1748_v42, %v1580_v41  ;;  %v1581_v46 = vpop.f32.mrf.mxu1 }
 0x155   : > { %v1582_v58 = vadd.f32 %v1581_v46, %v1412_v45  ;;  %v2768_v45 = vld [vmem:[%s3939_s23 + $0x1c0] sm:$0xf]  ;;  %v3279_v46 = vld [vmem:[%s3939_s23 + $0x1cc] sm:$0xf0] }
 0x156   : > { %v1918_v48 = vadd.f32 %v1917_v43, %v1749_v44  ;;  %v372_v43 = vld [vmem:[%s3952_s11 + $0x50] sm:$0xff]  ;;  %v2769_v57 = vor.u32 %v3279_v46, %v2768_v45  ;;  %v2808_v46 = vld [vmem:[%s3939_s23 + $0x208] sm:$0xf] }
 0x157   : > { %v2802_v45 = vld [vmem:[%s3939_s23 + $0x210] sm:$0xf0] }
 0x158   : > { %v2068_v51 = vadd.f32 %v1918_v48, %v368_v47  ;;  %v3277_v48 = vld [vmem:[%s3939_s23 + $0x1c4] sm:$0xf] }
 0x15a   : > { %2132 = vst [vmem:[%s3952_s11 + $0x30] sm:$0xff] %v2068_v51  ;;  %v3280_v51 = vld [vmem:[%s3939_s23 + $0x1d4] sm:$0xf0] }
 0x15b   : > { %v1750_v59 = vpop.f32.mrf.mxu2  ;;  %v1415_v0 = vpop.f32.mrf.mxu0 }
 0x15c   : > { %v1919_v60 = vpop.f32.mrf.mxu3  ;;  %v1751_v63 = vadd.f32 %v1750_v59, %v1582_v58  ;;  %v1584_v1 = vpop.f32.mrf.mxu1  ;;  %v2773_v58 = vor.u32 %v3277_v48, %v2770_v49  ;;  %v3286_v48 = vld [vmem:[%s3939_s23 + $0x20c] sm:$0xf]  ;;  %v2810_v49 = vld [vmem:[%s3939_s23 + $0x218] sm:$0xf0] }
 0x15d   : > { %v1585_v7 = vadd.f32 %v1584_v1, %v1415_v0  ;;  %v373_v0 = vld [vmem:[%s3952_s11 + $0x58] sm:$0xff] }
 0x15e   : > { %v1920_v5 = vadd.f32 %v1919_v60, %v1751_v63  ;;  %1454 = vmatmul.bf16.gmra.mxu0 %v2737_v61  ;;  %v2781_v63 = vor.u32 %v3278_v52, %v2778_v53 }
 0x15f   : > { %1623 = vmatmul.bf16.gmra.mxu1 %v2741_v62  ;;  %v2777_v62 = vor.u32 %v3280_v51, %v2776_v50 }
 0x160   : > { %v2069_v6 = vadd.f32 %v1920_v5, %v369_v4  ;;  %1792 = vmatmul.bf16.gmra.mxu2 %v2745_v2 }
 0x161   : > { %1961 = vmatmul.bf16.gmra.mxu3 %v2749_v3 }
 0x162   : > { %2133 = vst [vmem:[%s3952_s11 + $0x38] sm:$0xff] %v2069_v6 }
 0x163   : > { %v1753_v8 = vpop.f32.mrf.mxu2  ;;  %v1417_v11 = vpop.f32.mrf.mxu0 }
 0x164   : > { %v1922_v9 = vpop.f32.mrf.mxu3  ;;  %v1754_v10 = vadd.f32 %v1753_v8, %v1585_v7  ;;  %v1586_v12 = vpop.f32.mrf.mxu1 }
 0x165   : > { %v1587_v24 = vadd.f32 %v1586_v12, %v1417_v11  ;;  %v2784_v11 = vld [vmem:[%s3939_s23 + $0x1e0] sm:$0xf]  ;;  %v3283_v12 = vld [vmem:[%s3939_s23 + $0x1ec] sm:$0xf0] }
 0x166   : > { %v1923_v14 = vadd.f32 %v1922_v9, %v1754_v10  ;;  %v374_v9 = vld [vmem:[%s3952_s11 + $0x60] sm:$0xff]  ;;  %v2785_v23 = vor.u32 %v3283_v12, %v2784_v11  ;;  %v2818_v11 = vld [vmem:[%s3939_s23 + $0x230] sm:$0xf0]  ;;  %v2824_v12 = vld [vmem:[%s3939_s23 + $0x228] sm:$0xf] }
 0x168   : > { %v2070_v17 = vadd.f32 %v1923_v14, %v370_v13  ;;  %v3281_v14 = vld [vmem:[%s3939_s23 + $0x1e4] sm:$0xf] }
 0x16a   : > { %2134 = vst [vmem:[%s3952_s11 + $0x40] sm:$0xff] %v2070_v17  ;;  %v3284_v17 = vld [vmem:[%s3939_s23 + $0x1f4] sm:$0xf0] }
 0x16b   : > { %v1755_v25 = vpop.f32.mrf.mxu2  ;;  %v1420_v30 = vpop.f32.mrf.mxu0 }
 0x16c   : > { %v1924_v26 = vpop.f32.mrf.mxu3  ;;  %v1756_v29 = vadd.f32 %v1755_v25, %v1587_v24  ;;  %v1589_v31 = vpop.f32.mrf.mxu1  ;;  %v2789_v24 = vor.u32 %v3281_v14, %v2786_v15  ;;  %v3290_v14 = vld [vmem:[%s3939_s23 + $0x22c] sm:$0xf]  ;;  %v2826_v15 = vld [vmem:[%s3939_s23 + $0x238] sm:$0xf0] }
 0x16d   : > { %v1590_v37 = vadd.f32 %v1589_v31, %v1420_v30  ;;  %v375_v30 = vld [vmem:[%s3952_s11 + $0x68] sm:$0xff] }
 0x16e   : > { %v1925_v35 = vadd.f32 %v1924_v26, %v1756_v29  ;;  %1459 = vmatmul.bf16.gmra.mxu0 %v2753_v27  ;;  %v2797_v29 = vor.u32 %v3282_v18, %v2794_v19 }
 0x16f   : > { %1628 = vmatmul.bf16.gmra.mxu1 %v2757_v28  ;;  %v2793_v28 = vor.u32 %v3284_v17, %v2792_v16 }
 0x170   : > { %v2071_v36 = vadd.f32 %v1925_v35, %v371_v34  ;;  %1797 = vmatmul.bf16.gmra.mxu2 %v2761_v32 }
 0x171   : > { %1966 = vmatmul.bf16.gmra.mxu3 %v2765_v33 }
 0x172   : > { %2135 = vst [vmem:[%s3952_s11 + $0x48] sm:$0xff] %v2071_v36 }
 0x173   : > { %v1758_v38 = vpop.f32.mrf.mxu2  ;;  %v1422_v41 = vpop.f32.mrf.mxu0 }
 0x174   : > { %v1927_v39 = vpop.f32.mrf.mxu3  ;;  %v1759_v40 = vadd.f32 %v1758_v38, %v1590_v37  ;;  %v1591_v42 = vpop.f32.mrf.mxu1 }
 0x175   : > { %v1592_v54 = vadd.f32 %v1591_v42, %v1422_v41  ;;  %v2800_v41 = vld [vmem:[%s3939_s23 + $0x200] sm:$0xf]  ;;  %v3287_v42 = vld [vmem:[%s3939_s23 + $0x20c] sm:$0xf0] }
 0x176   : > { %v1928_v44 = vadd.f32 %v1927_v39, %v1759_v40  ;;  %v376_v39 = vld [vmem:[%s3952_s11 + $0x70] sm:$0xff]  ;;  %v2801_v53 = vor.u32 %v3287_v42, %v2800_v41  ;;  %v2840_v42 = vld [vmem:[%s3939_s23 + $0x248] sm:$0xf] }
 0x177   : > { %v2834_v41 = vld [vmem:[%s3939_s23 + $0x250] sm:$0xf0] }
 0x178   : > { %v2072_v47 = vadd.f32 %v1928_v44, %v372_v43  ;;  %v3285_v44 = vld [vmem:[%s3939_s23 + $0x204] sm:$0xf] }
 0x17a   : > { %2136 = vst [vmem:[%s3952_s11 + $0x50] sm:$0xff] %v2072_v47  ;;  %v3288_v47 = vld [vmem:[%s3939_s23 + $0x214] sm:$0xf0] }
 0x17b   : > { %v1760_v55 = vpop.f32.mrf.mxu2  ;;  %v1425_v60 = vpop.f32.mrf.mxu0 }
 0x17c   : > { %v1929_v56 = vpop.f32.mrf.mxu3  ;;  %v1761_v59 = vadd.f32 %v1760_v55, %v1592_v54  ;;  %v1594_v61 = vpop.f32.mrf.mxu1  ;;  %v2805_v54 = vor.u32 %v3285_v44, %v2802_v45  ;;  %v3294_v44 = vld [vmem:[%s3939_s23 + $0x24c] sm:$0xf]  ;;  %v2842_v45 = vld [vmem:[%s3939_s23 + $0x258] sm:$0xf0] }
 0x17d   : > { %v1595_v3 = vadd.f32 %v1594_v61, %v1425_v60  ;;  %v377_v60 = vld [vmem:[%s3952_s11 + $0x78] sm:$0xff] }
 0x17e   : > { %v1930_v1 = vadd.f32 %v1929_v56, %v1761_v59  ;;  %1464 = vmatmul.bf16.gmra.mxu0 %v2769_v57  ;;  %v2813_v59 = vor.u32 %v3286_v48, %v2810_v49 }
 0x17f   : > { %1633 = vmatmul.bf16.gmra.mxu1 %v2773_v58  ;;  %v2809_v58 = vor.u32 %v3288_v47, %v2808_v46 }
 0x180   : > { %v2073_v2 = vadd.f32 %v1930_v1, %v373_v0  ;;  %1802 = vmatmul.bf16.gmra.mxu2 %v2777_v62 }
 0x181   : > { %1971 = vmatmul.bf16.gmra.mxu3 %v2781_v63 }
 0x182   : > { %2137 = vst [vmem:[%s3952_s11 + $0x58] sm:$0xff] %v2073_v2 }
 0x183   : > { %v1763_v4 = vpop.f32.mrf.mxu2  ;;  %v1427_v7 = vpop.f32.mrf.mxu0 }
 0x184   : > { %v1932_v5 = vpop.f32.mrf.mxu3  ;;  %v1764_v6 = vadd.f32 %v1763_v4, %v1595_v3  ;;  %v1596_v8 = vpop.f32.mrf.mxu1 }
 0x185   : > { %v1597_v20 = vadd.f32 %v1596_v8, %v1427_v7  ;;  %v2816_v7 = vld [vmem:[%s3939_s23 + $0x220] sm:$0xf]  ;;  %v3291_v8 = vld [vmem:[%s3939_s23 + $0x22c] sm:$0xf0] }
 0x186   : > { %v1933_v10 = vadd.f32 %v1932_v5, %v1764_v6  ;;  %v378_v5 = vld [vmem:[%s3952_s11 + $0x80] sm:$0xff]  ;;  %v2817_v19 = vor.u32 %v3291_v8, %v2816_v7  ;;  %v2850_v7 = vld [vmem:[%s3939_s23 + $0x270] sm:$0xf0]  ;;  %v2856_v8 = vld [vmem:[%s3939_s23 + $0x268] sm:$0xf] }
 0x188   : > { %v2074_v13 = vadd.f32 %v1933_v10, %v374_v9  ;;  %v3289_v10 = vld [vmem:[%s3939_s23 + $0x224] sm:$0xf] }
 0x18a   : > { %2138 = vst [vmem:[%s3952_s11 + $0x60] sm:$0xff] %v2074_v13  ;;  %v3292_v13 = vld [vmem:[%s3939_s23 + $0x234] sm:$0xf0] }
 0x18b   : > { %v1765_v21 = vpop.f32.mrf.mxu2  ;;  %v1430_v26 = vpop.f32.mrf.mxu0 }
 0x18c   : > { %v1934_v22 = vpop.f32.mrf.mxu3  ;;  %v1766_v25 = vadd.f32 %v1765_v21, %v1597_v20  ;;  %v1599_v27 = vpop.f32.mrf.mxu1  ;;  %v2821_v20 = vor.u32 %v3289_v10, %v2818_v11  ;;  %v3298_v10 = vld [vmem:[%s3939_s23 + $0x26c] sm:$0xf]  ;;  %v2858_v11 = vld [vmem:[%s3939_s23 + $0x278] sm:$0xf0] }
 0x18d   : > { %v1600_v33 = vadd.f32 %v1599_v27, %v1430_v26  ;;  %v379_v26 = vld [vmem:[%s3952_s11 + $0x88] sm:$0xff] }
 0x18e   : > { %v1935_v31 = vadd.f32 %v1934_v22, %v1766_v25  ;;  %1469 = vmatmul.bf16.gmra.mxu0 %v2785_v23  ;;  %v2829_v25 = vor.u32 %v3290_v14, %v2826_v15 }
 0x18f   : > { %1638 = vmatmul.bf16.gmra.mxu1 %v2789_v24  ;;  %v2825_v24 = vor.u32 %v3292_v13, %v2824_v12 }
 0x190   : > { %v2075_v32 = vadd.f32 %v1935_v31, %v375_v30  ;;  %1807 = vmatmul.bf16.gmra.mxu2 %v2793_v28 }
 0x191   : > { %1976 = vmatmul.bf16.gmra.mxu3 %v2797_v29 }
 0x192   : > { %2139 = vst [vmem:[%s3952_s11 + $0x68] sm:$0xff] %v2075_v32 }
 0x193   : > { %v1768_v34 = vpop.f32.mrf.mxu2  ;;  %v1432_v37 = vpop.f32.mrf.mxu0 }
 0x194   : > { %v1937_v35 = vpop.f32.mrf.mxu3  ;;  %v1769_v36 = vadd.f32 %v1768_v34, %v1600_v33  ;;  %v1601_v38 = vpop.f32.mrf.mxu1 }
 0x195   : > { %v1602_v50 = vadd.f32 %v1601_v38, %v1432_v37  ;;  %v2832_v37 = vld [vmem:[%s3939_s23 + $0x240] sm:$0xf]  ;;  %v3295_v38 = vld [vmem:[%s3939_s23 + $0x24c] sm:$0xf0] }
 0x196   : > { %v1938_v40 = vadd.f32 %v1937_v35, %v1769_v36  ;;  %v380_v35 = vld [vmem:[%s3952_s11 + $0x90] sm:$0xff]  ;;  %v2833_v49 = vor.u32 %v3295_v38, %v2832_v37  ;;  %v2872_v38 = vld [vmem:[%s3939_s23 + $0x288] sm:$0xf] }
 0x197   : > { %v2866_v37 = vld [vmem:[%s3939_s23 + $0x290] sm:$0xf0] }
 0x198   : > { %v2076_v43 = vadd.f32 %v1938_v40, %v376_v39  ;;  %v3293_v40 = vld [vmem:[%s3939_s23 + $0x244] sm:$0xf] }
 0x19a   : > { %2140 = vst [vmem:[%s3952_s11 + $0x70] sm:$0xff] %v2076_v43  ;;  %v3296_v43 = vld [vmem:[%s3939_s23 + $0x254] sm:$0xf0] }
 0x19b   : > { %v1770_v51 = vpop.f32.mrf.mxu2  ;;  %v1435_v56 = vpop.f32.mrf.mxu0 }
 0x19c   : > { %v1939_v52 = vpop.f32.mrf.mxu3  ;;  %v1771_v55 = vadd.f32 %v1770_v51, %v1602_v50  ;;  %v1604_v57 = vpop.f32.mrf.mxu1  ;;  %v2837_v50 = vor.u32 %v3293_v40, %v2834_v41  ;;  %v3302_v40 = vld [vmem:[%s3939_s23 + $0x28c] sm:$0xf]  ;;  %v2874_v41 = vld [vmem:[%s3939_s23 + $0x298] sm:$0xf0] }
 0x19d   : > { %v1605_v63 = vadd.f32 %v1604_v57, %v1435_v56  ;;  %v381_v56 = vld [vmem:[%s3952_s11 + $0x98] sm:$0xff] }
 0x19e   : > { %v1940_v61 = vadd.f32 %v1939_v52, %v1771_v55  ;;  %1474 = vmatmul.bf16.gmra.mxu0 %v2801_v53  ;;  %v2845_v55 = vor.u32 %v3294_v44, %v2842_v45 }
 0x19f   : > { %1643 = vmatmul.bf16.gmra.mxu1 %v2805_v54  ;;  %v2841_v54 = vor.u32 %v3296_v43, %v2840_v42 }
 0x1a0   : > { %v2077_v62 = vadd.f32 %v1940_v61, %v377_v60  ;;  %1812 = vmatmul.bf16.gmra.mxu2 %v2809_v58 }
 0x1a1   : > { %1981 = vmatmul.bf16.gmra.mxu3 %v2813_v59 }
 0x1a2   : > { %2141 = vst [vmem:[%s3952_s11 + $0x78] sm:$0xff] %v2077_v62 }
 0x1a3   : > { %v1773_v0 = vpop.f32.mrf.mxu2  ;;  %v1437_v3 = vpop.f32.mrf.mxu0 }
 0x1a4   : > { %v1942_v1 = vpop.f32.mrf.mxu3  ;;  %v1774_v2 = vadd.f32 %v1773_v0, %v1605_v63  ;;  %v1606_v4 = vpop.f32.mrf.mxu1 }
 0x1a5   : > { %v1607_v16 = vadd.f32 %v1606_v4, %v1437_v3  ;;  %v2848_v3 = vld [vmem:[%s3939_s23 + $0x260] sm:$0xf]  ;;  %v3299_v4 = vld [vmem:[%s3939_s23 + $0x26c] sm:$0xf0] }
 0x1a6   : > { %v1943_v6 = vadd.f32 %v1942_v1, %v1774_v2  ;;  %v382_v1 = vld [vmem:[%s3952_s11 + $0xa0] sm:$0xff]  ;;  %v2849_v15 = vor.u32 %v3299_v4, %v2848_v3  ;;  %v2882_v3 = vld [vmem:[%s3939_s23 + $0x2b0] sm:$0xf0]  ;;  %v2888_v4 = vld [vmem:[%s3939_s23 + $0x2a8] sm:$0xf] }
 0x1a8   : > { %v2078_v9 = vadd.f32 %v1943_v6, %v378_v5  ;;  %v3297_v6 = vld [vmem:[%s3939_s23 + $0x264] sm:$0xf] }
 0x1aa   : > { %2142 = vst [vmem:[%s3952_s11 + $0x80] sm:$0xff] %v2078_v9  ;;  %v3300_v9 = vld [vmem:[%s3939_s23 + $0x274] sm:$0xf0] }
 0x1ab   : > { %v1775_v17 = vpop.f32.mrf.mxu2  ;;  %v1440_v22 = vpop.f32.mrf.mxu0 }
 0x1ac   : > { %v1944_v18 = vpop.f32.mrf.mxu3  ;;  %v1776_v21 = vadd.f32 %v1775_v17, %v1607_v16  ;;  %v1609_v23 = vpop.f32.mrf.mxu1  ;;  %v2853_v16 = vor.u32 %v3297_v6, %v2850_v7  ;;  %v3306_v6 = vld [vmem:[%s3939_s23 + $0x2ac] sm:$0xf]  ;;  %v2890_v7 = vld [vmem:[%s3939_s23 + $0x2b8] sm:$0xf0] }
 0x1ad   : > { %v1610_v29 = vadd.f32 %v1609_v23, %v1440_v22  ;;  %v383_v22 = vld [vmem:[%s3952_s11 + $0xa8] sm:$0xff] }
 0x1ae   : > { %v1945_v27 = vadd.f32 %v1944_v18, %v1776_v21  ;;  %1479 = vmatmul.bf16.gmra.mxu0 %v2817_v19  ;;  %v2861_v21 = vor.u32 %v3298_v10, %v2858_v11 }
 0x1af   : > { %1648 = vmatmul.bf16.gmra.mxu1 %v2821_v20  ;;  %v2857_v20 = vor.u32 %v3300_v9, %v2856_v8 }
 0x1b0   : > { %v2079_v28 = vadd.f32 %v1945_v27, %v379_v26  ;;  %1817 = vmatmul.bf16.gmra.mxu2 %v2825_v24 }
 0x1b1   : > { %1986 = vmatmul.bf16.gmra.mxu3 %v2829_v25 }
 0x1b2   : > { %2143 = vst [vmem:[%s3952_s11 + $0x88] sm:$0xff] %v2079_v28 }
 0x1b3   : > { %v1778_v30 = vpop.f32.mrf.mxu2  ;;  %v1442_v33 = vpop.f32.mrf.mxu0 }
 0x1b4   : > { %v1947_v31 = vpop.f32.mrf.mxu3  ;;  %v1779_v32 = vadd.f32 %v1778_v30, %v1610_v29  ;;  %v1611_v34 = vpop.f32.mrf.mxu1 }
 0x1b5   : > { %v1612_v46 = vadd.f32 %v1611_v34, %v1442_v33  ;;  %v2864_v33 = vld [vmem:[%s3939_s23 + $0x280] sm:$0xf]  ;;  %v3303_v34 = vld [vmem:[%s3939_s23 + $0x28c] sm:$0xf0] }
 0x1b6   : > { %v1948_v36 = vadd.f32 %v1947_v31, %v1779_v32  ;;  %v384_v31 = vld [vmem:[%s3952_s11 + $0xb0] sm:$0xff]  ;;  %v2865_v45 = vor.u32 %v3303_v34, %v2864_v33  ;;  %v2904_v34 = vld [vmem:[%s3939_s23 + $0x2c8] sm:$0xf] }
 0x1b7   : > { %v2898_v33 = vld [vmem:[%s3939_s23 + $0x2d0] sm:$0xf0] }
 0x1b8   : > { %v2080_v39 = vadd.f32 %v1948_v36, %v380_v35  ;;  %v3301_v36 = vld [vmem:[%s3939_s23 + $0x284] sm:$0xf] }
 0x1ba   : > { %2144 = vst [vmem:[%s3952_s11 + $0x90] sm:$0xff] %v2080_v39  ;;  %v3304_v39 = vld [vmem:[%s3939_s23 + $0x294] sm:$0xf0] }
 0x1bb   : > { %v1780_v47 = vpop.f32.mrf.mxu2  ;;  %v1445_v52 = vpop.f32.mrf.mxu0 }
 0x1bc   : > { %v1949_v48 = vpop.f32.mrf.mxu3  ;;  %v1781_v51 = vadd.f32 %v1780_v47, %v1612_v46  ;;  %v1614_v53 = vpop.f32.mrf.mxu1  ;;  %v2869_v46 = vor.u32 %v3301_v36, %v2866_v37  ;;  %v3310_v36 = vld [vmem:[%s3939_s23 + $0x2cc] sm:$0xf]  ;;  %v2906_v37 = vld [vmem:[%s3939_s23 + $0x2d8] sm:$0xf0] }
 0x1bd   : > { %v1615_v59 = vadd.f32 %v1614_v53, %v1445_v52  ;;  %v385_v52 = vld [vmem:[%s3952_s11 + $0xb8] sm:$0xff] }
 0x1be   : > { %v1950_v57 = vadd.f32 %v1949_v48, %v1781_v51  ;;  %1484 = vmatmul.bf16.gmra.mxu0 %v2833_v49  ;;  %v2877_v51 = vor.u32 %v3302_v40, %v2874_v41 }
 0x1bf   : > { %1653 = vmatmul.bf16.gmra.mxu1 %v2837_v50  ;;  %v2873_v50 = vor.u32 %v3304_v39, %v2872_v38 }
 0x1c0   : > { %v2081_v58 = vadd.f32 %v1950_v57, %v381_v56  ;;  %1822 = vmatmul.bf16.gmra.mxu2 %v2841_v54 }
 0x1c1   : > { %1991 = vmatmul.bf16.gmra.mxu3 %v2845_v55 }
 0x1c2   : > { %2145 = vst [vmem:[%s3952_s11 + $0x98] sm:$0xff] %v2081_v58 }
 0x1c3   : > { %v1783_v60 = vpop.f32.mrf.mxu2  ;;  %v1447_v63 = vpop.f32.mrf.mxu0 }
 0x1c4   : > { %v1952_v61 = vpop.f32.mrf.mxu3  ;;  %v1784_v62 = vadd.f32 %v1783_v60, %v1615_v59  ;;  %v1616_v0 = vpop.f32.mrf.mxu1 }
 0x1c5   : > { %v1617_v12 = vadd.f32 %v1616_v0, %v1447_v63  ;;  %v2880_v63 = vld [vmem:[%s3939_s23 + $0x2a0] sm:$0xf]  ;;  %v3307_v0 = vld [vmem:[%s3939_s23 + $0x2ac] sm:$0xf0] }
 0x1c6   : > { %v1953_v2 = vadd.f32 %v1952_v61, %v1784_v62  ;;  %v386_v61 = vld [vmem:[%s3952_s11 + $0xc0] sm:$0xff]  ;;  %v2881_v11 = vor.u32 %v3307_v0, %v2880_v63  ;;  %v2914_v63 = vld [vmem:[%s3939_s23 + $0x2f0] sm:$0xf0]  ;;  %v2920_v0 = vld [vmem:[%s3939_s23 + $0x2e8] sm:$0xf] }
 0x1c8   : > { %v2082_v5 = vadd.f32 %v1953_v2, %v382_v1  ;;  %v3305_v2 = vld [vmem:[%s3939_s23 + $0x2a4] sm:$0xf] }
 0x1ca   : > { %2146 = vst [vmem:[%s3952_s11 + $0xa0] sm:$0xff] %v2082_v5  ;;  %v3308_v5 = vld [vmem:[%s3939_s23 + $0x2b4] sm:$0xf0] }
 0x1cb   : > { %v1785_v13 = vpop.f32.mrf.mxu2  ;;  %v1450_v18 = vpop.f32.mrf.mxu0 }
 0x1cc   : > { %v1954_v14 = vpop.f32.mrf.mxu3  ;;  %v1786_v17 = vadd.f32 %v1785_v13, %v1617_v12  ;;  %v1619_v19 = vpop.f32.mrf.mxu1  ;;  %v2885_v12 = vor.u32 %v3305_v2, %v2882_v3  ;;  %v3314_v2 = vld [vmem:[%s3939_s23 + $0x2ec] sm:$0xf]  ;;  %v2922_v3 = vld [vmem:[%s3939_s23 + $0x2f8] sm:$0xf0] }
 0x1cd   : > { %v1620_v25 = vadd.f32 %v1619_v19, %v1450_v18  ;;  %v387_v18 = vld [vmem:[%s3952_s11 + $0xc8] sm:$0xff] }
 0x1ce   : > { %v1955_v23 = vadd.f32 %v1954_v14, %v1786_v17  ;;  %1489 = vmatmul.bf16.gmra.mxu0 %v2849_v15  ;;  %v2893_v17 = vor.u32 %v3306_v6, %v2890_v7 }
 0x1cf   : > { %1658 = vmatmul.bf16.gmra.mxu1 %v2853_v16  ;;  %v2889_v16 = vor.u32 %v3308_v5, %v2888_v4 }
 0x1d0   : > { %v2083_v24 = vadd.f32 %v1955_v23, %v383_v22  ;;  %1827 = vmatmul.bf16.gmra.mxu2 %v2857_v20 }
 0x1d1   : > { %1996 = vmatmul.bf16.gmra.mxu3 %v2861_v21 }
 0x1d2   : > { %2147 = vst [vmem:[%s3952_s11 + $0xa8] sm:$0xff] %v2083_v24 }
 0x1d3   : > { %v1788_v26 = vpop.f32.mrf.mxu2  ;;  %v1452_v29 = vpop.f32.mrf.mxu0 }
 0x1d4   : > { %v1957_v27 = vpop.f32.mrf.mxu3  ;;  %v1789_v28 = vadd.f32 %v1788_v26, %v1620_v25  ;;  %v1621_v30 = vpop.f32.mrf.mxu1 }
 0x1d5   : > { %v1622_v42 = vadd.f32 %v1621_v30, %v1452_v29  ;;  %v2896_v29 = vld [vmem:[%s3939_s23 + $0x2c0] sm:$0xf]  ;;  %v3311_v30 = vld [vmem:[%s3939_s23 + $0x2cc] sm:$0xf0] }
 0x1d6   : > { %v1958_v32 = vadd.f32 %v1957_v27, %v1789_v28  ;;  %v388_v27 = vld [vmem:[%s3952_s11 + $0xd0] sm:$0xff]  ;;  %v2897_v41 = vor.u32 %v3311_v30, %v2896_v29  ;;  %v2936_v30 = vld [vmem:[%s3939_s23 + $0x308] sm:$0xf] }
 0x1d7   : > { %v2930_v29 = vld [vmem:[%s3939_s23 + $0x310] sm:$0xf0] }
 0x1d8   : > { %v2084_v35 = vadd.f32 %v1958_v32, %v384_v31  ;;  %v3309_v32 = vld [vmem:[%s3939_s23 + $0x2c4] sm:$0xf] }
 0x1da   : > { %2148 = vst [vmem:[%s3952_s11 + $0xb0] sm:$0xff] %v2084_v35  ;;  %v3312_v35 = vld [vmem:[%s3939_s23 + $0x2d4] sm:$0xf0] }
 0x1db   : > { %v1790_v43 = vpop.f32.mrf.mxu2  ;;  %v1455_v48 = vpop.f32.mrf.mxu0 }
 0x1dc   : > { %v1959_v44 = vpop.f32.mrf.mxu3  ;;  %v1791_v47 = vadd.f32 %v1790_v43, %v1622_v42  ;;  %v1624_v49 = vpop.f32.mrf.mxu1  ;;  %v2901_v42 = vor.u32 %v3309_v32, %v2898_v33  ;;  %v3318_v32 = vld [vmem:[%s3939_s23 + $0x30c] sm:$0xf]  ;;  %v2938_v33 = vld [vmem:[%s3939_s23 + $0x318] sm:$0xf0] }
 0x1dd   : > { %v1625_v55 = vadd.f32 %v1624_v49, %v1455_v48  ;;  %v389_v48 = vld [vmem:[%s3952_s11 + $0xd8] sm:$0xff] }
 0x1de   : > { %v1960_v53 = vadd.f32 %v1959_v44, %v1791_v47  ;;  %1494 = vmatmul.bf16.gmra.mxu0 %v2865_v45  ;;  %v2909_v47 = vor.u32 %v3310_v36, %v2906_v37 }
 0x1df   : > { %1663 = vmatmul.bf16.gmra.mxu1 %v2869_v46  ;;  %v2905_v46 = vor.u32 %v3312_v35, %v2904_v34 }
 0x1e0   : > { %v2085_v54 = vadd.f32 %v1960_v53, %v385_v52  ;;  %1832 = vmatmul.bf16.gmra.mxu2 %v2873_v50 }
 0x1e1   : > { %2001 = vmatmul.bf16.gmra.mxu3 %v2877_v51 }
 0x1e2   : > { %2149 = vst [vmem:[%s3952_s11 + $0xb8] sm:$0xff] %v2085_v54 }
 0x1e3   : > { %v1793_v56 = vpop.f32.mrf.mxu2  ;;  %v1457_v59 = vpop.f32.mrf.mxu0 }
 0x1e4   : > { %v1962_v57 = vpop.f32.mrf.mxu3  ;;  %v1794_v58 = vadd.f32 %v1793_v56, %v1625_v55  ;;  %v1626_v60 = vpop.f32.mrf.mxu1 }
 0x1e5   : > { %v1627_v8 = vadd.f32 %v1626_v60, %v1457_v59  ;;  %v2912_v59 = vld [vmem:[%s3939_s23 + $0x2e0] sm:$0xf]  ;;  %v3315_v60 = vld [vmem:[%s3939_s23 + $0x2ec] sm:$0xf0] }
 0x1e6   : > { %v1963_v62 = vadd.f32 %v1962_v57, %v1794_v58  ;;  %v390_v57 = vld [vmem:[%s3952_s11 + $0xe0] sm:$0xff]  ;;  %v2913_v7 = vor.u32 %v3315_v60, %v2912_v59  ;;  %v2946_v59 = vld [vmem:[%s3939_s23 + $0x330] sm:$0xf0]  ;;  %v2952_v60 = vld [vmem:[%s3939_s23 + $0x328] sm:$0xf] }
 0x1e8   : > { %v2086_v1 = vadd.f32 %v1963_v62, %v386_v61  ;;  %v3313_v62 = vld [vmem:[%s3939_s23 + $0x2e4] sm:$0xf] }
 0x1ea   : > { %2150 = vst [vmem:[%s3952_s11 + $0xc0] sm:$0xff] %v2086_v1  ;;  %v3316_v1 = vld [vmem:[%s3939_s23 + $0x2f4] sm:$0xf0] }
 0x1eb   : > { %v1795_v9 = vpop.f32.mrf.mxu2  ;;  %v1460_v14 = vpop.f32.mrf.mxu0 }
 0x1ec   : > { %v1964_v10 = vpop.f32.mrf.mxu3  ;;  %v1796_v13 = vadd.f32 %v1795_v9, %v1627_v8  ;;  %v1629_v15 = vpop.f32.mrf.mxu1  ;;  %v2917_v8 = vor.u32 %v3313_v62, %v2914_v63  ;;  %v3322_v62 = vld [vmem:[%s3939_s23 + $0x32c] sm:$0xf]  ;;  %v2954_v63 = vld [vmem:[%s3939_s23 + $0x338] sm:$0xf0] }
 0x1ed   : > { %v1630_v21 = vadd.f32 %v1629_v15, %v1460_v14  ;;  %v391_v14 = vld [vmem:[%s3952_s11 + $0xe8] sm:$0xff] }
 0x1ee   : > { %v1965_v19 = vadd.f32 %v1964_v10, %v1796_v13  ;;  %1499 = vmatmul.bf16.gmra.mxu0 %v2881_v11  ;;  %v2925_v13 = vor.u32 %v3314_v2, %v2922_v3 }
 0x1ef   : > { %1668 = vmatmul.bf16.gmra.mxu1 %v2885_v12  ;;  %v2921_v12 = vor.u32 %v3316_v1, %v2920_v0 }
 0x1f0   : > { %v2087_v20 = vadd.f32 %v1965_v19, %v387_v18  ;;  %1837 = vmatmul.bf16.gmra.mxu2 %v2889_v16 }
 0x1f1   : > { %2006 = vmatmul.bf16.gmra.mxu3 %v2893_v17 }
 0x1f2   : > { %2151 = vst [vmem:[%s3952_s11 + $0xc8] sm:$0xff] %v2087_v20 }
 0x1f3   : > { %v1798_v22 = vpop.f32.mrf.mxu2  ;;  %v1462_v25 = vpop.f32.mrf.mxu0 }
 0x1f4   : > { %v1967_v23 = vpop.f32.mrf.mxu3  ;;  %v1799_v24 = vadd.f32 %v1798_v22, %v1630_v21  ;;  %v1631_v26 = vpop.f32.mrf.mxu1 }
 0x1f5   : > { %v1632_v38 = vadd.f32 %v1631_v26, %v1462_v25  ;;  %v2928_v25 = vld [vmem:[%s3939_s23 + $0x300] sm:$0xf]  ;;  %v3319_v26 = vld [vmem:[%s3939_s23 + $0x30c] sm:$0xf0] }
 0x1f6   : > { %v1968_v28 = vadd.f32 %v1967_v23, %v1799_v24  ;;  %v392_v23 = vld [vmem:[%s3952_s11 + $0xf0] sm:$0xff]  ;;  %v2929_v37 = vor.u32 %v3319_v26, %v2928_v25  ;;  %v2968_v26 = vld [vmem:[%s3939_s23 + $0x348] sm:$0xf] }
 0x1f7   : > { %v2962_v25 = vld [vmem:[%s3939_s23 + $0x350] sm:$0xf0] }
 0x1f8   : > { %v2088_v31 = vadd.f32 %v1968_v28, %v388_v27  ;;  %v3317_v28 = vld [vmem:[%s3939_s23 + $0x304] sm:$0xf] }
 0x1fa   : > { %2152 = vst [vmem:[%s3952_s11 + $0xd0] sm:$0xff] %v2088_v31  ;;  %v3320_v31 = vld [vmem:[%s3939_s23 + $0x314] sm:$0xf0] }
 0x1fb   : > { %v1800_v39 = vpop.f32.mrf.mxu2  ;;  %v1465_v44 = vpop.f32.mrf.mxu0 }
 0x1fc   : > { %v1969_v40 = vpop.f32.mrf.mxu3  ;;  %v1801_v43 = vadd.f32 %v1800_v39, %v1632_v38  ;;  %v1634_v45 = vpop.f32.mrf.mxu1  ;;  %v2933_v38 = vor.u32 %v3317_v28, %v2930_v29  ;;  %v3326_v28 = vld [vmem:[%s3939_s23 + $0x34c] sm:$0xf]  ;;  %v2970_v29 = vld [vmem:[%s3939_s23 + $0x358] sm:$0xf0] }
 0x1fd   : > { %v1635_v51 = vadd.f32 %v1634_v45, %v1465_v44  ;;  %v393_v44 = vld [vmem:[%s3952_s11 + $0xf8] sm:$0xff] }
 0x1fe   : > { %v1970_v49 = vadd.f32 %v1969_v40, %v1801_v43  ;;  %1504 = vmatmul.bf16.gmra.mxu0 %v2897_v41  ;;  %v2941_v43 = vor.u32 %v3318_v32, %v2938_v33 }
 0x1ff   : > { %1673 = vmatmul.bf16.gmra.mxu1 %v2901_v42  ;;  %v2937_v42 = vor.u32 %v3320_v31, %v2936_v30 }
 0x200   : > { %v2089_v50 = vadd.f32 %v1970_v49, %v389_v48  ;;  %1842 = vmatmul.bf16.gmra.mxu2 %v2905_v46 }
 0x201   : > { %2011 = vmatmul.bf16.gmra.mxu3 %v2909_v47 }
 0x202   : > { %2153 = vst [vmem:[%s3952_s11 + $0xd8] sm:$0xff] %v2089_v50 }
 0x203   : > { %v1803_v52 = vpop.f32.mrf.mxu2  ;;  %v1467_v55 = vpop.f32.mrf.mxu0 }
 0x204   : > { %v1972_v53 = vpop.f32.mrf.mxu3  ;;  %v1804_v54 = vadd.f32 %v1803_v52, %v1635_v51  ;;  %v1636_v56 = vpop.f32.mrf.mxu1 }
 0x205   : > { %v1637_v4 = vadd.f32 %v1636_v56, %v1467_v55  ;;  %v2944_v55 = vld [vmem:[%s3939_s23 + $0x320] sm:$0xf]  ;;  %v3323_v56 = vld [vmem:[%s3939_s23 + $0x32c] sm:$0xf0] }
 0x206   : > { %v1973_v58 = vadd.f32 %v1972_v53, %v1804_v54  ;;  %v394_v53 = vld [vmem:[%s3952_s11 + $0x100] sm:$0xff]  ;;  %v2945_v3 = vor.u32 %v3323_v56, %v2944_v55  ;;  %v2978_v55 = vld [vmem:[%s3939_s23 + $0x370] sm:$0xf0]  ;;  %v2984_v56 = vld [vmem:[%s3939_s23 + $0x368] sm:$0xf] }
 0x208   : > { %v2090_v61 = vadd.f32 %v1973_v58, %v390_v57  ;;  %v3321_v58 = vld [vmem:[%s3939_s23 + $0x324] sm:$0xf] }
 0x20a   : > { %2154 = vst [vmem:[%s3952_s11 + $0xe0] sm:$0xff] %v2090_v61  ;;  %v3324_v61 = vld [vmem:[%s3939_s23 + $0x334] sm:$0xf0] }
 0x20b   : > { %v1805_v5 = vpop.f32.mrf.mxu2  ;;  %v1470_v10 = vpop.f32.mrf.mxu0 }
 0x20c   : > { %v1974_v6 = vpop.f32.mrf.mxu3  ;;  %v1806_v9 = vadd.f32 %v1805_v5, %v1637_v4  ;;  %v1639_v11 = vpop.f32.mrf.mxu1  ;;  %v2949_v4 = vor.u32 %v3321_v58, %v2946_v59  ;;  %v3330_v58 = vld [vmem:[%s3939_s23 + $0x36c] sm:$0xf]  ;;  %v2986_v59 = vld [vmem:[%s3939_s23 + $0x378] sm:$0xf0] }
 0x20d   : > { %v1640_v17 = vadd.f32 %v1639_v11, %v1470_v10  ;;  %v395_v10 = vld [vmem:[%s3952_s11 + $0x108] sm:$0xff] }
 0x20e   : > { %v1975_v15 = vadd.f32 %v1974_v6, %v1806_v9  ;;  %1509 = vmatmul.bf16.gmra.mxu0 %v2913_v7  ;;  %v2957_v9 = vor.u32 %v3322_v62, %v2954_v63 }
 0x20f   : > { %1678 = vmatmul.bf16.gmra.mxu1 %v2917_v8  ;;  %v2953_v8 = vor.u32 %v3324_v61, %v2952_v60 }
 0x210   : > { %v2091_v16 = vadd.f32 %v1975_v15, %v391_v14  ;;  %1847 = vmatmul.bf16.gmra.mxu2 %v2921_v12 }
 0x211   : > { %2016 = vmatmul.bf16.gmra.mxu3 %v2925_v13 }
 0x212   : > { %2155 = vst [vmem:[%s3952_s11 + $0xe8] sm:$0xff] %v2091_v16 }
 0x213   : > { %v1808_v18 = vpop.f32.mrf.mxu2  ;;  %v1472_v21 = vpop.f32.mrf.mxu0 }
 0x214   : > { %v1977_v19 = vpop.f32.mrf.mxu3  ;;  %v1809_v20 = vadd.f32 %v1808_v18, %v1640_v17  ;;  %v1641_v22 = vpop.f32.mrf.mxu1 }
 0x215   : > { %v1642_v34 = vadd.f32 %v1641_v22, %v1472_v21  ;;  %v2960_v21 = vld [vmem:[%s3939_s23 + $0x340] sm:$0xf]  ;;  %v3327_v22 = vld [vmem:[%s3939_s23 + $0x34c] sm:$0xf0] }
 0x216   : > { %v1978_v24 = vadd.f32 %v1977_v19, %v1809_v20  ;;  %v396_v19 = vld [vmem:[%s3952_s11 + $0x110] sm:$0xff]  ;;  %v2961_v33 = vor.u32 %v3327_v22, %v2960_v21  ;;  %v3000_v22 = vld [vmem:[%s3939_s23 + $0x388] sm:$0xf] }
 0x217   : > { %v2994_v21 = vld [vmem:[%s3939_s23 + $0x390] sm:$0xf0] }
 0x218   : > { %v2092_v27 = vadd.f32 %v1978_v24, %v392_v23  ;;  %v3325_v24 = vld [vmem:[%s3939_s23 + $0x344] sm:$0xf] }
 0x21a   : > { %2156 = vst [vmem:[%s3952_s11 + $0xf0] sm:$0xff] %v2092_v27  ;;  %v3328_v27 = vld [vmem:[%s3939_s23 + $0x354] sm:$0xf0] }
 0x21b   : > { %v1810_v35 = vpop.f32.mrf.mxu2  ;;  %v1475_v40 = vpop.f32.mrf.mxu0 }
 0x21c   : > { %v1979_v36 = vpop.f32.mrf.mxu3  ;;  %v1811_v39 = vadd.f32 %v1810_v35, %v1642_v34  ;;  %v1644_v41 = vpop.f32.mrf.mxu1  ;;  %v2965_v34 = vor.u32 %v3325_v24, %v2962_v25  ;;  %v3334_v24 = vld [vmem:[%s3939_s23 + $0x38c] sm:$0xf]  ;;  %v3002_v25 = vld [vmem:[%s3939_s23 + $0x398] sm:$0xf0] }
 0x21d   : > { %v1645_v47 = vadd.f32 %v1644_v41, %v1475_v40  ;;  %v397_v40 = vld [vmem:[%s3952_s11 + $0x118] sm:$0xff] }
 0x21e   : > { %v1980_v45 = vadd.f32 %v1979_v36, %v1811_v39  ;;  %1514 = vmatmul.bf16.gmra.mxu0 %v2929_v37  ;;  %v2973_v39 = vor.u32 %v3326_v28, %v2970_v29 }
 0x21f   : > { %1683 = vmatmul.bf16.gmra.mxu1 %v2933_v38  ;;  %v2969_v38 = vor.u32 %v3328_v27, %v2968_v26 }
 0x220   : > { %v2093_v46 = vadd.f32 %v1980_v45, %v393_v44  ;;  %1852 = vmatmul.bf16.gmra.mxu2 %v2937_v42 }
 0x221   : > { %2021 = vmatmul.bf16.gmra.mxu3 %v2941_v43 }
 0x222   : > { %2157 = vst [vmem:[%s3952_s11 + $0xf8] sm:$0xff] %v2093_v46 }
 0x223   : > { %v1813_v48 = vpop.f32.mrf.mxu2  ;;  %v1477_v51 = vpop.f32.mrf.mxu0 }
 0x224   : > { %v1982_v49 = vpop.f32.mrf.mxu3  ;;  %v1814_v50 = vadd.f32 %v1813_v48, %v1645_v47  ;;  %v1646_v52 = vpop.f32.mrf.mxu1 }
 0x225   : > { %v1647_v0 = vadd.f32 %v1646_v52, %v1477_v51  ;;  %v2976_v51 = vld [vmem:[%s3939_s23 + $0x360] sm:$0xf]  ;;  %v3331_v52 = vld [vmem:[%s3939_s23 + $0x36c] sm:$0xf0] }
 0x226   : > { %v1983_v54 = vadd.f32 %v1982_v49, %v1814_v50  ;;  %v398_v49 = vld [vmem:[%s3952_s11 + $0x120] sm:$0xff]  ;;  %v2977_v63 = vor.u32 %v3331_v52, %v2976_v51  ;;  %v3010_v51 = vld [vmem:[%s3939_s23 + $0x3b0] sm:$0xf0]  ;;  %v3016_v52 = vld [vmem:[%s3939_s23 + $0x3a8] sm:$0xf] }
 0x228   : > { %v2094_v57 = vadd.f32 %v1983_v54, %v394_v53  ;;  %v3329_v54 = vld [vmem:[%s3939_s23 + $0x364] sm:$0xf] }
 0x22a   : > { %2158 = vst [vmem:[%s3952_s11 + $0x100] sm:$0xff] %v2094_v57  ;;  %v3332_v57 = vld [vmem:[%s3939_s23 + $0x374] sm:$0xf0] }
 0x22b   : > { %v1815_v1 = vpop.f32.mrf.mxu2  ;;  %v1480_v6 = vpop.f32.mrf.mxu0 }
 0x22c   : > { %v1984_v2 = vpop.f32.mrf.mxu3  ;;  %v1816_v5 = vadd.f32 %v1815_v1, %v1647_v0  ;;  %v1649_v7 = vpop.f32.mrf.mxu1  ;;  %v2981_v0 = vor.u32 %v3329_v54, %v2978_v55  ;;  %v3338_v54 = vld [vmem:[%s3939_s23 + $0x3ac] sm:$0xf]  ;;  %v3018_v55 = vld [vmem:[%s3939_s23 + $0x3b8] sm:$0xf0] }
 0x22d   : > { %v1650_v13 = vadd.f32 %v1649_v7, %v1480_v6  ;;  %v399_v6 = vld [vmem:[%s3952_s11 + $0x128] sm:$0xff] }
 0x22e   : > { %v1985_v11 = vadd.f32 %v1984_v2, %v1816_v5  ;;  %1519 = vmatmul.bf16.gmra.mxu0 %v2945_v3  ;;  %v2989_v5 = vor.u32 %v3330_v58, %v2986_v59 }
 0x22f   : > { %1688 = vmatmul.bf16.gmra.mxu1 %v2949_v4  ;;  %v2985_v4 = vor.u32 %v3332_v57, %v2984_v56 }
 0x230   : > { %v2095_v12 = vadd.f32 %v1985_v11, %v395_v10  ;;  %1857 = vmatmul.bf16.gmra.mxu2 %v2953_v8 }
 0x231   : > { %2026 = vmatmul.bf16.gmra.mxu3 %v2957_v9 }
 0x232   : > { %2159 = vst [vmem:[%s3952_s11 + $0x108] sm:$0xff] %v2095_v12 }
 0x233   : > { %v1818_v14 = vpop.f32.mrf.mxu2  ;;  %v1482_v17 = vpop.f32.mrf.mxu0 }
 0x234   : > { %v1987_v15 = vpop.f32.mrf.mxu3  ;;  %v1819_v16 = vadd.f32 %v1818_v14, %v1650_v13  ;;  %v1651_v18 = vpop.f32.mrf.mxu1 }
 0x235   : > { %v1652_v30 = vadd.f32 %v1651_v18, %v1482_v17  ;;  %v2992_v17 = vld [vmem:[%s3939_s23 + $0x380] sm:$0xf]  ;;  %v3335_v18 = vld [vmem:[%s3939_s23 + $0x38c] sm:$0xf0] }
 0x236   : > { %v1988_v20 = vadd.f32 %v1987_v15, %v1819_v16  ;;  %v400_v15 = vld [vmem:[%s3952_s11 + $0x130] sm:$0xff]  ;;  %v2993_v29 = vor.u32 %v3335_v18, %v2992_v17  ;;  %v3032_v18 = vld [vmem:[%s3939_s23 + $0x3c8] sm:$0xf] }
 0x237   : > { %v3026_v17 = vld [vmem:[%s3939_s23 + $0x3d0] sm:$0xf0] }
 0x238   : > { %v2096_v23 = vadd.f32 %v1988_v20, %v396_v19  ;;  %v3333_v20 = vld [vmem:[%s3939_s23 + $0x384] sm:$0xf] }
 0x23a   : > { %2160 = vst [vmem:[%s3952_s11 + $0x110] sm:$0xff] %v2096_v23  ;;  %v3336_v23 = vld [vmem:[%s3939_s23 + $0x394] sm:$0xf0] }
 0x23b   : > { %v1820_v31 = vpop.f32.mrf.mxu2  ;;  %v1485_v36 = vpop.f32.mrf.mxu0 }
 0x23c   : > { %v1989_v32 = vpop.f32.mrf.mxu3  ;;  %v1821_v35 = vadd.f32 %v1820_v31, %v1652_v30  ;;  %v1654_v37 = vpop.f32.mrf.mxu1  ;;  %v2997_v30 = vor.u32 %v3333_v20, %v2994_v21  ;;  %v3342_v20 = vld [vmem:[%s3939_s23 + $0x3cc] sm:$0xf]  ;;  %v3034_v21 = vld [vmem:[%s3939_s23 + $0x3d8] sm:$0xf0] }
 0x23d   : > { %v1655_v43 = vadd.f32 %v1654_v37, %v1485_v36  ;;  %v401_v36 = vld [vmem:[%s3952_s11 + $0x138] sm:$0xff] }
 0x23e   : > { %v1990_v41 = vadd.f32 %v1989_v32, %v1821_v35  ;;  %1524 = vmatmul.bf16.gmra.mxu0 %v2961_v33  ;;  %v3005_v35 = vor.u32 %v3334_v24, %v3002_v25 }
 0x23f   : > { %1693 = vmatmul.bf16.gmra.mxu1 %v2965_v34  ;;  %v3001_v34 = vor.u32 %v3336_v23, %v3000_v22 }
 0x240   : > { %v2097_v42 = vadd.f32 %v1990_v41, %v397_v40  ;;  %1862 = vmatmul.bf16.gmra.mxu2 %v2969_v38 }
 0x241   : > { %2031 = vmatmul.bf16.gmra.mxu3 %v2973_v39 }
 0x242   : > { %2161 = vst [vmem:[%s3952_s11 + $0x118] sm:$0xff] %v2097_v42 }
 0x243   : > { %v1823_v44 = vpop.f32.mrf.mxu2  ;;  %v1487_v47 = vpop.f32.mrf.mxu0 }
 0x244   : > { %v1992_v45 = vpop.f32.mrf.mxu3  ;;  %v1824_v46 = vadd.f32 %v1823_v44, %v1655_v43  ;;  %v1656_v48 = vpop.f32.mrf.mxu1 }
 0x245   : > { %v1657_v60 = vadd.f32 %v1656_v48, %v1487_v47  ;;  %v3008_v47 = vld [vmem:[%s3939_s23 + $0x3a0] sm:$0xf]  ;;  %v3339_v48 = vld [vmem:[%s3939_s23 + $0x3ac] sm:$0xf0] }
 0x246   : > { %v1993_v50 = vadd.f32 %v1992_v45, %v1824_v46  ;;  %v402_v45 = vld [vmem:[%s3952_s11 + $0x140] sm:$0xff]  ;;  %v3009_v59 = vor.u32 %v3339_v48, %v3008_v47  ;;  %v3042_v47 = vld [vmem:[%s3939_s23 + $0x3f0] sm:$0xf0]  ;;  %v3048_v48 = vld [vmem:[%s3939_s23 + $0x3e8] sm:$0xf] }
 0x248   : > { %v2098_v53 = vadd.f32 %v1993_v50, %v398_v49  ;;  %v3337_v50 = vld [vmem:[%s3939_s23 + $0x3a4] sm:$0xf] }
 0x24a   : > { %2162 = vst [vmem:[%s3952_s11 + $0x120] sm:$0xff] %v2098_v53  ;;  %v3340_v53 = vld [vmem:[%s3939_s23 + $0x3b4] sm:$0xf0] }
 0x24b   : > { %v1825_v61 = vpop.f32.mrf.mxu2  ;;  %v1490_v2 = vpop.f32.mrf.mxu0 }
 0x24c   : > { %v1994_v62 = vpop.f32.mrf.mxu3  ;;  %v1826_v1 = vadd.f32 %v1825_v61, %v1657_v60  ;;  %v1659_v3 = vpop.f32.mrf.mxu1  ;;  %v3013_v60 = vor.u32 %v3337_v50, %v3010_v51  ;;  %v3346_v50 = vld [vmem:[%s3939_s23 + $0x3ec] sm:$0xf]  ;;  %v3050_v51 = vld [vmem:[%s3939_s23 + $0x3f8] sm:$0xf0] }
 0x24d   : > { %v1660_v9 = vadd.f32 %v1659_v3, %v1490_v2  ;;  %v403_v2 = vld [vmem:[%s3952_s11 + $0x148] sm:$0xff] }
 0x24e   : > { %v1995_v7 = vadd.f32 %v1994_v62, %v1826_v1  ;;  %1529 = vmatmul.bf16.gmra.mxu0 %v2977_v63  ;;  %v3021_v1 = vor.u32 %v3338_v54, %v3018_v55 }
 0x24f   : > { %1698 = vmatmul.bf16.gmra.mxu1 %v2981_v0  ;;  %v3017_v0 = vor.u32 %v3340_v53, %v3016_v52 }
 0x250   : > { %v2099_v8 = vadd.f32 %v1995_v7, %v399_v6  ;;  %1867 = vmatmul.bf16.gmra.mxu2 %v2985_v4 }
 0x251   : > { %2036 = vmatmul.bf16.gmra.mxu3 %v2989_v5 }
 0x252   : > { %2163 = vst [vmem:[%s3952_s11 + $0x128] sm:$0xff] %v2099_v8 }
 0x253   : > { %v1828_v10 = vpop.f32.mrf.mxu2  ;;  %v1492_v13 = vpop.f32.mrf.mxu0 }
 0x254   : > { %v1997_v11 = vpop.f32.mrf.mxu3  ;;  %v1829_v12 = vadd.f32 %v1828_v10, %v1660_v9  ;;  %v1661_v14 = vpop.f32.mrf.mxu1 }
 0x255   : > { %v1662_v26 = vadd.f32 %v1661_v14, %v1492_v13  ;;  %v3024_v13 = vld [vmem:[%s3939_s23 + $0x3c0] sm:$0xf]  ;;  %v3343_v14 = vld [vmem:[%s3939_s23 + $0x3cc] sm:$0xf0] }
 0x256   : > { %v1998_v16 = vadd.f32 %v1997_v11, %v1829_v12  ;;  %v404_v11 = vld [vmem:[%s3952_s11 + $0x150] sm:$0xff]  ;;  %v3025_v25 = vor.u32 %v3343_v14, %v3024_v13 }
 0x258   : > { %v2100_v19 = vadd.f32 %v1998_v16, %v400_v15  ;;  %v3341_v16 = vld [vmem:[%s3939_s23 + $0x3c4] sm:$0xf] }
 0x25a   : > { %2164 = vst [vmem:[%s3952_s11 + $0x130] sm:$0xff] %v2100_v19  ;;  %v3344_v19 = vld [vmem:[%s3939_s23 + $0x3d4] sm:$0xf0] }
 0x25b   : > { %v1830_v27 = vpop.f32.mrf.mxu2  ;;  %v1495_v32 = vpop.f32.mrf.mxu0 }
 0x25c   : > { %v1999_v28 = vpop.f32.mrf.mxu3  ;;  %v1831_v31 = vadd.f32 %v1830_v27, %v1662_v26  ;;  %v1664_v33 = vpop.f32.mrf.mxu1  ;;  %v3029_v26 = vor.u32 %v3341_v16, %v3026_v17  ;;  %v409_v16 = vld [vmem:[%s3952_s11 + $0x178] sm:$0xff] }
 0x25d   : > { %v1665_v39 = vadd.f32 %v1664_v33, %v1495_v32  ;;  %v405_v32 = vld [vmem:[%s3952_s11 + $0x158] sm:$0xff] }
 0x25e   : > { %v2000_v37 = vadd.f32 %v1999_v28, %v1831_v31  ;;  %1534 = vmatmul.bf16.gmra.mxu0 %v2993_v29  ;;  %v3037_v31 = vor.u32 %v3342_v20, %v3034_v21 }
 0x25f   : > { %1703 = vmatmul.bf16.gmra.mxu1 %v2997_v30  ;;  %v3033_v30 = vor.u32 %v3344_v19, %v3032_v18 }
 0x260   : > { %v2101_v38 = vadd.f32 %v2000_v37, %v401_v36  ;;  %1872 = vmatmul.bf16.gmra.mxu2 %v3001_v34 }
 0x261   : > { %2041 = vmatmul.bf16.gmra.mxu3 %v3005_v35 }
 0x262   : > { %2165 = vst [vmem:[%s3952_s11 + $0x138] sm:$0xff] %v2101_v38 }
 0x263   : > { %v1833_v40 = vpop.f32.mrf.mxu2  ;;  %v1497_v43 = vpop.f32.mrf.mxu0 }
 0x264   : > { %v2002_v41 = vpop.f32.mrf.mxu3  ;;  %v1834_v42 = vadd.f32 %v1833_v40, %v1665_v39  ;;  %v1666_v44 = vpop.f32.mrf.mxu1 }
 0x265   : > { %v1667_v56 = vadd.f32 %v1666_v44, %v1497_v43  ;;  %v3040_v43 = vld [vmem:[%s3939_s23 + $0x3e0] sm:$0xf]  ;;  %v3347_v44 = vld [vmem:[%s3939_s23 + $0x3ec] sm:$0xf0] }
 0x266   : > { %v2003_v46 = vadd.f32 %v2002_v41, %v1834_v42  ;;  %v406_v41 = vld [vmem:[%s3952_s11 + $0x160] sm:$0xff]  ;;  %v3041_v55 = vor.u32 %v3347_v44, %v3040_v43  ;;  %v412_v43 = vld [vmem:[%s3952_s11 + $0x190] sm:$0xff] }
 0x268   : > { %v2102_v49 = vadd.f32 %v2003_v46, %v402_v45  ;;  %v3345_v46 = vld [vmem:[%s3939_s23 + $0x3e4] sm:$0xf] }
 0x26a   : > { %2166 = vst [vmem:[%s3952_s11 + $0x140] sm:$0xff] %v2102_v49  ;;  %v3348_v49 = vld [vmem:[%s3939_s23 + $0x3f4] sm:$0xf0] }
 0x26b   : > { %v1835_v57 = vpop.f32.mrf.mxu2  ;;  %v1500_v62 = vpop.f32.mrf.mxu0 }
 0x26c   : > { %v2004_v58 = vpop.f32.mrf.mxu3  ;;  %v1836_v61 = vadd.f32 %v1835_v57, %v1667_v56  ;;  %v1669_v63 = vpop.f32.mrf.mxu1  ;;  %v3045_v56 = vor.u32 %v3345_v46, %v3042_v47 }
 0x26d   : > { %v1670_v5 = vadd.f32 %v1669_v63, %v1500_v62  ;;  %v407_v62 = vld [vmem:[%s3952_s11 + $0x168] sm:$0xff] }
 0x26e   : > { %v2005_v3 = vadd.f32 %v2004_v58, %v1836_v61  ;;  %1539 = vmatmul.bf16.gmra.mxu0 %v3009_v59  ;;  %v3053_v61 = vor.u32 %v3346_v50, %v3050_v51 }
 0x26f   : > { %1708 = vmatmul.bf16.gmra.mxu1 %v3013_v60  ;;  %v3049_v60 = vor.u32 %v3348_v49, %v3048_v48 }
 0x270   : > { %v2103_v4 = vadd.f32 %v2005_v3, %v403_v2  ;;  %1877 = vmatmul.bf16.gmra.mxu2 %v3017_v0 }
 0x271   : > { %2046 = vmatmul.bf16.gmra.mxu3 %v3021_v1 }
 0x272   : > { %2167 = vst [vmem:[%s3952_s11 + $0x148] sm:$0xff] %v2103_v4 }
 0x273   : > { %v1838_v6 = vpop.f32.mrf.mxu2  ;;  %v1502_v9 = vpop.f32.mrf.mxu0 }
 0x274   : > { %v2007_v7 = vpop.f32.mrf.mxu3  ;;  %v1839_v8 = vadd.f32 %v1838_v6, %v1670_v5  ;;  %v1671_v10 = vpop.f32.mrf.mxu1 }
 0x275   : > { %v1672_v22 = vadd.f32 %v1671_v10, %v1502_v9 }
 0x276   : > { %v2008_v12 = vadd.f32 %v2007_v7, %v1839_v8  ;;  %v408_v7 = vld [vmem:[%s3952_s11 + $0x170] sm:$0xff] }
 0x278   : > { %v2104_v15 = vadd.f32 %v2008_v12, %v404_v11 }
 0x27a   : > { %2168 = vst [vmem:[%s3952_s11 + $0x150] sm:$0xff] %v2104_v15 }
 0x27b   : > { %v1840_v23 = vpop.f32.mrf.mxu2  ;;  %v1505_v28 = vpop.f32.mrf.mxu0 }
 0x27c   : > { %v2009_v24 = vpop.f32.mrf.mxu3  ;;  %v1841_v27 = vadd.f32 %v1840_v23, %v1672_v22  ;;  %v1674_v29 = vpop.f32.mrf.mxu1 }
 0x27d   : > { %v1675_v35 = vadd.f32 %v1674_v29, %v1505_v28 }
 0x27e   : > { %v2010_v33 = vadd.f32 %v2009_v24, %v1841_v27  ;;  %1544 = vmatmul.bf16.gmra.mxu0 %v3025_v25  ;;  %v410_v25 = vld [vmem:[%s3952_s11 + $0x180] sm:$0xff] }
 0x27f   : > { %1713 = vmatmul.bf16.gmra.mxu1 %v3029_v26 }
 0x280   : > { %v2105_v34 = vadd.f32 %v2010_v33, %v405_v32  ;;  %1882 = vmatmul.bf16.gmra.mxu2 %v3033_v30 }
 0x281   : > { %2051 = vmatmul.bf16.gmra.mxu3 %v3037_v31 }
 0x282   : > { %2169 = vst [vmem:[%s3952_s11 + $0x158] sm:$0xff] %v2105_v34  ;;  %v411_v34 = vld [vmem:[%s3952_s11 + $0x188] sm:$0xff] }
 0x283   : > { %v1843_v36 = vpop.f32.mrf.mxu2  ;;  %v1507_v39 = vpop.f32.mrf.mxu0 }
 0x284   : > { %v2012_v37 = vpop.f32.mrf.mxu3  ;;  %v1844_v38 = vadd.f32 %v1843_v36, %v1675_v35  ;;  %v1676_v40 = vpop.f32.mrf.mxu1 }
 0x285   : > { %v1677_v52 = vadd.f32 %v1676_v40, %v1507_v39 }
 0x286   : > { %v2013_v42 = vadd.f32 %v2012_v37, %v1844_v38 }
 0x288   : > { %v2106_v45 = vadd.f32 %v2013_v42, %v406_v41 }
 0x28a   : > { %2170 = vst [vmem:[%s3952_s11 + $0x160] sm:$0xff] %v2106_v45 }
 0x28b   : > { %v1845_v53 = vpop.f32.mrf.mxu2  ;;  %v1510_v58 = vpop.f32.mrf.mxu0 }
 0x28c   : > { %v2014_v54 = vpop.f32.mrf.mxu3  ;;  %v1846_v57 = vadd.f32 %v1845_v53, %v1677_v52  ;;  %v1679_v59 = vpop.f32.mrf.mxu1  ;;  %v413_v52 = vld [vmem:[%s3952_s11 + $0x198] sm:$0xff] }
 0x28d   : > { %v1680_v1 = vadd.f32 %v1679_v59, %v1510_v58 }
 0x28e   : > { %v2015_v63 = vadd.f32 %v2014_v54, %v1846_v57  ;;  %1549 = vmatmul.bf16.gmra.mxu0 %v3041_v55 }
 0x28f   : > { %1718 = vmatmul.bf16.gmra.mxu1 %v3045_v56 }
 0x290   : > { %v2107_v0 = vadd.f32 %v2015_v63, %v407_v62  ;;  %1887 = vmatmul.bf16.gmra.mxu2 %v3049_v60 }
 0x291   : > { %2056 = vmatmul.bf16.gmra.mxu3 %v3053_v61  ;;  %v414_v61 = vld [vmem:[%s3952_s11 + $0x1a0] sm:$0xff] }
 0x292   : > { %2171 = vst [vmem:[%s3952_s11 + $0x168] sm:$0xff] %v2107_v0 }
 0x293   : > { %v1848_v2 = vpop.f32.mrf.mxu2  ;;  %v1512_v5 = vpop.f32.mrf.mxu0 }
 0x294   : > { %v2017_v3 = vpop.f32.mrf.mxu3  ;;  %v1849_v4 = vadd.f32 %v1848_v2, %v1680_v1  ;;  %v1681_v6 = vpop.f32.mrf.mxu1 }
 0x295   : > { %v1682_v10 = vadd.f32 %v1681_v6, %v1512_v5  ;;  %v415_v6 = vld [vmem:[%s3952_s11 + $0x1a8] sm:$0xff] }
 0x296   : > { %v2018_v8 = vadd.f32 %v2017_v3, %v1849_v4 }
 0x298   : > { %v2108_v9 = vadd.f32 %v2018_v8, %v408_v7 }
 0x29a   : > { %2172 = vst [vmem:[%s3952_s11 + $0x170] sm:$0xff] %v2108_v9 }
 0x29b   : > { %v1850_v11 = vpop.f32.mrf.mxu2  ;;  %v1515_v14 = vpop.f32.mrf.mxu0 }
 0x29c   : > { %v2019_v12 = vpop.f32.mrf.mxu3  ;;  %v1851_v13 = vadd.f32 %v1850_v11, %v1682_v10  ;;  %v1684_v15 = vpop.f32.mrf.mxu1 }
 0x29d   : > { %v1685_v19 = vadd.f32 %v1684_v15, %v1515_v14  ;;  %v416_v15 = vld [vmem:[%s3952_s11 + $0x1b0] sm:$0xff] }
 0x29e   : > { %v2020_v17 = vadd.f32 %v2019_v12, %v1851_v13 }
 0x2a0   : > { %v2109_v18 = vadd.f32 %v2020_v17, %v409_v16 }
 0x2a2   : > { %2173 = vst [vmem:[%s3952_s11 + $0x178] sm:$0xff] %v2109_v18 }
 0x2a3   : > { %v1853_v20 = vpop.f32.mrf.mxu2  ;;  %v1517_v23 = vpop.f32.mrf.mxu0 }
 0x2a4   : > { %v2022_v21 = vpop.f32.mrf.mxu3  ;;  %v1854_v22 = vadd.f32 %v1853_v20, %v1685_v19  ;;  %v1686_v24 = vpop.f32.mrf.mxu1 }
 0x2a5   : > { %v1687_v28 = vadd.f32 %v1686_v24, %v1517_v23  ;;  %v417_v24 = vld [vmem:[%s3952_s11 + $0x1b8] sm:$0xff] }
 0x2a6   : > { %v2023_v26 = vadd.f32 %v2022_v21, %v1854_v22 }
 0x2a8   : > { %v2110_v27 = vadd.f32 %v2023_v26, %v410_v25 }
 0x2aa   : > { %2174 = vst [vmem:[%s3952_s11 + $0x180] sm:$0xff] %v2110_v27 }
 0x2ab   : > { %v1855_v29 = vpop.f32.mrf.mxu2  ;;  %v1520_v32 = vpop.f32.mrf.mxu0 }
 0x2ac   : > { %v2024_v30 = vpop.f32.mrf.mxu3  ;;  %v1856_v31 = vadd.f32 %v1855_v29, %v1687_v28  ;;  %v1689_v33 = vpop.f32.mrf.mxu1 }
 0x2ad   : > { %v1690_v37 = vadd.f32 %v1689_v33, %v1520_v32  ;;  %v418_v33 = vld [vmem:[%s3952_s11 + $0x1c0] sm:$0xff] }
 0x2ae   : > { %v2025_v35 = vadd.f32 %v2024_v30, %v1856_v31 }
 0x2b0   : > { %v2111_v36 = vadd.f32 %v2025_v35, %v411_v34 }
 0x2b2   : > { %2175 = vst [vmem:[%s3952_s11 + $0x188] sm:$0xff] %v2111_v36 }
 0x2b3   : > { %v1858_v38 = vpop.f32.mrf.mxu2  ;;  %v1522_v41 = vpop.f32.mrf.mxu0 }
 0x2b4   : > { %v2027_v39 = vpop.f32.mrf.mxu3  ;;  %v1859_v40 = vadd.f32 %v1858_v38, %v1690_v37  ;;  %v1691_v42 = vpop.f32.mrf.mxu1 }
 0x2b5   : > { %v1692_v46 = vadd.f32 %v1691_v42, %v1522_v41  ;;  %v419_v42 = vld [vmem:[%s3952_s11 + $0x1c8] sm:$0xff] }
 0x2b6   : > { %v2028_v44 = vadd.f32 %v2027_v39, %v1859_v40 }
 0x2b8   : > { %v2112_v45 = vadd.f32 %v2028_v44, %v412_v43 }
 0x2ba   : > { %2176 = vst [vmem:[%s3952_s11 + $0x190] sm:$0xff] %v2112_v45 }
 0x2bb   : > { %v1860_v47 = vpop.f32.mrf.mxu2  ;;  %v1525_v50 = vpop.f32.mrf.mxu0 }
 0x2bc   : > { %v2029_v48 = vpop.f32.mrf.mxu3  ;;  %v1861_v49 = vadd.f32 %v1860_v47, %v1692_v46  ;;  %v1694_v51 = vpop.f32.mrf.mxu1 }
 0x2bd   : > { %v1695_v55 = vadd.f32 %v1694_v51, %v1525_v50  ;;  %v420_v51 = vld [vmem:[%s3952_s11 + $0x1d0] sm:$0xff] }
 0x2be   : > { %v2030_v53 = vadd.f32 %v2029_v48, %v1861_v49 }
 0x2c0   : > { %v2113_v54 = vadd.f32 %v2030_v53, %v413_v52 }
 0x2c2   : > { %2177 = vst [vmem:[%s3952_s11 + $0x198] sm:$0xff] %v2113_v54 }
 0x2c3   : > { %v1863_v56 = vpop.f32.mrf.mxu2  ;;  %v1527_v59 = vpop.f32.mrf.mxu0 }
 0x2c4   : > { %v2032_v57 = vpop.f32.mrf.mxu3  ;;  %v1864_v58 = vadd.f32 %v1863_v56, %v1695_v55  ;;  %v1696_v60 = vpop.f32.mrf.mxu1 }
 0x2c5   : > { %v1697_v0 = vadd.f32 %v1696_v60, %v1527_v59  ;;  %v421_v60 = vld [vmem:[%s3952_s11 + $0x1d8] sm:$0xff] }
 0x2c6   : > { %v2033_v62 = vadd.f32 %v2032_v57, %v1864_v58 }
 0x2c8   : > { %v2114_v63 = vadd.f32 %v2033_v62, %v414_v61 }
 0x2ca   : > { %2178 = vst [vmem:[%s3952_s11 + $0x1a0] sm:$0xff] %v2114_v63 }
 0x2cb   : > { %v1865_v1 = vpop.f32.mrf.mxu2  ;;  %v1530_v4 = vpop.f32.mrf.mxu0 }
 0x2cc   : > { %v2034_v2 = vpop.f32.mrf.mxu3  ;;  %v1866_v3 = vadd.f32 %v1865_v1, %v1697_v0  ;;  %v1699_v5 = vpop.f32.mrf.mxu1 }
 0x2cd   : > { %v1700_v9 = vadd.f32 %v1699_v5, %v1530_v4  ;;  %v422_v5 = vld [vmem:[%s3952_s11 + $0x1e0] sm:$0xff] }
 0x2ce   : > { %v2035_v7 = vadd.f32 %v2034_v2, %v1866_v3 }
 0x2d0   : > { %v2115_v8 = vadd.f32 %v2035_v7, %v415_v6 }
 0x2d2   : > { %2179 = vst [vmem:[%s3952_s11 + $0x1a8] sm:$0xff] %v2115_v8 }
 0x2d3   : > { %v1868_v10 = vpop.f32.mrf.mxu2  ;;  %v1532_v13 = vpop.f32.mrf.mxu0 }
 0x2d4   : > { %v2037_v11 = vpop.f32.mrf.mxu3  ;;  %v1869_v12 = vadd.f32 %v1868_v10, %v1700_v9  ;;  %v1701_v14 = vpop.f32.mrf.mxu1 }
 0x2d5   : > { %v1702_v18 = vadd.f32 %v1701_v14, %v1532_v13 }
 0x2d6   : > { %v2038_v16 = vadd.f32 %v2037_v11, %v1869_v12  ;;  %v423_v12 = vld [vmem:[%s3952_s11 + $0x1e8] sm:$0xff] }
 0x2d8   : > { %v2116_v17 = vadd.f32 %v2038_v16, %v416_v15 }
 0x2da   : > { %2180 = vst [vmem:[%s3952_s11 + $0x1b0] sm:$0xff] %v2116_v17 }
 0x2db   : > { %v1870_v19 = vpop.f32.mrf.mxu2  ;;  %v1535_v22 = vpop.f32.mrf.mxu0 }
 0x2dc   : > { %v2039_v20 = vpop.f32.mrf.mxu3  ;;  %v1871_v21 = vadd.f32 %v1870_v19, %v1702_v18  ;;  %v1704_v23 = vpop.f32.mrf.mxu1 }
 0x2dd   : > { %v1705_v27 = vadd.f32 %v1704_v23, %v1535_v22 }
 0x2de   : > { %v2040_v25 = vadd.f32 %v2039_v20, %v1871_v21  ;;  %v424_v21 = vld [vmem:[%s3952_s11 + $0x1f0] sm:$0xff] }
 0x2e0   : > { %v2117_v26 = vadd.f32 %v2040_v25, %v417_v24 }
 0x2e2   : > { %2181 = vst [vmem:[%s3952_s11 + $0x1b8] sm:$0xff] %v2117_v26 }
 0x2e3   : > { %v1873_v28 = vpop.f32.mrf.mxu2  ;;  %v1537_v31 = vpop.f32.mrf.mxu0 }
 0x2e4   : > { %v2042_v29 = vpop.f32.mrf.mxu3  ;;  %v1874_v30 = vadd.f32 %v1873_v28, %v1705_v27  ;;  %v1706_v32 = vpop.f32.mrf.mxu1 }
 0x2e5   : > { %v1707_v36 = vadd.f32 %v1706_v32, %v1537_v31 }
 0x2e6   : > { %v2043_v34 = vadd.f32 %v2042_v29, %v1874_v30  ;;  %v425_v29 = vld [vmem:[%s3952_s11 + $0x1f8] sm:$0xff] }
 0x2e8   : > { %v2118_v35 = vadd.f32 %v2043_v34, %v418_v33 }
 0x2ea   : > { %2182 = vst [vmem:[%s3952_s11 + $0x1c0] sm:$0xff] %v2118_v35 }
 0x2eb   : > { %v1875_v37 = vpop.f32.mrf.mxu2  ;;  %v1540_v40 = vpop.f32.mrf.mxu0 }
 0x2ec   : > { %v2044_v38 = vpop.f32.mrf.mxu3  ;;  %v1876_v39 = vadd.f32 %v1875_v37, %v1707_v36  ;;  %v1709_v41 = vpop.f32.mrf.mxu1 }
 0x2ed   : > { %v1710_v45 = vadd.f32 %v1709_v41, %v1540_v40 }
 0x2ee   : > { %v2045_v43 = vadd.f32 %v2044_v38, %v1876_v39 }
 0x2f0   : > { %v2119_v44 = vadd.f32 %v2045_v43, %v419_v42 }
 0x2f2   : > { %2183 = vst [vmem:[%s3952_s11 + $0x1c8] sm:$0xff] %v2119_v44 }
 0x2f3   : > { %v1878_v46 = vpop.f32.mrf.mxu2  ;;  %v1542_v49 = vpop.f32.mrf.mxu0 }
 0x2f4   : > { %v2047_v47 = vpop.f32.mrf.mxu3  ;;  %v1879_v48 = vadd.f32 %v1878_v46, %v1710_v45  ;;  %v1711_v50 = vpop.f32.mrf.mxu1 }
 0x2f5   : > { %v1712_v54 = vadd.f32 %v1711_v50, %v1542_v49 }
 0x2f6   : > { %v2048_v52 = vadd.f32 %v2047_v47, %v1879_v48 }
 0x2f8   : > { %v2120_v53 = vadd.f32 %v2048_v52, %v420_v51 }
 0x2fa   : > { %2184 = vst [vmem:[%s3952_s11 + $0x1d0] sm:$0xff] %v2120_v53 }
 0x2fb   : > { %v1880_v55 = vpop.f32.mrf.mxu2  ;;  %v1545_v58 = vpop.f32.mrf.mxu0 }
 0x2fc   : > { %v2049_v56 = vpop.f32.mrf.mxu3  ;;  %v1881_v57 = vadd.f32 %v1880_v55, %v1712_v54  ;;  %v1714_v59 = vpop.f32.mrf.mxu1 }
 0x2fd   : > { %v1715_v63 = vadd.f32 %v1714_v59, %v1545_v58 }
 0x2fe   : > { %v2050_v61 = vadd.f32 %v2049_v56, %v1881_v57 }
 0x300   : > { %v2121_v62 = vadd.f32 %v2050_v61, %v421_v60 }
 0x302   : > { %2185 = vst [vmem:[%s3952_s11 + $0x1d8] sm:$0xff] %v2121_v62 }
 0x303   : > { %v1883_v0 = vpop.f32.mrf.mxu2  ;;  %v1547_v3 = vpop.f32.mrf.mxu0 }
 0x304   : > { %v2052_v1 = vpop.f32.mrf.mxu3  ;;  %v1884_v2 = vadd.f32 %v1883_v0, %v1715_v63  ;;  %v1716_v4 = vpop.f32.mrf.mxu1 }
 0x305   : > { %v1717_v8 = vadd.f32 %v1716_v4, %v1547_v3 }
 0x306   : > { %v2053_v6 = vadd.f32 %v2052_v1, %v1884_v2 }
 0x308   : > { %v2122_v7 = vadd.f32 %v2053_v6, %v422_v5 }
 0x30a   : > { %2186 = vst [vmem:[%s3952_s11 + $0x1e0] sm:$0xff] %v2122_v7 }
 0x30b   : > { %v1885_v9 = vpop.f32.mrf.mxu2  ;;  %v1550_v13 = vpop.f32.mrf.mxu0 }
 0x30c   : > { %v2054_v10 = vpop.f32.mrf.mxu3  ;;  %v1886_v11 = vadd.f32 %v1885_v9, %v1717_v8  ;;  %v1719_v14 = vpop.f32.mrf.mxu1 }
 0x30d   : > { %v1720_v17 = vadd.f32 %v1719_v14, %v1550_v13 }
 0x30e   : > { %v2055_v15 = vadd.f32 %v2054_v10, %v1886_v11 }
 0x310   : > { %v2123_v16 = vadd.f32 %v2055_v15, %v423_v12 }
 0x312   : > { %2187 = vst [vmem:[%s3952_s11 + $0x1e8] sm:$0xff] %v2123_v16 }
 0x313   : > { %v1888_v18 = vpop.f32.mrf.mxu2  ;;  %v1552_v23 = vpop.f32.mrf.mxu0 }
 0x314   : > { %v2057_v19 = vpop.f32.mrf.mxu3  ;;  %v1889_v20 = vadd.f32 %v1888_v18, %v1720_v17  ;;  %v1721_v24 = vpop.f32.mrf.mxu1 }
 0x315   : > { %v1722_v26 = vadd.f32 %v1721_v24, %v1552_v23 }
 0x316   : > { %v2058_v22 = vadd.f32 %v2057_v19, %v1889_v20 }
 0x318   : > { %v2124_v25 = vadd.f32 %v2058_v22, %v424_v21 }
 0x31a   : > { %2188 = vst [vmem:[%s3952_s11 + $0x1f0] sm:$0xff] %v2124_v25 }
 0x31b   : > { %v1890_v27 = vpop.f32.mrf.mxu2 }
 0x31c   : > { %v1891_v28 = vadd.f32 %v1890_v27, %v1722_v26  ;;  %v2059_v30 = vpop.f32.mrf.mxu3 }
 0x31e   : > { %v2060_v31 = vadd.f32 %v2059_v30, %v1891_v28  ;;  %2193 = sbr.rel (%p3182_p7) target bundleno = 838 (0x346), region = 40 }
 0x320   : > { %v2125_v32 = vadd.f32 %v2060_v31, %v425_v29 }
 0x322   : > { %2189 = vst [vmem:[%s3952_s11 + $0x1f8] sm:$0xff] %v2125_v32 }
 0x323   : > { %v2194_v33 = vld [vmem:[%s3952_s11] sm:$0xff]  ;;  %v2195_v34 = vld [vmem:[%s3952_s11 + $0x8] sm:$0xff]  ;;  %v2196_v35 = vld [vmem:[%s3952_s11 + $0x10] sm:$0xff] }
 0x324   : > { %v3353_v36 = vpack.c.bf16 %v2195_v34, %v2194_v33  ;;  %v2197_v37 = vld [vmem:[%s3952_s11 + $0x18] sm:$0xff]  ;;  %v2198_v38 = vld [vmem:[%s3952_s11 + $0x20] sm:$0xff]  ;;  %v2199_v39 = vld [vmem:[%s3952_s11 + $0x28] sm:$0xff] }
 0x325   : > { %v3358_v40 = vpack.c.bf16 %v2197_v37, %v2196_v35  ;;  %v3363_v41 = vpack.c.bf16 %v2199_v39, %v2198_v38  ;;  %v2200_v42 = vld [vmem:[%s3952_s11 + $0x30] sm:$0xff]  ;;  %v2201_v43 = vld [vmem:[%s3952_s11 + $0x38] sm:$0xff]  ;;  %v2202_v44 = vld [vmem:[%s3952_s11 + $0x40] sm:$0xff] }
 0x326   : > { %3354 = vst [vmem:[%s3954_s28] sm:$0xff] %v3353_v36   ;;  %v3368_v45 = vpack.c.bf16 %v2201_v43, %v2200_v42  ;;  %v2203_v46 = vld [vmem:[%s3952_s11 + $0x48] sm:$0xff]  ;;  %v2204_v47 = vld [vmem:[%s3952_s11 + $0x50] sm:$0xff]  ;;  %v2205_v48 = vld [vmem:[%s3952_s11 + $0x58] sm:$0xff] }
 0x327   : > { %3510 = vst [vmem:[%s3954_s28 + $0x8] sm:$0xff] %v3358_v40   ;;  %v3373_v49 = vpack.c.bf16 %v2203_v46, %v2202_v44  ;;  %v3378_v50 = vpack.c.bf16 %v2205_v48, %v2204_v47  ;;  %v2206_v51 = vld [vmem:[%s3952_s11 + $0x60] sm:$0xff]  ;;  %v2207_v52 = vld [vmem:[%s3952_s11 + $0x68] sm:$0xff]  ;;  %v2208_v53 = vld [vmem:[%s3952_s11 + $0x70] sm:$0xff] }
 0x328   : > { %3511 = vst [vmem:[%s3954_s28 + $0x10] sm:$0xff] %v3363_v41   ;;  %v3383_v54 = vpack.c.bf16 %v2207_v52, %v2206_v51  ;;  %v2209_v55 = vld [vmem:[%s3952_s11 + $0x78] sm:$0xff]  ;;  %v2210_v56 = vld [vmem:[%s3952_s11 + $0x80] sm:$0xff]  ;;  %v2211_v57 = vld [vmem:[%s3952_s11 + $0x88] sm:$0xff] }
 0x329   : > { %3512 = vst [vmem:[%s3954_s28 + $0x18] sm:$0xff] %v3368_v45   ;;  %v3388_v58 = vpack.c.bf16 %v2209_v55, %v2208_v53  ;;  %v2212_v59 = vld [vmem:[%s3952_s11 + $0x90] sm:$0xff]  ;;  %v2213_v60 = vld [vmem:[%s3952_s11 + $0x98] sm:$0xff]  ;;  %v2214_v61 = vld [vmem:[%s3952_s11 + $0xa0] sm:$0xff]  ;;  %v3393_v62 = vpack.c.bf16 %v2211_v57, %v2210_v56 }
 0x32a   : > { %3513 = vst [vmem:[%s3954_s28 + $0x20] sm:$0xff] %v3373_v49   ;;  %v2215_v63 = vld [vmem:[%s3952_s11 + $0xa8] sm:$0xff]  ;;  %v2216_v0 = vld [vmem:[%s3952_s11 + $0xb0] sm:$0xff]  ;;  %v2217_v1 = vld [vmem:[%s3952_s11 + $0xb8] sm:$0xff]  ;;  %v3398_v2 = vpack.c.bf16 %v2213_v60, %v2212_v59 }
 0x32b   : > { %3514 = vst [vmem:[%s3954_s28 + $0x28] sm:$0xff] %v3378_v50   ;;  %v2218_v3 = vld [vmem:[%s3952_s11 + $0xc0] sm:$0xff]  ;;  %v2219_v4 = vld [vmem:[%s3952_s11 + $0xc8] sm:$0xff]  ;;  %v3403_v5 = vpack.c.bf16 %v2215_v63, %v2214_v61  ;;  %v2220_v6 = vld [vmem:[%s3952_s11 + $0xd0] sm:$0xff]  ;;  %v3408_v8 = vpack.c.bf16 %v2217_v1, %v2216_v0 }
 0x32c   : > { %3515 = vst [vmem:[%s3954_s28 + $0x30] sm:$0xff] %v3383_v54   ;;  %v2221_v7 = vld [vmem:[%s3952_s11 + $0xd8] sm:$0xff]  ;;  %v2222_v9 = vld [vmem:[%s3952_s11 + $0xe0] sm:$0xff]  ;;  %v2223_v10 = vld [vmem:[%s3952_s11 + $0xe8] sm:$0xff]  ;;  %v3413_v11 = vpack.c.bf16 %v2219_v4, %v2218_v3 }
 0x32d   : > { %3516 = vst [vmem:[%s3954_s28 + $0x38] sm:$0xff] %v3388_v58   ;;  %v2224_v12 = vld [vmem:[%s3952_s11 + $0xf0] sm:$0xff]  ;;  %v2225_v13 = vld [vmem:[%s3952_s11 + $0xf8] sm:$0xff]  ;;  %v3418_v14 = vpack.c.bf16 %v2221_v7, %v2220_v6  ;;  %v2226_v15 = vld [vmem:[%s3952_s11 + $0x100] sm:$0xff]  ;;  %v3423_v17 = vpack.c.bf16 %v2223_v10, %v2222_v9 }
 0x32e   : > { %3517 = vst [vmem:[%s3954_s28 + $0x40] sm:$0xff] %v3393_v62   ;;  %v2227_v16 = vld [vmem:[%s3952_s11 + $0x108] sm:$0xff]  ;;  %v2228_v18 = vld [vmem:[%s3952_s11 + $0x110] sm:$0xff]  ;;  %v2229_v19 = vld [vmem:[%s3952_s11 + $0x118] sm:$0xff]  ;;  %v3428_v20 = vpack.c.bf16 %v2225_v13, %v2224_v12 }
 0x32f   : > { %3518 = vst [vmem:[%s3954_s28 + $0x48] sm:$0xff] %v3398_v2   ;;  %v2230_v21 = vld [vmem:[%s3952_s11 + $0x120] sm:$0xff]  ;;  %v2231_v22 = vld [vmem:[%s3952_s11 + $0x128] sm:$0xff]  ;;  %v3433_v23 = vpack.c.bf16 %v2227_v16, %v2226_v15  ;;  %v2232_v24 = vld [vmem:[%s3952_s11 + $0x130] sm:$0xff]  ;;  %v3438_v26 = vpack.c.bf16 %v2229_v19, %v2228_v18 }
 0x330   : > { %3519 = vst [vmem:[%s3954_s28 + $0x50] sm:$0xff] %v3403_v5   ;;  %v2233_v25 = vld [vmem:[%s3952_s11 + $0x138] sm:$0xff]  ;;  %v2234_v27 = vld [vmem:[%s3952_s11 + $0x140] sm:$0xff]  ;;  %v2235_v28 = vld [vmem:[%s3952_s11 + $0x148] sm:$0xff]  ;;  %v3443_v29 = vpack.c.bf16 %v2231_v22, %v2230_v21 }
 0x331   : > { %3520 = vst [vmem:[%s3954_s28 + $0x58] sm:$0xff] %v3408_v8   ;;  %v2236_v30 = vld [vmem:[%s3952_s11 + $0x150] sm:$0xff]  ;;  %v2237_v31 = vld [vmem:[%s3952_s11 + $0x158] sm:$0xff]  ;;  %v3448_v32 = vpack.c.bf16 %v2233_v25, %v2232_v24  ;;  %v2238_v33 = vld [vmem:[%s3952_s11 + $0x160] sm:$0xff]  ;;  %v3453_v35 = vpack.c.bf16 %v2235_v28, %v2234_v27 }
 0x332   : > { %3521 = vst [vmem:[%s3954_s28 + $0x60] sm:$0xff] %v3413_v11   ;;  %v2239_v34 = vld [vmem:[%s3952_s11 + $0x168] sm:$0xff]  ;;  %v2240_v36 = vld [vmem:[%s3952_s11 + $0x170] sm:$0xff]  ;;  %v2241_v37 = vld [vmem:[%s3952_s11 + $0x178] sm:$0xff]  ;;  %v3458_v38 = vpack.c.bf16 %v2237_v31, %v2236_v30 }
 0x333   : > { %3522 = vst [vmem:[%s3954_s28 + $0x68] sm:$0xff] %v3418_v14   ;;  %v2242_v39 = vld [vmem:[%s3952_s11 + $0x180] sm:$0xff]  ;;  %v2243_v40 = vld [vmem:[%s3952_s11 + $0x188] sm:$0xff]  ;;  %v3463_v41 = vpack.c.bf16 %v2239_v34, %v2238_v33  ;;  %v2244_v42 = vld [vmem:[%s3952_s11 + $0x190] sm:$0xff]  ;;  %v3468_v44 = vpack.c.bf16 %v2241_v37, %v2240_v36 }
 0x334   : > { %3523 = vst [vmem:[%s3954_s28 + $0x70] sm:$0xff] %v3423_v17   ;;  %v2245_v43 = vld [vmem:[%s3952_s11 + $0x198] sm:$0xff]  ;;  %v2246_v45 = vld [vmem:[%s3952_s11 + $0x1a0] sm:$0xff]  ;;  %v2247_v46 = vld [vmem:[%s3952_s11 + $0x1a8] sm:$0xff]  ;;  %v3473_v47 = vpack.c.bf16 %v2243_v40, %v2242_v39 }
 0x335   : > { %3524 = vst [vmem:[%s3954_s28 + $0x78] sm:$0xff] %v3428_v20   ;;  %v2248_v48 = vld [vmem:[%s3952_s11 + $0x1b0] sm:$0xff]  ;;  %v2249_v49 = vld [vmem:[%s3952_s11 + $0x1b8] sm:$0xff]  ;;  %v3478_v50 = vpack.c.bf16 %v2245_v43, %v2244_v42  ;;  %v2250_v51 = vld [vmem:[%s3952_s11 + $0x1c0] sm:$0xff]  ;;  %v3483_v53 = vpack.c.bf16 %v2247_v46, %v2246_v45 }
 0x336   : > { %3525 = vst [vmem:[%s3954_s28 + $0x80] sm:$0xff] %v3433_v23   ;;  %v2251_v52 = vld [vmem:[%s3952_s11 + $0x1c8] sm:$0xff]  ;;  %v2252_v54 = vld [vmem:[%s3952_s11 + $0x1d0] sm:$0xff]  ;;  %v2253_v55 = vld [vmem:[%s3952_s11 + $0x1d8] sm:$0xff]  ;;  %v3488_v56 = vpack.c.bf16 %v2249_v49, %v2248_v48 }
 0x337   : > { %3526 = vst [vmem:[%s3954_s28 + $0x88] sm:$0xff] %v3438_v26   ;;  %v2254_v57 = vld [vmem:[%s3952_s11 + $0x1e0] sm:$0xff]  ;;  %v2255_v58 = vld [vmem:[%s3952_s11 + $0x1e8] sm:$0xff]  ;;  %v3493_v59 = vpack.c.bf16 %v2251_v52, %v2250_v51  ;;  %v2256_v60 = vld [vmem:[%s3952_s11 + $0x1f0] sm:$0xff]  ;;  %v3498_v62 = vpack.c.bf16 %v2253_v55, %v2252_v54 }
 0x338   : > { %3527 = vst [vmem:[%s3954_s28 + $0x90] sm:$0xff] %v3443_v29   ;;  %v2257_v61 = vld [vmem:[%s3952_s11 + $0x1f8] sm:$0xff]  ;;  %v3503_v63 = vpack.c.bf16 %v2255_v58, %v2254_v57 }
 0x339   : > { %3528 = vst [vmem:[%s3954_s28 + $0x98] sm:$0xff] %v3448_v32   ;;  %v3508_v0 = vpack.c.bf16 %v2257_v61, %v2256_v60 }
 0x33a   : > { %3529 = vst [vmem:[%s3954_s28 + $0xa0] sm:$0xff] %v3453_v35  }
 0x33b   : > { %3530 = vst [vmem:[%s3954_s28 + $0xa8] sm:$0xff] %v3458_v38  }
 0x33c   : > { %3531 = vst [vmem:[%s3954_s28 + $0xb0] sm:$0xff] %v3463_v41  }
 0x33d   : > { %3532 = vst [vmem:[%s3954_s28 + $0xb8] sm:$0xff] %v3468_v44  }
 0x33e   : > { %3533 = vst [vmem:[%s3954_s28 + $0xc0] sm:$0xff] %v3473_v47  }
 0x33f   : > { %3534 = vst [vmem:[%s3954_s28 + $0xc8] sm:$0xff] %v3478_v50  }
 0x340   : > { %3535 = vst [vmem:[%s3954_s28 + $0xd0] sm:$0xff] %v3483_v53  }
 0x341   : > { %3536 = vst [vmem:[%s3954_s28 + $0xd8] sm:$0xff] %v3488_v56  }
 0x342   : > { %3537 = vst [vmem:[%s3954_s28 + $0xe0] sm:$0xff] %v3493_v59  }
 0x343   : > { %3538 = vst [vmem:[%s3954_s28 + $0xe8] sm:$0xff] %v3498_v62  }
 0x344   : > { %3539 = vst [vmem:[%s3954_s28 + $0xf0] sm:$0xff] %v3503_v63  }
 0x345   : > { %3540 = vst [vmem:[%s3954_s28 + $0xf8] sm:$0xff] %v3508_v0  }
 0x346 PF: > { %s3349_s18 = sshll.u32 %s3789_s19, 8  ;;  %s2408_s23 = sshll.u32 %s3954_s28, 4  ;;  %s2409_s23 = int_to_ptr.vmem [resolvable:$true] %s2408_s23 }
 0x347   : > { %s2407_s15 = scalar_lea.hbm %s4661_s3, %s3349_s18  ;;  %s2392_s17 = scalar_lea.sflag [#allocation4], %s213_s25 }
 0x348   : > { %s2410_s14 = sshll.u32 %s2407_s15, 4  ;;  %s3699_s19 = scalar_lea.hbm %s4661_s3, 512  ;;  %s2411_s14 = int_to_ptr.hbm [resolvable:$true] %s2410_s14 }
 0x349   : > { %s3693_s20 = sshra.s32 %s2411_s14, 4  ;;  %s3694_s20 = int_to_ptr.hbm [resolvable:$true] %s3693_s20 }
 0x34a   : > { %s3695_s8 = scalar_lea.hbm %s3694_s20, 256  ;;  %p3700_p0 = scmp.lt.s32.totalorder %s3694_s20, %s4661_s3 }
 0x34b   : > { %p3696_p10 = scmp.ne.s32.totalorder %s3694_s20, %s3695_s8  ;;  %p3701_p1 = scmp.lt.s32.totalorder %s3699_s19, %s3695_s8 }
 0x34d   : > { %p3697_p11 = pnand %p3696_p10, %p3911_p12  ;;  %p3702_p4 = por %p3701_p1, %p3700_p0 }
 0x34f   : > { %p3698_p13 = pneg %p3697_p11 }
 0x351   : > { %p3703_p5 = pnand %p3702_p4, %p3698_p13 }
 0x353   : > { %3706 = shalt.err (!%p3703_p5)
}
 0x354   : > { %s3807_s25 = smov 64   ;;  %s3808_s28 = smov 4  }
 0x355   : > { %3543 = dma.vmem_to_hbm [thread:$0]  (%p3911_p12), %s2409_s23, 4096, %s2411_s14, %s2392_s17, %s3807_s25, %s3807_s25, %s3808_s28  }
 0x356 PF: > { %p3554_p6 = scmp.ge.s32.totalorder %s3801_s22, 2  ;;  %s2433_s6 = sand.u32 1, %s3761_s12  }
 0x357   : > { %s2434_s30 = scalar_lea.sflag [#allocation4], %s2433_s6 }
 0x358   : > { %p3550_p8 = pnand %p3554_p6, %p3924_p2 }
 0x35a   : > { %p3551_p3 = pneg %p3550_p8 }
 0x35c   : > { %3756 = dma.done.wait (%p3551_p3), %s2434_s30, 4096  }
 0x35d   : > { %3758 = vsyncadd (%p3551_p3), %s2434_s30, 4294963200  ;;  %s20_s22 = sadd.s32 1, %s3801_s22   ;;  %s4678_s27 = sld [smem:[#allocation8_spill]] }
 0x35e   : > { %p17_p9 = scmp.ge.s32.totalorder %s20_s22, 6   ;;  %s4679_s14 = sld [smem:[#allocation13_spill]] }
 0x35f   : > { %s4680_s7 = sld [smem:[#allocation9_spill]]  ;;  %s4685_s12 = smov %s3765_s13 }
 0x360   : > { %s4681_s17 = sld [smem:[#allocation14_spill]]  ;;  %s4687_s15 = smov %s3777_s16 }
 0x361   : > { %s4682_s18 = sld [smem:[#allocation10_spill]]  ;;  %s4689_s19 = smov %s3797_s21 }
 0x362   : > { %s4683_s20 = sld [smem:[#allocation11_spill]] }
 0x363   : > { %s4684_s24 = sld [smem:[#allocation12_spill]]  ;;  %s4686_s13 = smov %s4678_s27 }
 0x365   : > { %s4688_s16 = smov %s4680_s7  ;;  %19 = sbr.rel (!%p17_p9) target bundleno = 9 (0x9), region = 94 }
 0x369   : > { %s4690_s21 = smov %s4684_s24 }
 0x36a   :  { %2440 = vsyncpa [#allocation3], 1 }
 0x36b   :  { %2442 = vsyncpa [#allocation3 + $0x1], 1 }
 0x36c   :  { %2443 = vsyncpa [#allocation4], 1 }
 0x36d   :  { %2445 = vsyncpa [#allocation4 + $0x1], 1 }

// kernel: graph_item2vec_forward.3
= control target key start
LH: loop header
LB: loop body
LE: loop exit
PB: predicated region body
PF: predicated region fallthrough
CT: control target
= control target key end

     0   :  { %9 = vsyncpa [#allocation3], 0  ;;  %s4485_s0 = inlined_call_operand.hbm [shape: bf16[1024,1024], index: 0, kind: input, shape index: {}]   ;;  %s4486_s1 = inlined_call_operand.vmem [shape: bf16[1024,128], index: 1, kind: input, shape index: {}]   ;;  %s4487_s2 = inlined_call_operand.vmem [shape: f32[1024,128], index: 2, kind: output, shape index: {0}]   ;;  %s4488_s3 = inlined_call_operand.vmem [shape: bf16[1024,128], index: 3, kind: output, shape index: {1}]  }
   0x1   :  { %11 = vsyncpa [#allocation3 + $0x1], 0  ;;  %s3716_s12 = smov 0   ;;  %s3718_s13 = smov 0  }
   0x2   :  { %s3720_s14 = smov 0   ;;  %s3722_s15 = smov 0  }
   0x3   :  { %s3724_s16 = smov 0   ;;  %s3726_s17 = smov 0  }
   0x4   :  { %s3728_s18 = smov 0   ;;  %s3730_s19 = smov 0  }
   0x5 LB: > { %s2506_s20 = sadd.s32 4294967295, %s3690_s19   ;;  %s26_s21 = sadd.s32 1, %s3682_s17  ;;  %s3690_s19 = sphi %s3730_s19, %s17_s19   ;;  %s3686_s18 = sphi %s3728_s18, %s4500_s18   ;;  %s3682_s17 = sphi %s3726_s17, %s4499_s17   ;;  %s3678_s16 = sphi %s3724_s16, %s4498_s16   ;;  %s3674_s15 = sphi %s3722_s15, %s4497_s15   ;;  %s3670_s14 = sphi %s3720_s14, %s4496_s14   ;;  %s3666_s13 = sphi %s3718_s13, %s4495_s13   ;;  %s3662_s12 = sphi %s3716_s12, %s4494_s12  }
   0x6   : > { %p27_p0 = scmp.ge.s32.totalorder %s26_s21, 2  ;;  %s29_s22 = sadd.s32 1, %s3686_s18 }
   0x7   : > { %s38_s23 = sadd.s32 1, %s3670_s14  ;;  %p45_p1 = scmp.ne.s32.totalorder %s3670_s14, %s3666_s13 }
   0x8   : > { %s4502_s21 = smov (%p27_p0, %s26_s21), 0  ;;  %s4504_s22 = smov (!%p27_p0, %s29_s22), %s3686_s18 }
   0x9   : > { %s34_s24 = ssub.s32 %s3682_s17, %s4502_s21  ;;  %p46_p2 = scmp.eq.s32.totalorder %s3690_s19, 0 }
   0xa   : > { %p31_p3 = scmp.ge.s32.totalorder %s4504_s22, 2  ;;  %p51_p4 = scmp.ne.s32.totalorder %s3666_s13, %s3662_s12 }
   0xb   : > { %p3767_p5 = por %p46_p2, %p45_p1  ;;  %p52_p6 = scmp.eq.s32.totalorder %s2506_s20, 0 }
   0xc   : > { %s4506_s22 = smov (%p31_p3, %s4504_s22), 0  ;;  %p3525_p8 = scmp.lt.s32.totalorder %s3690_s19, 4 }
   0xd   : > { %4491 = sst [smem:[#allocation5_spill]] %s4506_s22  ;;  %p3773_p7 = por %p52_p6, %p51_p4 }
   0xe   : > { %s33_s27 = ssub.s32 %s3686_s18, %s4506_s22  ;;  %s151_s29 = sand.u32 1, %s3670_s14  }
   0xf   : > { %s35_s28 = sor.u32 %s34_s24, %s33_s27  ;;  %s2510_s30 = sshll.u32 %s151_s29, 10 }
  0x10   : > { %p36_p9 = scmp.eq.s32.totalorder %s35_s28, 0  ;;  %s2512_s4 = sshll.u32 %s3682_s17, 2 }
  0x11   : > { %s3167_s6 = sshll.u32 %s3686_s18, 9  ;;  %s155_s8 = scalar_lea.vmem [#allocation2], %s2510_s30 }
  0x12   : > { %s3783_s5 = scalar_select %p36_p9, %s3670_s14, %s38_s23  }
  0x13   : > { %s161_s7 = sadd.s32 %s3167_s6, %s2512_s4  ;;  %s166_s9 = sshll.u32 %s155_s8, 4  ;;  %s167_s9 = int_to_ptr.vmem [resolvable:$true] %s166_s9 }
  0x14   : > { %s2514_s10 = sshll.u32 %s161_s7, 2  ;;  %p3522_p10 = pnand %p3525_p8, %p3767_p5 }
  0x15   : > { %s163_s20 = scalar_lea.hbm %s4485_s0, %s2514_s10  ;;  %s152_s27 = scalar_lea.sflag [#allocation3], %s151_s29 }
  0x16   : > { %s164_s24 = sshll.u32 %s163_s20, 4  ;;  %s3692_s23 = smov 512   ;;  %s165_s24 = int_to_ptr.hbm [resolvable:$true] %s164_s24 }
  0x17   : > { %s3693_s28 = smov 256   ;;  %s3694_s22 = smov 16  }
  0x18   : > { %3524 = dma.hbm_to_vmem [thread:$0]  (!%p3522_p10), %s165_s24, 16384, %s167_s9, %s152_s27, %s3692_s23, %s3693_s28, %s3694_s22  }
  0x19   : > { %p2515_p11 = scmp.ge.s32.totalorder %s3690_s19, 1  ;;  %p174_p12 = scmp.lt.s32.totalorder %s3690_s19, 5 }
  0x1b   : > { %p175_p13 = pnand %p2515_p11, %p174_p12 }
  0x1c   : > { %s180_s30 = sand.u32 (!%p175_p13), 1, %s3666_s13  }
  0x1d   : > { %178 = sbr.rel (%p175_p13) target bundleno = 823 (0x337), region = 28  ;;  %s2516_s4 = sshll.u32 (!%p175_p13), %s180_s30, 10 }
  0x1e   : > { %s181_s6 = scalar_lea.sflag (!%p175_p13), [#allocation3], %s180_s30  ;;  %s3796_s7 = scalar_lea.vmem (!%p175_p13), [#allocation2], %s2516_s4 }
  0x22   : > { %3657 = dma.done.wait (%p3773_p7), %s181_s6, 16384  }
  0x23   : > { %3659 = vsyncadd (%p3773_p7), %s181_s6, 4294950912  ;;  %s2517_s25 = sshll.u32 %s3678_s16, 6  ;;  %p2521_p1 = scmp.ne.s32.totalorder %s3674_s15, 0 }
  0x24   : > { %p216_p0 = scmp.lt.s32.totalorder %s2517_s25, 127 }
  0x25   : > { %230 = sbr.rel (%p2521_p1) target bundleno = 107 (0x6b), region = 36 }
  0x26   : > { %s4508_s25 = smov (!%p216_p0, %s2517_s25), 127 }
  0x27   : > { %s2518_s22 = sshll.u32 %s4508_s25, 3  ;;  %s2520_s29 = sshll.u32 %s4508_s25, 2 }
  0x28   : > { %s3806_s10 = scalar_lea.vmem %s4487_s2, %s2518_s22  ;;  %s3811_s20 = scalar_lea.vmem %s4488_s3, %s2520_s29 }
  0x2a   : > { %v3695_v0 = vmov 0.0  }
  0x2b   : > { %231 = vst [vmem:[%s3806_s10] sm:$0xff] %v3695_v0 }
  0x2c   : > { %232 = vst [vmem:[%s3806_s10 + $0x8] sm:$0xff] %v3695_v0 }
  0x2d   : > { %233 = vst [vmem:[%s3806_s10 + $0x10] sm:$0xff] %v3695_v0 }
  0x2e   : > { %234 = vst [vmem:[%s3806_s10 + $0x18] sm:$0xff] %v3695_v0 }
  0x2f   : > { %235 = vst [vmem:[%s3806_s10 + $0x20] sm:$0xff] %v3695_v0 }
  0x30   : > { %236 = vst [vmem:[%s3806_s10 + $0x28] sm:$0xff] %v3695_v0 }
  0x31   : > { %237 = vst [vmem:[%s3806_s10 + $0x30] sm:$0xff] %v3695_v0 }
  0x32   : > { %238 = vst [vmem:[%s3806_s10 + $0x38] sm:$0xff] %v3695_v0 }
  0x33   : > { %239 = vst [vmem:[%s3806_s10 + $0x40] sm:$0xff] %v3695_v0 }
  0x34   : > { %240 = vst [vmem:[%s3806_s10 + $0x48] sm:$0xff] %v3695_v0 }
  0x35   : > { %241 = vst [vmem:[%s3806_s10 + $0x50] sm:$0xff] %v3695_v0 }
  0x36   : > { %242 = vst [vmem:[%s3806_s10 + $0x58] sm:$0xff] %v3695_v0 }
  0x37   : > { %243 = vst [vmem:[%s3806_s10 + $0x60] sm:$0xff] %v3695_v0 }
  0x38   : > { %244 = vst [vmem:[%s3806_s10 + $0x68] sm:$0xff] %v3695_v0 }
  0x39   : > { %245 = vst [vmem:[%s3806_s10 + $0x70] sm:$0xff] %v3695_v0 }
  0x3a   : > { %246 = vst [vmem:[%s3806_s10 + $0x78] sm:$0xff] %v3695_v0 }
  0x3b   : > { %247 = vst [vmem:[%s3806_s10 + $0x80] sm:$0xff] %v3695_v0 }
  0x3c   : > { %248 = vst [vmem:[%s3806_s10 + $0x88] sm:$0xff] %v3695_v0 }
  0x3d   : > { %249 = vst [vmem:[%s3806_s10 + $0x90] sm:$0xff] %v3695_v0 }
  0x3e   : > { %250 = vst [vmem:[%s3806_s10 + $0x98] sm:$0xff] %v3695_v0 }
  0x3f   : > { %251 = vst [vmem:[%s3806_s10 + $0xa0] sm:$0xff] %v3695_v0 }
  0x40   : > { %252 = vst [vmem:[%s3806_s10 + $0xa8] sm:$0xff] %v3695_v0 }
  0x41   : > { %253 = vst [vmem:[%s3806_s10 + $0xb0] sm:$0xff] %v3695_v0 }
  0x42   : > { %254 = vst [vmem:[%s3806_s10 + $0xb8] sm:$0xff] %v3695_v0 }
  0x43   : > { %255 = vst [vmem:[%s3806_s10 + $0xc0] sm:$0xff] %v3695_v0 }
  0x44   : > { %256 = vst [vmem:[%s3806_s10 + $0xc8] sm:$0xff] %v3695_v0 }
  0x45   : > { %257 = vst [vmem:[%s3806_s10 + $0xd0] sm:$0xff] %v3695_v0 }
  0x46   : > { %258 = vst [vmem:[%s3806_s10 + $0xd8] sm:$0xff] %v3695_v0 }
  0x47   : > { %259 = vst [vmem:[%s3806_s10 + $0xe0] sm:$0xff] %v3695_v0 }
  0x48   : > { %260 = vst [vmem:[%s3806_s10 + $0xe8] sm:$0xff] %v3695_v0 }
  0x49   : > { %261 = vst [vmem:[%s3806_s10 + $0xf0] sm:$0xff] %v3695_v0 }
  0x4a   : > { %262 = vst [vmem:[%s3806_s10 + $0xf8] sm:$0xff] %v3695_v0 }
  0x4b   : > { %263 = vst [vmem:[%s3806_s10 + $0x100] sm:$0xff] %v3695_v0 }
  0x4c   : > { %264 = vst [vmem:[%s3806_s10 + $0x108] sm:$0xff] %v3695_v0 }
  0x4d   : > { %265 = vst [vmem:[%s3806_s10 + $0x110] sm:$0xff] %v3695_v0 }
  0x4e   : > { %266 = vst [vmem:[%s3806_s10 + $0x118] sm:$0xff] %v3695_v0 }
  0x4f   : > { %267 = vst [vmem:[%s3806_s10 + $0x120] sm:$0xff] %v3695_v0 }
  0x50   : > { %268 = vst [vmem:[%s3806_s10 + $0x128] sm:$0xff] %v3695_v0 }
  0x51   : > { %269 = vst [vmem:[%s3806_s10 + $0x130] sm:$0xff] %v3695_v0 }
  0x52   : > { %270 = vst [vmem:[%s3806_s10 + $0x138] sm:$0xff] %v3695_v0 }
  0x53   : > { %271 = vst [vmem:[%s3806_s10 + $0x140] sm:$0xff] %v3695_v0 }
  0x54   : > { %272 = vst [vmem:[%s3806_s10 + $0x148] sm:$0xff] %v3695_v0 }
  0x55   : > { %273 = vst [vmem:[%s3806_s10 + $0x150] sm:$0xff] %v3695_v0 }
  0x56   : > { %274 = vst [vmem:[%s3806_s10 + $0x158] sm:$0xff] %v3695_v0 }
  0x57   : > { %275 = vst [vmem:[%s3806_s10 + $0x160] sm:$0xff] %v3695_v0 }
  0x58   : > { %276 = vst [vmem:[%s3806_s10 + $0x168] sm:$0xff] %v3695_v0 }
  0x59   : > { %277 = vst [vmem:[%s3806_s10 + $0x170] sm:$0xff] %v3695_v0 }
  0x5a   : > { %278 = vst [vmem:[%s3806_s10 + $0x178] sm:$0xff] %v3695_v0 }
  0x5b   : > { %279 = vst [vmem:[%s3806_s10 + $0x180] sm:$0xff] %v3695_v0 }
  0x5c   : > { %280 = vst [vmem:[%s3806_s10 + $0x188] sm:$0xff] %v3695_v0 }
  0x5d   : > { %281 = vst [vmem:[%s3806_s10 + $0x190] sm:$0xff] %v3695_v0 }
  0x5e   : > { %282 = vst [vmem:[%s3806_s10 + $0x198] sm:$0xff] %v3695_v0 }
  0x5f   : > { %283 = vst [vmem:[%s3806_s10 + $0x1a0] sm:$0xff] %v3695_v0 }
  0x60   : > { %284 = vst [vmem:[%s3806_s10 + $0x1a8] sm:$0xff] %v3695_v0 }
  0x61   : > { %285 = vst [vmem:[%s3806_s10 + $0x1b0] sm:$0xff] %v3695_v0 }
  0x62   : > { %286 = vst [vmem:[%s3806_s10 + $0x1b8] sm:$0xff] %v3695_v0 }
  0x63   : > { %287 = vst [vmem:[%s3806_s10 + $0x1c0] sm:$0xff] %v3695_v0 }
  0x64   : > { %288 = vst [vmem:[%s3806_s10 + $0x1c8] sm:$0xff] %v3695_v0 }
  0x65   : > { %289 = vst [vmem:[%s3806_s10 + $0x1d0] sm:$0xff] %v3695_v0 }
  0x66   : > { %290 = vst [vmem:[%s3806_s10 + $0x1d8] sm:$0xff] %v3695_v0 }
  0x67   : > { %291 = vst [vmem:[%s3806_s10 + $0x1e0] sm:$0xff] %v3695_v0 }
  0x68   : > { %292 = vst [vmem:[%s3806_s10 + $0x1e8] sm:$0xff] %v3695_v0 }
  0x69   : > { %293 = vst [vmem:[%s3806_s10 + $0x1f0] sm:$0xff] %v3695_v0 }
  0x6a   : > { %294 = vst [vmem:[%s3806_s10 + $0x1f8] sm:$0xff] %v3695_v0 }
  0x6b PF: > { %s2522_s16 = sshll.u32 %s3674_s15, 9  ;;  %v2526_v29 = vld [vmem:[%s3796_s7] sm:$0xf]  ;;  %v3202_v30 = vld [vmem:[%s3796_s7 + $0xc] sm:$0xf0]  ;;  %p3164_p2 = scmp.ne.s32.totalorder %s3674_s15, 1 }
  0x6c   : > { %s296_s26 = sshra.s32 %s2522_s16, 3  ;;  %v3200_v31 = vld [vmem:[%s3796_s7 + $0x4] sm:$0xf]  ;;  %v2528_v36 = vld [vmem:[%s3796_s7 + $0x10] sm:$0xf0]  ;;  %v2527_v41 = vor.u32 %v3202_v30, %v2526_v29 }
  0x6d   : > { %s2523_s24 = sshll.u32 %s296_s26, 2  ;;  %v2534_v37 = vld [vmem:[%s3796_s7 + $0x8] sm:$0xf]  ;;  %v3203_v38 = vld [vmem:[%s3796_s7 + $0x14] sm:$0xf0]  ;;  %v2531_v42 = vor.u32 %v3200_v31, %v2528_v36 }
  0x6e   : > { %s3946_s28 = scalar_lea.vmem %s4486_s1, %s2523_s24  ;;  %v3201_v39 = vld [vmem:[%s3796_s7 + $0xc] sm:$0xf]  ;;  %v2536_v40 = vld [vmem:[%s3796_s7 + $0x18] sm:$0xf0]  ;;  %v2535_v43 = vor.u32 %v3203_v38, %v2534_v37  ;;  %v2542_v45 = vld [vmem:[%s3796_s7 + $0x20] sm:$0xf] }
  0x6f   : > { %v3175_v1 = vld [vmem:[%s3946_s28 + $0x38] sm:$0xff]  ;;  %v3174_v5 = vld [vmem:[%s3946_s28 + $0x30] sm:$0xff]  ;;  %v3173_v9 = vld [vmem:[%s3946_s28 + $0x28] sm:$0xff]  ;;  %v2539_v44 = vor.u32 %v3201_v39, %v2536_v40 }
  0x70   : > { %v3183_v2 = vld [vmem:[%s3946_s28 + $0x78] sm:$0xff]  ;;  %1388 = vmatpush.bf16.msra.mxu0 %v3175_v1  ;;  %v3182_v6 = vld [vmem:[%s3946_s28 + $0x70] sm:$0xff]  ;;  %v3181_v10 = vld [vmem:[%s3946_s28 + $0x68] sm:$0xff] }
  0x71   : > { %v3191_v3 = vld [vmem:[%s3946_s28 + $0xb8] sm:$0xff]  ;;  %1557 = vmatpush.bf16.msra.mxu1 %v3183_v2  ;;  %v3190_v7 = vld [vmem:[%s3946_s28 + $0xb0] sm:$0xff]  ;;  %v3189_v11 = vld [vmem:[%s3946_s28 + $0xa8] sm:$0xff] }
  0x72   : > { %v3199_v4 = vld [vmem:[%s3946_s28 + $0xf8] sm:$0xff]  ;;  %1726 = vmatpush.bf16.msra.mxu2 %v3191_v3  ;;  %v3198_v8 = vld [vmem:[%s3946_s28 + $0xf0] sm:$0xff]  ;;  %v3197_v12 = vld [vmem:[%s3946_s28 + $0xe8] sm:$0xff] }
  0x73   : > { %1895 = vmatpush.bf16.msra.mxu3 %v3199_v4  ;;  %v3172_v13 = vld [vmem:[%s3946_s28 + $0x20] sm:$0xff]  ;;  %v3171_v17 = vld [vmem:[%s3946_s28 + $0x18] sm:$0xff]  ;;  %v3170_v21 = vld [vmem:[%s3946_s28 + $0x10] sm:$0xff] }
  0x74   : > { %1389 = vmatpush.bf16.msra.mxu0 %v3174_v5  ;;  %v3180_v14 = vld [vmem:[%s3946_s28 + $0x60] sm:$0xff]  ;;  %v3179_v18 = vld [vmem:[%s3946_s28 + $0x58] sm:$0xff]  ;;  %v3178_v22 = vld [vmem:[%s3946_s28 + $0x50] sm:$0xff] }
  0x75   : > { %1558 = vmatpush.bf16.msra.mxu1 %v3182_v6  ;;  %v3188_v15 = vld [vmem:[%s3946_s28 + $0xa0] sm:$0xff]  ;;  %v3187_v19 = vld [vmem:[%s3946_s28 + $0x98] sm:$0xff]  ;;  %v3186_v23 = vld [vmem:[%s3946_s28 + $0x90] sm:$0xff] }
  0x76   : > { %1727 = vmatpush.bf16.msra.mxu2 %v3190_v7  ;;  %v3196_v16 = vld [vmem:[%s3946_s28 + $0xe0] sm:$0xff]  ;;  %v3195_v20 = vld [vmem:[%s3946_s28 + $0xd8] sm:$0xff]  ;;  %v3194_v24 = vld [vmem:[%s3946_s28 + $0xd0] sm:$0xff] }
  0x77   : > { %1896 = vmatpush.bf16.msra.mxu3 %v3198_v8  ;;  %v3169_v25 = vld [vmem:[%s3946_s28 + $0x8] sm:$0xff]  ;;  %v3168_v32 = vld [vmem:[%s3946_s28] sm:$0xff]  ;;  %v3206_v46 = vld [vmem:[%s3796_s7 + $0x2c] sm:$0xf0] }
  0x78   : > { %1390 = vmatpush.bf16.msra.mxu0 %v3173_v9  ;;  %v3177_v26 = vld [vmem:[%s3946_s28 + $0x48] sm:$0xff]  ;;  %v3176_v33 = vld [vmem:[%s3946_s28 + $0x40] sm:$0xff]  ;;  %v2544_v48 = vld [vmem:[%s3796_s7 + $0x30] sm:$0xf0]  ;;  %v2543_v53 = vor.u32 %v3206_v46, %v2542_v45 }
  0x79   : > { %1559 = vmatpush.bf16.msra.mxu1 %v3181_v10  ;;  %v3185_v27 = vld [vmem:[%s3946_s28 + $0x88] sm:$0xff]  ;;  %v3184_v34 = vld [vmem:[%s3946_s28 + $0x80] sm:$0xff]  ;;  %v3207_v50 = vld [vmem:[%s3796_s7 + $0x34] sm:$0xf0] }
  0x7a   : > { %1728 = vmatpush.bf16.msra.mxu2 %v3189_v11  ;;  %v3193_v28 = vld [vmem:[%s3946_s28 + $0xc8] sm:$0xff]  ;;  %v3192_v35 = vld [vmem:[%s3946_s28 + $0xc0] sm:$0xff]  ;;  %v2552_v52 = vld [vmem:[%s3796_s7 + $0x38] sm:$0xf0] }
  0x7b   : > { %1897 = vmatpush.bf16.msra.mxu3 %v3197_v12  ;;  %v3204_v47 = vld [vmem:[%s3796_s7 + $0x24] sm:$0xf]  ;;  %v2550_v49 = vld [vmem:[%s3796_s7 + $0x28] sm:$0xf]  ;;  %v3205_v51 = vld [vmem:[%s3796_s7 + $0x2c] sm:$0xf] }
  0x7c   : > { %1391 = vmatpush.bf16.msra.mxu0 %v3172_v13  ;;  %v2547_v54 = vor.u32 %v3204_v47, %v2544_v48  ;;  %v2551_v55 = vor.u32 %v3207_v50, %v2550_v49  ;;  %v2555_v56 = vor.u32 %v3205_v51, %v2552_v52  ;;  %v2558_v57 = vld [vmem:[%s3796_s7 + $0x40] sm:$0xf]  ;;  %v3210_v58 = vld [vmem:[%s3796_s7 + $0x4c] sm:$0xf0]  ;;  %v3208_v59 = vld [vmem:[%s3796_s7 + $0x44] sm:$0xf] }
  0x7d   : > { %1560 = vmatpush.bf16.msra.mxu1 %v3180_v14  ;;  %v2560_v60 = vld [vmem:[%s3796_s7 + $0x50] sm:$0xf0]  ;;  %v2566_v61 = vld [vmem:[%s3796_s7 + $0x48] sm:$0xf]  ;;  %v3211_v62 = vld [vmem:[%s3796_s7 + $0x54] sm:$0xf0]  ;;  %v2559_v1 = vor.u32 %v3210_v58, %v2558_v57 }
  0x7e   : > { %1729 = vmatpush.bf16.msra.mxu2 %v3188_v15  ;;  %v3209_v63 = vld [vmem:[%s3796_s7 + $0x4c] sm:$0xf]  ;;  %v2568_v0 = vld [vmem:[%s3796_s7 + $0x58] sm:$0xf0]  ;;  %v2563_v2 = vor.u32 %v3208_v59, %v2560_v60  ;;  %v2567_v3 = vor.u32 %v3211_v62, %v2566_v61  ;;  %v2574_v5 = vld [vmem:[%s3796_s7 + $0x60] sm:$0xf] }
  0x7f   : > { %1898 = vmatpush.bf16.msra.mxu3 %v3196_v16  ;;  %v2571_v4 = vor.u32 %v3209_v63, %v2568_v0  ;;  %v3214_v6 = vld [vmem:[%s3796_s7 + $0x6c] sm:$0xf0]  ;;  %v3212_v7 = vld [vmem:[%s3796_s7 + $0x64] sm:$0xf]  ;;  %v2576_v8 = vld [vmem:[%s3796_s7 + $0x70] sm:$0xf0] }
  0x80   : > { %1392 = vmatpush.bf16.msra.mxu0 %v3171_v17  ;;  %v2582_v9 = vld [vmem:[%s3796_s7 + $0x68] sm:$0xf]  ;;  %v3215_v10 = vld [vmem:[%s3796_s7 + $0x74] sm:$0xf0]  ;;  %v3213_v11 = vld [vmem:[%s3796_s7 + $0x6c] sm:$0xf]  ;;  %v2575_v13 = vor.u32 %v3214_v6, %v2574_v5  ;;  %v2579_v14 = vor.u32 %v3212_v7, %v2576_v8 }
  0x81   : > { %1561 = vmatpush.bf16.msra.mxu1 %v3179_v18  ;;  %v2584_v12 = vld [vmem:[%s3796_s7 + $0x78] sm:$0xf0]  ;;  %v2583_v15 = vor.u32 %v3215_v10, %v2582_v9  ;;  %v2590_v17 = vld [vmem:[%s3796_s7 + $0x80] sm:$0xf]  ;;  %v3218_v18 = vld [vmem:[%s3796_s7 + $0x8c] sm:$0xf0] }
  0x82   : > { %1730 = vmatpush.bf16.msra.mxu2 %v3187_v19  ;;  %v2587_v16 = vor.u32 %v3213_v11, %v2584_v12  ;;  %v3216_v19 = vld [vmem:[%s3796_s7 + $0x84] sm:$0xf]  ;;  %v2606_v29 = vld [vmem:[%s3796_s7 + $0xa0] sm:$0xf]  ;;  %v3222_v30 = vld [vmem:[%s3796_s7 + $0xac] sm:$0xf0] }
  0x83   : > { %1899 = vmatpush.bf16.msra.mxu3 %v3195_v20  ;;  %v2592_v20 = vld [vmem:[%s3796_s7 + $0x90] sm:$0xf0]  ;;  %v3220_v31 = vld [vmem:[%s3796_s7 + $0xa4] sm:$0xf]  ;;  %v2616_v36 = vld [vmem:[%s3796_s7 + $0xb8] sm:$0xf0]  ;;  %v2607_v37 = vor.u32 %v3222_v30, %v2606_v29 }
  0x84   : > { %1393 = vmatpush.bf16.msra.mxu0 %v3170_v21  ;;  %v2598_v21 = vld [vmem:[%s3796_s7 + $0x88] sm:$0xf]  ;;  %v3227_v46 = vld [vmem:[%s3796_s7 + $0xd4] sm:$0xf0]  ;;  %v3225_v47 = vld [vmem:[%s3796_s7 + $0xcc] sm:$0xf] }
  0x85   : > { %1562 = vmatpush.bf16.msra.mxu1 %v3178_v22  ;;  %v3219_v22 = vld [vmem:[%s3796_s7 + $0x94] sm:$0xf0]  ;;  %v2630_v45 = vld [vmem:[%s3796_s7 + $0xc8] sm:$0xf]  ;;  %v2632_v48 = vld [vmem:[%s3796_s7 + $0xd8] sm:$0xf0] }
  0x86   : > { %1731 = vmatpush.bf16.msra.mxu2 %v3186_v23  ;;  %v3217_v23 = vld [vmem:[%s3796_s7 + $0x8c] sm:$0xf]  ;;  %v2631_v51 = vor.u32 %v3227_v46, %v2630_v45  ;;  %v2635_v52 = vor.u32 %v3225_v47, %v2632_v48  ;;  %v2646_v57 = vld [vmem:[%s3796_s7 + $0xe8] sm:$0xf]  ;;  %v3231_v58 = vld [vmem:[%s3796_s7 + $0xf4] sm:$0xf0] }
  0x87   : > { %1900 = vmatpush.bf16.msra.mxu3 %v3194_v24  ;;  %v2600_v24 = vld [vmem:[%s3796_s7 + $0x98] sm:$0xf0]  ;;  %v3229_v59 = vld [vmem:[%s3796_s7 + $0xec] sm:$0xf]  ;;  %v2647_v63 = vor.u32 %v3231_v58, %v2646_v57  ;;  %v2662_v5 = vld [vmem:[%s3796_s7 + $0x108] sm:$0xf] }
  0x88   : > { %1394 = vmatpush.bf16.msra.mxu0 %v3169_v25  ;;  %v2591_v25 = vor.u32 %v3218_v18, %v2590_v17  ;;  %v2648_v60 = vld [vmem:[%s3796_s7 + $0xf8] sm:$0xf0]  ;;  %v3235_v6 = vld [vmem:[%s3796_s7 + $0x114] sm:$0xf0]  ;;  %v3233_v7 = vld [vmem:[%s3796_s7 + $0x10c] sm:$0xf] }
  0x89   : > { %1563 = vmatpush.bf16.msra.mxu1 %v3177_v26  ;;  %v2595_v26 = vor.u32 %v3216_v19, %v2592_v20  ;;  %v2651_v0 = vor.u32 %v3229_v59, %v2648_v60  ;;  %v2664_v8 = vld [vmem:[%s3796_s7 + $0x118] sm:$0xf0]  ;;  %v3239_v29 = vld [vmem:[%s3796_s7 + $0x134] sm:$0xf0]  ;;  %v3237_v30 = vld [vmem:[%s3796_s7 + $0x12c] sm:$0xf] }
  0x8a   : > { %1732 = vmatpush.bf16.msra.mxu2 %v3185_v27  ;;  %v2599_v27 = vor.u32 %v3219_v22, %v2598_v21  ;;  %v364_v21 = vld [vmem:[%s3806_s10] sm:$0xff]  ;;  %v2688_v57 = vld [vmem:[%s3796_s7 + $0x150] sm:$0xf0]  ;;  %v2694_v58 = vld [vmem:[%s3796_s7 + $0x148] sm:$0xf] }
  0x8b   : > { %1901 = vmatpush.bf16.msra.mxu3 %v3193_v28  ;;  %v2603_v28 = vor.u32 %v3217_v23, %v2600_v24  ;;  %v2670_v23 = vld [vmem:[%s3796_s7 + $0x120] sm:$0xf]  ;;  %v3238_v24 = vld [vmem:[%s3796_s7 + $0x12c] sm:$0xf0]  ;;  %v3243_v59 = vld [vmem:[%s3796_s7 + $0x154] sm:$0xf0] }
  0x8c   : > { %1395 = vmatpush.bf16.msra.mxu0 %v3168_v32  ;;  %v2608_v32 = vld [vmem:[%s3796_s7 + $0xb0] sm:$0xf0]  ;;  %v3241_v60 = vld [vmem:[%s3796_s7 + $0x14c] sm:$0xf] }
  0x8d   : > { %1564 = vmatpush.bf16.msra.mxu1 %v3176_v33  ;;  %v2614_v33 = vld [vmem:[%s3796_s7 + $0xa8] sm:$0xf]  ;;  %v2611_v38 = vor.u32 %v3220_v31, %v2608_v32  ;;  %v2680_v31 = vld [vmem:[%s3796_s7 + $0x138] sm:$0xf0] }
  0x8e   : > { %1733 = vmatpush.bf16.msra.mxu2 %v3184_v34  ;;  %v3223_v34 = vld [vmem:[%s3796_s7 + $0xb4] sm:$0xf0] }
  0x8f   : > { %1902 = vmatpush.bf16.msra.mxu3 %v3192_v35  ;;  %1396 = vmatmul.bf16.vlgmr.msra.gmra.mxu0 %v2527_v41  ;;  %v3221_v35 = vld [vmem:[%s3796_s7 + $0xac] sm:$0xf]  ;;  %v2615_v39 = vor.u32 %v3223_v34, %v2614_v33  ;;  %v2622_v41 = vld [vmem:[%s3796_s7 + $0xc0] sm:$0xf] }
  0x90   : > { %1565 = vmatmul.bf16.vlgmr.msra.gmra.mxu1 %v2531_v42  ;;  %v2619_v40 = vor.u32 %v3221_v35, %v2616_v36  ;;  %v3226_v42 = vld [vmem:[%s3796_s7 + $0xcc] sm:$0xf0]  ;;  %v2671_v35 = vor.u32 %v3238_v24, %v2670_v23  ;;  %v2704_v23 = vld [vmem:[%s3796_s7 + $0x170] sm:$0xf0]  ;;  %v2710_v24 = vld [vmem:[%s3796_s7 + $0x168] sm:$0xf] }
  0x91   : > { %1734 = vmatmul.bf16.vlgmr.msra.gmra.mxu2 %v2535_v43  ;;  %v3224_v43 = vld [vmem:[%s3796_s7 + $0xc4] sm:$0xf]  ;;  %v2623_v49 = vor.u32 %v3226_v42, %v2622_v41  ;;  %v2683_v41 = vor.u32 %v3237_v30, %v2680_v31  ;;  %v365_v42 = vld [vmem:[%s3806_s10 + $0x8] sm:$0xff] }
  0x92   : > { %1903 = vmatmul.bf16.vlgmr.msra.gmra.mxu3 %v2539_v44  ;;  %v2624_v44 = vld [vmem:[%s3796_s7 + $0xd0] sm:$0xf0] }
  0x93   : > { %v2627_v50 = vor.u32 %v3224_v43, %v2624_v44 }
  0x9f   : > { %1401 = vmatmul.bf16.gmra.mxu0 %v2543_v53  ;;  %v2638_v53 = vld [vmem:[%s3796_s7 + $0xe0] sm:$0xf] }
  0xa0   : > { %1570 = vmatmul.bf16.gmra.mxu1 %v2547_v54  ;;  %v3230_v54 = vld [vmem:[%s3796_s7 + $0xec] sm:$0xf0] }
  0xa1   : > { %1739 = vmatmul.bf16.gmra.mxu2 %v2551_v55  ;;  %v3228_v55 = vld [vmem:[%s3796_s7 + $0xe4] sm:$0xf]  ;;  %v2639_v61 = vor.u32 %v3230_v54, %v2638_v53  ;;  %v2686_v53 = vld [vmem:[%s3796_s7 + $0x140] sm:$0xf]  ;;  %v3242_v54 = vld [vmem:[%s3796_s7 + $0x14c] sm:$0xf0] }
  0xa2   : > { %1908 = vmatmul.bf16.gmra.mxu3 %v2555_v56  ;;  %v2640_v56 = vld [vmem:[%s3796_s7 + $0xf0] sm:$0xf0] }
  0xa3   : > { %v2643_v62 = vor.u32 %v3228_v55, %v2640_v56  ;;  %v3240_v56 = vld [vmem:[%s3796_s7 + $0x144] sm:$0xf] }
  0xaf   : > { %1406 = vmatmul.bf16.gmra.mxu0 %v2559_v1  ;;  %v2654_v1 = vld [vmem:[%s3796_s7 + $0x100] sm:$0xf] }
  0xb0   : > { %1575 = vmatmul.bf16.gmra.mxu1 %v2563_v2  ;;  %v3234_v2 = vld [vmem:[%s3796_s7 + $0x10c] sm:$0xf0] }
  0xb1   : > { %1744 = vmatmul.bf16.gmra.mxu2 %v2567_v3  ;;  %v3232_v3 = vld [vmem:[%s3796_s7 + $0x104] sm:$0xf]  ;;  %v2655_v9 = vor.u32 %v3234_v2, %v2654_v1  ;;  %v2687_v1 = vor.u32 %v3242_v54, %v2686_v53  ;;  %v2691_v2 = vor.u32 %v3240_v56, %v2688_v57  ;;  %v2720_v53 = vld [vmem:[%s3796_s7 + $0x190] sm:$0xf0]  ;;  %v2726_v54 = vld [vmem:[%s3796_s7 + $0x188] sm:$0xf] }
  0xb2   : > { %1913 = vmatmul.bf16.gmra.mxu3 %v2571_v4  ;;  %v2656_v4 = vld [vmem:[%s3796_s7 + $0x110] sm:$0xf0]  ;;  %v3249_v56 = vld [vmem:[%s3796_s7 + $0x18c] sm:$0xf]  ;;  %v2728_v57 = vld [vmem:[%s3796_s7 + $0x198] sm:$0xf0] }
  0xb3   : > { %v2659_v10 = vor.u32 %v3232_v3, %v2656_v4 }
  0xbf   : > { %1411 = vmatmul.bf16.gmra.mxu0 %v2575_v13  ;;  %v2663_v13 = vor.u32 %v3235_v6, %v2662_v5  ;;  %v2695_v6 = vor.u32 %v3243_v59, %v2694_v58 }
  0xc0   : > { %1580 = vmatmul.bf16.gmra.mxu1 %v2579_v14  ;;  %v2667_v14 = vor.u32 %v3233_v7, %v2664_v8  ;;  %v367_v8 = vld [vmem:[%s3806_s10 + $0x18] sm:$0xff] }
  0xc1   : > { %1749 = vmatmul.bf16.gmra.mxu2 %v2583_v15 }
  0xc2   : > { %1918 = vmatmul.bf16.gmra.mxu3 %v2587_v16 }
  0xcf   : > { %1416 = vmatmul.bf16.gmra.mxu0 %v2591_v25 }
  0xd0   : > { %1585 = vmatmul.bf16.gmra.mxu1 %v2595_v26  ;;  %v3236_v26 = vld [vmem:[%s3796_s7 + $0x124] sm:$0xf] }
  0xd1   : > { %1754 = vmatmul.bf16.gmra.mxu2 %v2599_v27  ;;  %v2672_v27 = vld [vmem:[%s3796_s7 + $0x130] sm:$0xf0] }
  0xd2   : > { %1923 = vmatmul.bf16.gmra.mxu3 %v2603_v28  ;;  %v2678_v28 = vld [vmem:[%s3796_s7 + $0x128] sm:$0xf]  ;;  %v2675_v36 = vor.u32 %v3236_v26, %v2672_v27  ;;  %v3245_v26 = vld [vmem:[%s3796_s7 + $0x16c] sm:$0xf]  ;;  %v2712_v27 = vld [vmem:[%s3796_s7 + $0x178] sm:$0xf0] }
  0xdf   : > { %1421 = vmatmul.bf16.gmra.mxu0 %v2607_v37 }
  0xe0   : > { %1590 = vmatmul.bf16.gmra.mxu1 %v2611_v38 }
  0xe1   : > { %1759 = vmatmul.bf16.gmra.mxu2 %v2615_v39 }
  0xe2   : > { %1928 = vmatmul.bf16.gmra.mxu3 %v2619_v40  ;;  %v2679_v40 = vor.u32 %v3239_v29, %v2678_v28 }
  0xef   : > { %1426 = vmatmul.bf16.gmra.mxu0 %v2623_v49 }
  0xf0   : > { %1595 = vmatmul.bf16.gmra.mxu1 %v2627_v50 }
  0xf1   : > { %1764 = vmatmul.bf16.gmra.mxu2 %v2631_v51  ;;  %v366_v51 = vld [vmem:[%s3806_s10 + $0x10] sm:$0xff] }
  0xf2   : > { %1933 = vmatmul.bf16.gmra.mxu3 %v2635_v52 }
  0xff   : > { %1431 = vmatmul.bf16.gmra.mxu0 %v2639_v61  ;;  %v2696_v61 = vld [vmem:[%s3796_s7 + $0x158] sm:$0xf0] }
 0x100   : > { %1600 = vmatmul.bf16.gmra.mxu1 %v2643_v62  ;;  %v2699_v7 = vor.u32 %v3241_v60, %v2696_v61 }
 0x101   : > { %1769 = vmatmul.bf16.gmra.mxu2 %v2647_v63 }
 0x102   : > { %1938 = vmatmul.bf16.gmra.mxu3 %v2651_v0 }
 0x10c   : > { %v1397_v11 = vpop.f32.mrf.mxu0 }
 0x10d   : > { %v1566_v12 = vpop.f32.mrf.mxu1 }
 0x10e   : > { %v1567_v15 = vadd.f32 %v1566_v12, %v1397_v11 }
 0x10f   : > { %1436 = vmatmul.bf16.gmra.mxu0 %v2655_v9 }
 0x110   : > { %1605 = vmatmul.bf16.gmra.mxu1 %v2659_v10 }
 0x111   : > { %1774 = vmatmul.bf16.gmra.mxu2 %v2663_v13 }
 0x112   : > { %1943 = vmatmul.bf16.gmra.mxu3 %v2667_v14 }
 0x114   : > { %v1735_v16 = vpop.f32.mrf.mxu2  ;;  %v1399_v19 = vpop.f32.mrf.mxu0 }
 0x115   : > { %v1904_v17 = vpop.f32.mrf.mxu3  ;;  %v1736_v18 = vadd.f32 %v1735_v16, %v1567_v15  ;;  %v1568_v20 = vpop.f32.mrf.mxu1 }
 0x116   : > { %v1569_v32 = vadd.f32 %v1568_v20, %v1399_v19  ;;  %v2702_v19 = vld [vmem:[%s3796_s7 + $0x160] sm:$0xf]  ;;  %v3246_v20 = vld [vmem:[%s3796_s7 + $0x16c] sm:$0xf0] }
 0x117   : > { %v1905_v22 = vadd.f32 %v1904_v17, %v1736_v18  ;;  %v368_v17 = vld [vmem:[%s3806_s10 + $0x20] sm:$0xff]  ;;  %v2703_v31 = vor.u32 %v3246_v20, %v2702_v19  ;;  %v2736_v19 = vld [vmem:[%s3796_s7 + $0x1b0] sm:$0xf0]  ;;  %v2742_v20 = vld [vmem:[%s3796_s7 + $0x1a8] sm:$0xf] }
 0x119   : > { %v2064_v25 = vadd.f32 %v1905_v22, %v364_v21  ;;  %v3244_v22 = vld [vmem:[%s3796_s7 + $0x164] sm:$0xf] }
 0x11b   : > { %2128 = vst [vmem:[%s3806_s10] sm:$0xff] %v2064_v25  ;;  %v3247_v25 = vld [vmem:[%s3796_s7 + $0x174] sm:$0xf0] }
 0x11c   : > { %v1737_v33 = vpop.f32.mrf.mxu2  ;;  %v1402_v38 = vpop.f32.mrf.mxu0 }
 0x11d   : > { %v1906_v34 = vpop.f32.mrf.mxu3  ;;  %v1738_v37 = vadd.f32 %v1737_v33, %v1569_v32  ;;  %v1571_v39 = vpop.f32.mrf.mxu1  ;;  %v2707_v32 = vor.u32 %v3244_v22, %v2704_v23  ;;  %v3253_v22 = vld [vmem:[%s3796_s7 + $0x1ac] sm:$0xf]  ;;  %v2744_v23 = vld [vmem:[%s3796_s7 + $0x1b8] sm:$0xf0] }
 0x11e   : > { %v1572_v45 = vadd.f32 %v1571_v39, %v1402_v38  ;;  %v369_v38 = vld [vmem:[%s3806_s10 + $0x28] sm:$0xff] }
 0x11f   : > { %v1907_v43 = vadd.f32 %v1906_v34, %v1738_v37  ;;  %1441 = vmatmul.bf16.gmra.mxu0 %v2671_v35  ;;  %v2715_v37 = vor.u32 %v3245_v26, %v2712_v27 }
 0x120   : > { %1610 = vmatmul.bf16.gmra.mxu1 %v2675_v36  ;;  %v2711_v36 = vor.u32 %v3247_v25, %v2710_v24 }
 0x121   : > { %v2065_v44 = vadd.f32 %v1907_v43, %v365_v42  ;;  %1779 = vmatmul.bf16.gmra.mxu2 %v2679_v40 }
 0x122   : > { %1948 = vmatmul.bf16.gmra.mxu3 %v2683_v41 }
 0x123   : > { %2129 = vst [vmem:[%s3806_s10 + $0x8] sm:$0xff] %v2065_v44 }
 0x124   : > { %v1740_v46 = vpop.f32.mrf.mxu2  ;;  %v1404_v49 = vpop.f32.mrf.mxu0 }
 0x125   : > { %v1909_v47 = vpop.f32.mrf.mxu3  ;;  %v1741_v48 = vadd.f32 %v1740_v46, %v1572_v45  ;;  %v1573_v50 = vpop.f32.mrf.mxu1 }
 0x126   : > { %v1574_v62 = vadd.f32 %v1573_v50, %v1404_v49  ;;  %v2718_v49 = vld [vmem:[%s3796_s7 + $0x180] sm:$0xf]  ;;  %v3250_v50 = vld [vmem:[%s3796_s7 + $0x18c] sm:$0xf0] }
 0x127   : > { %v1910_v52 = vadd.f32 %v1909_v47, %v1741_v48  ;;  %v370_v47 = vld [vmem:[%s3806_s10 + $0x30] sm:$0xff]  ;;  %v2719_v61 = vor.u32 %v3250_v50, %v2718_v49  ;;  %v2758_v50 = vld [vmem:[%s3796_s7 + $0x1c8] sm:$0xf] }
 0x128   : > { %v2752_v49 = vld [vmem:[%s3796_s7 + $0x1d0] sm:$0xf0] }
 0x129   : > { %v2066_v55 = vadd.f32 %v1910_v52, %v366_v51  ;;  %v3248_v52 = vld [vmem:[%s3796_s7 + $0x184] sm:$0xf] }
 0x12b   : > { %2130 = vst [vmem:[%s3806_s10 + $0x10] sm:$0xff] %v2066_v55  ;;  %v3251_v55 = vld [vmem:[%s3796_s7 + $0x194] sm:$0xf0] }
 0x12c   : > { %v1742_v63 = vpop.f32.mrf.mxu2  ;;  %v1407_v4 = vpop.f32.mrf.mxu0 }
 0x12d   : > { %v1911_v0 = vpop.f32.mrf.mxu3  ;;  %v1743_v3 = vadd.f32 %v1742_v63, %v1574_v62  ;;  %v1576_v5 = vpop.f32.mrf.mxu1  ;;  %v2723_v62 = vor.u32 %v3248_v52, %v2720_v53  ;;  %v3257_v52 = vld [vmem:[%s3796_s7 + $0x1cc] sm:$0xf]  ;;  %v2760_v53 = vld [vmem:[%s3796_s7 + $0x1d8] sm:$0xf0] }
 0x12e   : > { %v1577_v11 = vadd.f32 %v1576_v5, %v1407_v4  ;;  %v371_v4 = vld [vmem:[%s3806_s10 + $0x38] sm:$0xff] }
 0x12f   : > { %v1912_v9 = vadd.f32 %v1911_v0, %v1743_v3  ;;  %1446 = vmatmul.bf16.gmra.mxu0 %v2687_v1  ;;  %v2731_v3 = vor.u32 %v3249_v56, %v2728_v57 }
 0x130   : > { %1615 = vmatmul.bf16.gmra.mxu1 %v2691_v2  ;;  %v2727_v2 = vor.u32 %v3251_v55, %v2726_v54 }
 0x131   : > { %v2067_v10 = vadd.f32 %v1912_v9, %v367_v8  ;;  %1784 = vmatmul.bf16.gmra.mxu2 %v2695_v6 }
 0x132   : > { %1953 = vmatmul.bf16.gmra.mxu3 %v2699_v7 }
 0x133   : > { %2131 = vst [vmem:[%s3806_s10 + $0x18] sm:$0xff] %v2067_v10 }
 0x134   : > { %v1745_v12 = vpop.f32.mrf.mxu2  ;;  %v1409_v15 = vpop.f32.mrf.mxu0 }
 0x135   : > { %v1914_v13 = vpop.f32.mrf.mxu3  ;;  %v1746_v14 = vadd.f32 %v1745_v12, %v1577_v11  ;;  %v1578_v16 = vpop.f32.mrf.mxu1 }
 0x136   : > { %v1579_v28 = vadd.f32 %v1578_v16, %v1409_v15  ;;  %v2734_v15 = vld [vmem:[%s3796_s7 + $0x1a0] sm:$0xf]  ;;  %v3254_v16 = vld [vmem:[%s3796_s7 + $0x1ac] sm:$0xf0] }
 0x137   : > { %v1915_v18 = vadd.f32 %v1914_v13, %v1746_v14  ;;  %v372_v13 = vld [vmem:[%s3806_s10 + $0x40] sm:$0xff]  ;;  %v2735_v27 = vor.u32 %v3254_v16, %v2734_v15  ;;  %v2768_v15 = vld [vmem:[%s3796_s7 + $0x1f0] sm:$0xf0]  ;;  %v2774_v16 = vld [vmem:[%s3796_s7 + $0x1e8] sm:$0xf] }
 0x139   : > { %v2068_v21 = vadd.f32 %v1915_v18, %v368_v17  ;;  %v3252_v18 = vld [vmem:[%s3796_s7 + $0x1a4] sm:$0xf] }
 0x13b   : > { %2132 = vst [vmem:[%s3806_s10 + $0x20] sm:$0xff] %v2068_v21  ;;  %v3255_v21 = vld [vmem:[%s3796_s7 + $0x1b4] sm:$0xf0] }
 0x13c   : > { %v1747_v29 = vpop.f32.mrf.mxu2  ;;  %v1412_v34 = vpop.f32.mrf.mxu0 }
 0x13d   : > { %v1916_v30 = vpop.f32.mrf.mxu3  ;;  %v1748_v33 = vadd.f32 %v1747_v29, %v1579_v28  ;;  %v1581_v35 = vpop.f32.mrf.mxu1  ;;  %v2739_v28 = vor.u32 %v3252_v18, %v2736_v19  ;;  %v3261_v18 = vld [vmem:[%s3796_s7 + $0x1ec] sm:$0xf]  ;;  %v2776_v19 = vld [vmem:[%s3796_s7 + $0x1f8] sm:$0xf0] }
 0x13e   : > { %v1582_v41 = vadd.f32 %v1581_v35, %v1412_v34  ;;  %v373_v34 = vld [vmem:[%s3806_s10 + $0x48] sm:$0xff] }
 0x13f   : > { %v1917_v39 = vadd.f32 %v1916_v30, %v1748_v33  ;;  %1451 = vmatmul.bf16.gmra.mxu0 %v2703_v31  ;;  %v2747_v33 = vor.u32 %v3253_v22, %v2744_v23 }
 0x140   : > { %1620 = vmatmul.bf16.gmra.mxu1 %v2707_v32  ;;  %v2743_v32 = vor.u32 %v3255_v21, %v2742_v20 }
 0x141   : > { %v2069_v40 = vadd.f32 %v1917_v39, %v369_v38  ;;  %1789 = vmatmul.bf16.gmra.mxu2 %v2711_v36 }
 0x142   : > { %1958 = vmatmul.bf16.gmra.mxu3 %v2715_v37 }
 0x143   : > { %2133 = vst [vmem:[%s3806_s10 + $0x28] sm:$0xff] %v2069_v40 }
 0x144   : > { %v1750_v42 = vpop.f32.mrf.mxu2  ;;  %v1414_v45 = vpop.f32.mrf.mxu0 }
 0x145   : > { %v1919_v43 = vpop.f32.mrf.mxu3  ;;  %v1751_v44 = vadd.f32 %v1750_v42, %v1582_v41  ;;  %v1583_v46 = vpop.f32.mrf.mxu1 }
 0x146   : > { %v1584_v58 = vadd.f32 %v1583_v46, %v1414_v45  ;;  %v2750_v45 = vld [vmem:[%s3796_s7 + $0x1c0] sm:$0xf]  ;;  %v3258_v46 = vld [vmem:[%s3796_s7 + $0x1cc] sm:$0xf0] }
 0x147   : > { %v1920_v48 = vadd.f32 %v1919_v43, %v1751_v44  ;;  %v374_v43 = vld [vmem:[%s3806_s10 + $0x50] sm:$0xff]  ;;  %v2751_v57 = vor.u32 %v3258_v46, %v2750_v45  ;;  %v2790_v46 = vld [vmem:[%s3796_s7 + $0x208] sm:$0xf] }
 0x148   : > { %v2784_v45 = vld [vmem:[%s3796_s7 + $0x210] sm:$0xf0] }
 0x149   : > { %v2070_v51 = vadd.f32 %v1920_v48, %v370_v47  ;;  %v3256_v48 = vld [vmem:[%s3796_s7 + $0x1c4] sm:$0xf] }
 0x14b   : > { %2134 = vst [vmem:[%s3806_s10 + $0x30] sm:$0xff] %v2070_v51  ;;  %v3259_v51 = vld [vmem:[%s3796_s7 + $0x1d4] sm:$0xf0] }
 0x14c   : > { %v1752_v59 = vpop.f32.mrf.mxu2  ;;  %v1417_v0 = vpop.f32.mrf.mxu0 }
 0x14d   : > { %v1921_v60 = vpop.f32.mrf.mxu3  ;;  %v1753_v63 = vadd.f32 %v1752_v59, %v1584_v58  ;;  %v1586_v1 = vpop.f32.mrf.mxu1  ;;  %v2755_v58 = vor.u32 %v3256_v48, %v2752_v49  ;;  %v3265_v48 = vld [vmem:[%s3796_s7 + $0x20c] sm:$0xf]  ;;  %v2792_v49 = vld [vmem:[%s3796_s7 + $0x218] sm:$0xf0] }
 0x14e   : > { %v1587_v7 = vadd.f32 %v1586_v1, %v1417_v0  ;;  %v375_v0 = vld [vmem:[%s3806_s10 + $0x58] sm:$0xff] }
 0x14f   : > { %v1922_v5 = vadd.f32 %v1921_v60, %v1753_v63  ;;  %1456 = vmatmul.bf16.gmra.mxu0 %v2719_v61  ;;  %v2763_v63 = vor.u32 %v3257_v52, %v2760_v53 }
 0x150   : > { %1625 = vmatmul.bf16.gmra.mxu1 %v2723_v62  ;;  %v2759_v62 = vor.u32 %v3259_v51, %v2758_v50 }
 0x151   : > { %v2071_v6 = vadd.f32 %v1922_v5, %v371_v4  ;;  %1794 = vmatmul.bf16.gmra.mxu2 %v2727_v2 }
 0x152   : > { %1963 = vmatmul.bf16.gmra.mxu3 %v2731_v3 }
 0x153   : > { %2135 = vst [vmem:[%s3806_s10 + $0x38] sm:$0xff] %v2071_v6 }
 0x154   : > { %v1755_v8 = vpop.f32.mrf.mxu2  ;;  %v1419_v11 = vpop.f32.mrf.mxu0 }
 0x155   : > { %v1924_v9 = vpop.f32.mrf.mxu3  ;;  %v1756_v10 = vadd.f32 %v1755_v8, %v1587_v7  ;;  %v1588_v12 = vpop.f32.mrf.mxu1 }
 0x156   : > { %v1589_v24 = vadd.f32 %v1588_v12, %v1419_v11  ;;  %v2766_v11 = vld [vmem:[%s3796_s7 + $0x1e0] sm:$0xf]  ;;  %v3262_v12 = vld [vmem:[%s3796_s7 + $0x1ec] sm:$0xf0] }
 0x157   : > { %v1925_v14 = vadd.f32 %v1924_v9, %v1756_v10  ;;  %v376_v9 = vld [vmem:[%s3806_s10 + $0x60] sm:$0xff]  ;;  %v2767_v23 = vor.u32 %v3262_v12, %v2766_v11  ;;  %v2800_v11 = vld [vmem:[%s3796_s7 + $0x230] sm:$0xf0]  ;;  %v2806_v12 = vld [vmem:[%s3796_s7 + $0x228] sm:$0xf] }
 0x159   : > { %v2072_v17 = vadd.f32 %v1925_v14, %v372_v13  ;;  %v3260_v14 = vld [vmem:[%s3796_s7 + $0x1e4] sm:$0xf] }
 0x15b   : > { %2136 = vst [vmem:[%s3806_s10 + $0x40] sm:$0xff] %v2072_v17  ;;  %v3263_v17 = vld [vmem:[%s3796_s7 + $0x1f4] sm:$0xf0] }
 0x15c   : > { %v1757_v25 = vpop.f32.mrf.mxu2  ;;  %v1422_v30 = vpop.f32.mrf.mxu0 }
 0x15d   : > { %v1926_v26 = vpop.f32.mrf.mxu3  ;;  %v1758_v29 = vadd.f32 %v1757_v25, %v1589_v24  ;;  %v1591_v31 = vpop.f32.mrf.mxu1  ;;  %v2771_v24 = vor.u32 %v3260_v14, %v2768_v15  ;;  %v3269_v14 = vld [vmem:[%s3796_s7 + $0x22c] sm:$0xf]  ;;  %v2808_v15 = vld [vmem:[%s3796_s7 + $0x238] sm:$0xf0] }
 0x15e   : > { %v1592_v37 = vadd.f32 %v1591_v31, %v1422_v30  ;;  %v377_v30 = vld [vmem:[%s3806_s10 + $0x68] sm:$0xff] }
 0x15f   : > { %v1927_v35 = vadd.f32 %v1926_v26, %v1758_v29  ;;  %1461 = vmatmul.bf16.gmra.mxu0 %v2735_v27  ;;  %v2779_v29 = vor.u32 %v3261_v18, %v2776_v19 }
 0x160   : > { %1630 = vmatmul.bf16.gmra.mxu1 %v2739_v28  ;;  %v2775_v28 = vor.u32 %v3263_v17, %v2774_v16 }
 0x161   : > { %v2073_v36 = vadd.f32 %v1927_v35, %v373_v34  ;;  %1799 = vmatmul.bf16.gmra.mxu2 %v2743_v32 }
 0x162   : > { %1968 = vmatmul.bf16.gmra.mxu3 %v2747_v33 }
 0x163   : > { %2137 = vst [vmem:[%s3806_s10 + $0x48] sm:$0xff] %v2073_v36 }
 0x164   : > { %v1760_v38 = vpop.f32.mrf.mxu2  ;;  %v1424_v41 = vpop.f32.mrf.mxu0 }
 0x165   : > { %v1929_v39 = vpop.f32.mrf.mxu3  ;;  %v1761_v40 = vadd.f32 %v1760_v38, %v1592_v37  ;;  %v1593_v42 = vpop.f32.mrf.mxu1 }
 0x166   : > { %v1594_v54 = vadd.f32 %v1593_v42, %v1424_v41  ;;  %v2782_v41 = vld [vmem:[%s3796_s7 + $0x200] sm:$0xf]  ;;  %v3266_v42 = vld [vmem:[%s3796_s7 + $0x20c] sm:$0xf0] }
 0x167   : > { %v1930_v44 = vadd.f32 %v1929_v39, %v1761_v40  ;;  %v378_v39 = vld [vmem:[%s3806_s10 + $0x70] sm:$0xff]  ;;  %v2783_v53 = vor.u32 %v3266_v42, %v2782_v41  ;;  %v2822_v42 = vld [vmem:[%s3796_s7 + $0x248] sm:$0xf] }
 0x168   : > { %v2816_v41 = vld [vmem:[%s3796_s7 + $0x250] sm:$0xf0] }
 0x169   : > { %v2074_v47 = vadd.f32 %v1930_v44, %v374_v43  ;;  %v3264_v44 = vld [vmem:[%s3796_s7 + $0x204] sm:$0xf] }
 0x16b   : > { %2138 = vst [vmem:[%s3806_s10 + $0x50] sm:$0xff] %v2074_v47  ;;  %v3267_v47 = vld [vmem:[%s3796_s7 + $0x214] sm:$0xf0] }
 0x16c   : > { %v1762_v55 = vpop.f32.mrf.mxu2  ;;  %v1427_v60 = vpop.f32.mrf.mxu0 }
 0x16d   : > { %v1931_v56 = vpop.f32.mrf.mxu3  ;;  %v1763_v59 = vadd.f32 %v1762_v55, %v1594_v54  ;;  %v1596_v61 = vpop.f32.mrf.mxu1  ;;  %v2787_v54 = vor.u32 %v3264_v44, %v2784_v45  ;;  %v3273_v44 = vld [vmem:[%s3796_s7 + $0x24c] sm:$0xf]  ;;  %v2824_v45 = vld [vmem:[%s3796_s7 + $0x258] sm:$0xf0] }
 0x16e   : > { %v1597_v3 = vadd.f32 %v1596_v61, %v1427_v60  ;;  %v379_v60 = vld [vmem:[%s3806_s10 + $0x78] sm:$0xff] }
 0x16f   : > { %v1932_v1 = vadd.f32 %v1931_v56, %v1763_v59  ;;  %1466 = vmatmul.bf16.gmra.mxu0 %v2751_v57  ;;  %v2795_v59 = vor.u32 %v3265_v48, %v2792_v49 }
 0x170   : > { %1635 = vmatmul.bf16.gmra.mxu1 %v2755_v58  ;;  %v2791_v58 = vor.u32 %v3267_v47, %v2790_v46 }
 0x171   : > { %v2075_v2 = vadd.f32 %v1932_v1, %v375_v0  ;;  %1804 = vmatmul.bf16.gmra.mxu2 %v2759_v62 }
 0x172   : > { %1973 = vmatmul.bf16.gmra.mxu3 %v2763_v63 }
 0x173   : > { %2139 = vst [vmem:[%s3806_s10 + $0x58] sm:$0xff] %v2075_v2 }
 0x174   : > { %v1765_v4 = vpop.f32.mrf.mxu2  ;;  %v1429_v7 = vpop.f32.mrf.mxu0 }
 0x175   : > { %v1934_v5 = vpop.f32.mrf.mxu3  ;;  %v1766_v6 = vadd.f32 %v1765_v4, %v1597_v3  ;;  %v1598_v8 = vpop.f32.mrf.mxu1 }
 0x176   : > { %v1599_v20 = vadd.f32 %v1598_v8, %v1429_v7  ;;  %v2798_v7 = vld [vmem:[%s3796_s7 + $0x220] sm:$0xf]  ;;  %v3270_v8 = vld [vmem:[%s3796_s7 + $0x22c] sm:$0xf0] }
 0x177   : > { %v1935_v10 = vadd.f32 %v1934_v5, %v1766_v6  ;;  %v380_v5 = vld [vmem:[%s3806_s10 + $0x80] sm:$0xff]  ;;  %v2799_v19 = vor.u32 %v3270_v8, %v2798_v7  ;;  %v2832_v7 = vld [vmem:[%s3796_s7 + $0x270] sm:$0xf0]  ;;  %v2838_v8 = vld [vmem:[%s3796_s7 + $0x268] sm:$0xf] }
 0x179   : > { %v2076_v13 = vadd.f32 %v1935_v10, %v376_v9  ;;  %v3268_v10 = vld [vmem:[%s3796_s7 + $0x224] sm:$0xf] }
 0x17b   : > { %2140 = vst [vmem:[%s3806_s10 + $0x60] sm:$0xff] %v2076_v13  ;;  %v3271_v13 = vld [vmem:[%s3796_s7 + $0x234] sm:$0xf0] }
 0x17c   : > { %v1767_v21 = vpop.f32.mrf.mxu2  ;;  %v1432_v26 = vpop.f32.mrf.mxu0 }
 0x17d   : > { %v1936_v22 = vpop.f32.mrf.mxu3  ;;  %v1768_v25 = vadd.f32 %v1767_v21, %v1599_v20  ;;  %v1601_v27 = vpop.f32.mrf.mxu1  ;;  %v2803_v20 = vor.u32 %v3268_v10, %v2800_v11  ;;  %v3277_v10 = vld [vmem:[%s3796_s7 + $0x26c] sm:$0xf]  ;;  %v2840_v11 = vld [vmem:[%s3796_s7 + $0x278] sm:$0xf0] }
 0x17e   : > { %v1602_v33 = vadd.f32 %v1601_v27, %v1432_v26  ;;  %v381_v26 = vld [vmem:[%s3806_s10 + $0x88] sm:$0xff] }
 0x17f   : > { %v1937_v31 = vadd.f32 %v1936_v22, %v1768_v25  ;;  %1471 = vmatmul.bf16.gmra.mxu0 %v2767_v23  ;;  %v2811_v25 = vor.u32 %v3269_v14, %v2808_v15 }
 0x180   : > { %1640 = vmatmul.bf16.gmra.mxu1 %v2771_v24  ;;  %v2807_v24 = vor.u32 %v3271_v13, %v2806_v12 }
 0x181   : > { %v2077_v32 = vadd.f32 %v1937_v31, %v377_v30  ;;  %1809 = vmatmul.bf16.gmra.mxu2 %v2775_v28 }
 0x182   : > { %1978 = vmatmul.bf16.gmra.mxu3 %v2779_v29 }
 0x183   : > { %2141 = vst [vmem:[%s3806_s10 + $0x68] sm:$0xff] %v2077_v32 }
 0x184   : > { %v1770_v34 = vpop.f32.mrf.mxu2  ;;  %v1434_v37 = vpop.f32.mrf.mxu0 }
 0x185   : > { %v1939_v35 = vpop.f32.mrf.mxu3  ;;  %v1771_v36 = vadd.f32 %v1770_v34, %v1602_v33  ;;  %v1603_v38 = vpop.f32.mrf.mxu1 }
 0x186   : > { %v1604_v50 = vadd.f32 %v1603_v38, %v1434_v37  ;;  %v2814_v37 = vld [vmem:[%s3796_s7 + $0x240] sm:$0xf]  ;;  %v3274_v38 = vld [vmem:[%s3796_s7 + $0x24c] sm:$0xf0] }
 0x187   : > { %v1940_v40 = vadd.f32 %v1939_v35, %v1771_v36  ;;  %v382_v35 = vld [vmem:[%s3806_s10 + $0x90] sm:$0xff]  ;;  %v2815_v49 = vor.u32 %v3274_v38, %v2814_v37  ;;  %v2854_v38 = vld [vmem:[%s3796_s7 + $0x288] sm:$0xf] }
 0x188   : > { %v2848_v37 = vld [vmem:[%s3796_s7 + $0x290] sm:$0xf0] }
 0x189   : > { %v2078_v43 = vadd.f32 %v1940_v40, %v378_v39  ;;  %v3272_v40 = vld [vmem:[%s3796_s7 + $0x244] sm:$0xf] }
 0x18b   : > { %2142 = vst [vmem:[%s3806_s10 + $0x70] sm:$0xff] %v2078_v43  ;;  %v3275_v43 = vld [vmem:[%s3796_s7 + $0x254] sm:$0xf0] }
 0x18c   : > { %v1772_v51 = vpop.f32.mrf.mxu2  ;;  %v1437_v56 = vpop.f32.mrf.mxu0 }
 0x18d   : > { %v1941_v52 = vpop.f32.mrf.mxu3  ;;  %v1773_v55 = vadd.f32 %v1772_v51, %v1604_v50  ;;  %v1606_v57 = vpop.f32.mrf.mxu1  ;;  %v2819_v50 = vor.u32 %v3272_v40, %v2816_v41  ;;  %v3281_v40 = vld [vmem:[%s3796_s7 + $0x28c] sm:$0xf]  ;;  %v2856_v41 = vld [vmem:[%s3796_s7 + $0x298] sm:$0xf0] }
 0x18e   : > { %v1607_v63 = vadd.f32 %v1606_v57, %v1437_v56  ;;  %v383_v56 = vld [vmem:[%s3806_s10 + $0x98] sm:$0xff] }
 0x18f   : > { %v1942_v61 = vadd.f32 %v1941_v52, %v1773_v55  ;;  %1476 = vmatmul.bf16.gmra.mxu0 %v2783_v53  ;;  %v2827_v55 = vor.u32 %v3273_v44, %v2824_v45 }
 0x190   : > { %1645 = vmatmul.bf16.gmra.mxu1 %v2787_v54  ;;  %v2823_v54 = vor.u32 %v3275_v43, %v2822_v42 }
 0x191   : > { %v2079_v62 = vadd.f32 %v1942_v61, %v379_v60  ;;  %1814 = vmatmul.bf16.gmra.mxu2 %v2791_v58 }
 0x192   : > { %1983 = vmatmul.bf16.gmra.mxu3 %v2795_v59 }
 0x193   : > { %2143 = vst [vmem:[%s3806_s10 + $0x78] sm:$0xff] %v2079_v62 }
 0x194   : > { %v1775_v0 = vpop.f32.mrf.mxu2  ;;  %v1439_v3 = vpop.f32.mrf.mxu0 }
 0x195   : > { %v1944_v1 = vpop.f32.mrf.mxu3  ;;  %v1776_v2 = vadd.f32 %v1775_v0, %v1607_v63  ;;  %v1608_v4 = vpop.f32.mrf.mxu1 }
 0x196   : > { %v1609_v16 = vadd.f32 %v1608_v4, %v1439_v3  ;;  %v2830_v3 = vld [vmem:[%s3796_s7 + $0x260] sm:$0xf]  ;;  %v3278_v4 = vld [vmem:[%s3796_s7 + $0x26c] sm:$0xf0] }
 0x197   : > { %v1945_v6 = vadd.f32 %v1944_v1, %v1776_v2  ;;  %v384_v1 = vld [vmem:[%s3806_s10 + $0xa0] sm:$0xff]  ;;  %v2831_v15 = vor.u32 %v3278_v4, %v2830_v3  ;;  %v2864_v3 = vld [vmem:[%s3796_s7 + $0x2b0] sm:$0xf0]  ;;  %v2870_v4 = vld [vmem:[%s3796_s7 + $0x2a8] sm:$0xf] }
 0x199   : > { %v2080_v9 = vadd.f32 %v1945_v6, %v380_v5  ;;  %v3276_v6 = vld [vmem:[%s3796_s7 + $0x264] sm:$0xf] }
 0x19b   : > { %2144 = vst [vmem:[%s3806_s10 + $0x80] sm:$0xff] %v2080_v9  ;;  %v3279_v9 = vld [vmem:[%s3796_s7 + $0x274] sm:$0xf0] }
 0x19c   : > { %v1777_v17 = vpop.f32.mrf.mxu2  ;;  %v1442_v22 = vpop.f32.mrf.mxu0 }
 0x19d   : > { %v1946_v18 = vpop.f32.mrf.mxu3  ;;  %v1778_v21 = vadd.f32 %v1777_v17, %v1609_v16  ;;  %v1611_v23 = vpop.f32.mrf.mxu1  ;;  %v2835_v16 = vor.u32 %v3276_v6, %v2832_v7  ;;  %v3285_v6 = vld [vmem:[%s3796_s7 + $0x2ac] sm:$0xf]  ;;  %v2872_v7 = vld [vmem:[%s3796_s7 + $0x2b8] sm:$0xf0] }
 0x19e   : > { %v1612_v29 = vadd.f32 %v1611_v23, %v1442_v22  ;;  %v385_v22 = vld [vmem:[%s3806_s10 + $0xa8] sm:$0xff] }
 0x19f   : > { %v1947_v27 = vadd.f32 %v1946_v18, %v1778_v21  ;;  %1481 = vmatmul.bf16.gmra.mxu0 %v2799_v19  ;;  %v2843_v21 = vor.u32 %v3277_v10, %v2840_v11 }
 0x1a0   : > { %1650 = vmatmul.bf16.gmra.mxu1 %v2803_v20  ;;  %v2839_v20 = vor.u32 %v3279_v9, %v2838_v8 }
 0x1a1   : > { %v2081_v28 = vadd.f32 %v1947_v27, %v381_v26  ;;  %1819 = vmatmul.bf16.gmra.mxu2 %v2807_v24 }
 0x1a2   : > { %1988 = vmatmul.bf16.gmra.mxu3 %v2811_v25 }
 0x1a3   : > { %2145 = vst [vmem:[%s3806_s10 + $0x88] sm:$0xff] %v2081_v28 }
 0x1a4   : > { %v1780_v30 = vpop.f32.mrf.mxu2  ;;  %v1444_v33 = vpop.f32.mrf.mxu0 }
 0x1a5   : > { %v1949_v31 = vpop.f32.mrf.mxu3  ;;  %v1781_v32 = vadd.f32 %v1780_v30, %v1612_v29  ;;  %v1613_v34 = vpop.f32.mrf.mxu1 }
 0x1a6   : > { %v1614_v46 = vadd.f32 %v1613_v34, %v1444_v33  ;;  %v2846_v33 = vld [vmem:[%s3796_s7 + $0x280] sm:$0xf]  ;;  %v3282_v34 = vld [vmem:[%s3796_s7 + $0x28c] sm:$0xf0] }
 0x1a7   : > { %v1950_v36 = vadd.f32 %v1949_v31, %v1781_v32  ;;  %v386_v31 = vld [vmem:[%s3806_s10 + $0xb0] sm:$0xff]  ;;  %v2847_v45 = vor.u32 %v3282_v34, %v2846_v33  ;;  %v2886_v34 = vld [vmem:[%s3796_s7 + $0x2c8] sm:$0xf] }
 0x1a8   : > { %v2880_v33 = vld [vmem:[%s3796_s7 + $0x2d0] sm:$0xf0] }
 0x1a9   : > { %v2082_v39 = vadd.f32 %v1950_v36, %v382_v35  ;;  %v3280_v36 = vld [vmem:[%s3796_s7 + $0x284] sm:$0xf] }
 0x1ab   : > { %2146 = vst [vmem:[%s3806_s10 + $0x90] sm:$0xff] %v2082_v39  ;;  %v3283_v39 = vld [vmem:[%s3796_s7 + $0x294] sm:$0xf0] }
 0x1ac   : > { %v1782_v47 = vpop.f32.mrf.mxu2  ;;  %v1447_v52 = vpop.f32.mrf.mxu0 }
 0x1ad   : > { %v1951_v48 = vpop.f32.mrf.mxu3  ;;  %v1783_v51 = vadd.f32 %v1782_v47, %v1614_v46  ;;  %v1616_v53 = vpop.f32.mrf.mxu1  ;;  %v2851_v46 = vor.u32 %v3280_v36, %v2848_v37  ;;  %v3289_v36 = vld [vmem:[%s3796_s7 + $0x2cc] sm:$0xf]  ;;  %v2888_v37 = vld [vmem:[%s3796_s7 + $0x2d8] sm:$0xf0] }
 0x1ae   : > { %v1617_v59 = vadd.f32 %v1616_v53, %v1447_v52  ;;  %v387_v52 = vld [vmem:[%s3806_s10 + $0xb8] sm:$0xff] }
 0x1af   : > { %v1952_v57 = vadd.f32 %v1951_v48, %v1783_v51  ;;  %1486 = vmatmul.bf16.gmra.mxu0 %v2815_v49  ;;  %v2859_v51 = vor.u32 %v3281_v40, %v2856_v41 }
 0x1b0   : > { %1655 = vmatmul.bf16.gmra.mxu1 %v2819_v50  ;;  %v2855_v50 = vor.u32 %v3283_v39, %v2854_v38 }
 0x1b1   : > { %v2083_v58 = vadd.f32 %v1952_v57, %v383_v56  ;;  %1824 = vmatmul.bf16.gmra.mxu2 %v2823_v54 }
 0x1b2   : > { %1993 = vmatmul.bf16.gmra.mxu3 %v2827_v55 }
 0x1b3   : > { %2147 = vst [vmem:[%s3806_s10 + $0x98] sm:$0xff] %v2083_v58 }
 0x1b4   : > { %v1785_v60 = vpop.f32.mrf.mxu2  ;;  %v1449_v63 = vpop.f32.mrf.mxu0 }
 0x1b5   : > { %v1954_v61 = vpop.f32.mrf.mxu3  ;;  %v1786_v62 = vadd.f32 %v1785_v60, %v1617_v59  ;;  %v1618_v0 = vpop.f32.mrf.mxu1 }
 0x1b6   : > { %v1619_v12 = vadd.f32 %v1618_v0, %v1449_v63  ;;  %v2862_v63 = vld [vmem:[%s3796_s7 + $0x2a0] sm:$0xf]  ;;  %v3286_v0 = vld [vmem:[%s3796_s7 + $0x2ac] sm:$0xf0] }
 0x1b7   : > { %v1955_v2 = vadd.f32 %v1954_v61, %v1786_v62  ;;  %v388_v61 = vld [vmem:[%s3806_s10 + $0xc0] sm:$0xff]  ;;  %v2863_v11 = vor.u32 %v3286_v0, %v2862_v63  ;;  %v2896_v63 = vld [vmem:[%s3796_s7 + $0x2f0] sm:$0xf0]  ;;  %v2902_v0 = vld [vmem:[%s3796_s7 + $0x2e8] sm:$0xf] }
 0x1b9   : > { %v2084_v5 = vadd.f32 %v1955_v2, %v384_v1  ;;  %v3284_v2 = vld [vmem:[%s3796_s7 + $0x2a4] sm:$0xf] }
 0x1bb   : > { %2148 = vst [vmem:[%s3806_s10 + $0xa0] sm:$0xff] %v2084_v5  ;;  %v3287_v5 = vld [vmem:[%s3796_s7 + $0x2b4] sm:$0xf0] }
 0x1bc   : > { %v1787_v13 = vpop.f32.mrf.mxu2  ;;  %v1452_v18 = vpop.f32.mrf.mxu0 }
 0x1bd   : > { %v1956_v14 = vpop.f32.mrf.mxu3  ;;  %v1788_v17 = vadd.f32 %v1787_v13, %v1619_v12  ;;  %v1621_v19 = vpop.f32.mrf.mxu1  ;;  %v2867_v12 = vor.u32 %v3284_v2, %v2864_v3  ;;  %v3293_v2 = vld [vmem:[%s3796_s7 + $0x2ec] sm:$0xf]  ;;  %v2904_v3 = vld [vmem:[%s3796_s7 + $0x2f8] sm:$0xf0] }
 0x1be   : > { %v1622_v25 = vadd.f32 %v1621_v19, %v1452_v18  ;;  %v389_v18 = vld [vmem:[%s3806_s10 + $0xc8] sm:$0xff] }
 0x1bf   : > { %v1957_v23 = vadd.f32 %v1956_v14, %v1788_v17  ;;  %1491 = vmatmul.bf16.gmra.mxu0 %v2831_v15  ;;  %v2875_v17 = vor.u32 %v3285_v6, %v2872_v7 }
 0x1c0   : > { %1660 = vmatmul.bf16.gmra.mxu1 %v2835_v16  ;;  %v2871_v16 = vor.u32 %v3287_v5, %v2870_v4 }
 0x1c1   : > { %v2085_v24 = vadd.f32 %v1957_v23, %v385_v22  ;;  %1829 = vmatmul.bf16.gmra.mxu2 %v2839_v20 }
 0x1c2   : > { %1998 = vmatmul.bf16.gmra.mxu3 %v2843_v21 }
 0x1c3   : > { %2149 = vst [vmem:[%s3806_s10 + $0xa8] sm:$0xff] %v2085_v24 }
 0x1c4   : > { %v1790_v26 = vpop.f32.mrf.mxu2  ;;  %v1454_v29 = vpop.f32.mrf.mxu0 }
 0x1c5   : > { %v1959_v27 = vpop.f32.mrf.mxu3  ;;  %v1791_v28 = vadd.f32 %v1790_v26, %v1622_v25  ;;  %v1623_v30 = vpop.f32.mrf.mxu1 }
 0x1c6   : > { %v1624_v42 = vadd.f32 %v1623_v30, %v1454_v29  ;;  %v2878_v29 = vld [vmem:[%s3796_s7 + $0x2c0] sm:$0xf]  ;;  %v3290_v30 = vld [vmem:[%s3796_s7 + $0x2cc] sm:$0xf0] }
 0x1c7   : > { %v1960_v32 = vadd.f32 %v1959_v27, %v1791_v28  ;;  %v390_v27 = vld [vmem:[%s3806_s10 + $0xd0] sm:$0xff]  ;;  %v2879_v41 = vor.u32 %v3290_v30, %v2878_v29  ;;  %v2918_v30 = vld [vmem:[%s3796_s7 + $0x308] sm:$0xf] }
 0x1c8   : > { %v2912_v29 = vld [vmem:[%s3796_s7 + $0x310] sm:$0xf0] }
 0x1c9   : > { %v2086_v35 = vadd.f32 %v1960_v32, %v386_v31  ;;  %v3288_v32 = vld [vmem:[%s3796_s7 + $0x2c4] sm:$0xf] }
 0x1cb   : > { %2150 = vst [vmem:[%s3806_s10 + $0xb0] sm:$0xff] %v2086_v35  ;;  %v3291_v35 = vld [vmem:[%s3796_s7 + $0x2d4] sm:$0xf0] }
 0x1cc   : > { %v1792_v43 = vpop.f32.mrf.mxu2  ;;  %v1457_v48 = vpop.f32.mrf.mxu0 }
 0x1cd   : > { %v1961_v44 = vpop.f32.mrf.mxu3  ;;  %v1793_v47 = vadd.f32 %v1792_v43, %v1624_v42  ;;  %v1626_v49 = vpop.f32.mrf.mxu1  ;;  %v2883_v42 = vor.u32 %v3288_v32, %v2880_v33  ;;  %v3297_v32 = vld [vmem:[%s3796_s7 + $0x30c] sm:$0xf]  ;;  %v2920_v33 = vld [vmem:[%s3796_s7 + $0x318] sm:$0xf0] }
 0x1ce   : > { %v1627_v55 = vadd.f32 %v1626_v49, %v1457_v48  ;;  %v391_v48 = vld [vmem:[%s3806_s10 + $0xd8] sm:$0xff] }
 0x1cf   : > { %v1962_v53 = vadd.f32 %v1961_v44, %v1793_v47  ;;  %1496 = vmatmul.bf16.gmra.mxu0 %v2847_v45  ;;  %v2891_v47 = vor.u32 %v3289_v36, %v2888_v37 }
 0x1d0   : > { %1665 = vmatmul.bf16.gmra.mxu1 %v2851_v46  ;;  %v2887_v46 = vor.u32 %v3291_v35, %v2886_v34 }
 0x1d1   : > { %v2087_v54 = vadd.f32 %v1962_v53, %v387_v52  ;;  %1834 = vmatmul.bf16.gmra.mxu2 %v2855_v50 }
 0x1d2   : > { %2003 = vmatmul.bf16.gmra.mxu3 %v2859_v51 }
 0x1d3   : > { %2151 = vst [vmem:[%s3806_s10 + $0xb8] sm:$0xff] %v2087_v54 }
 0x1d4   : > { %v1795_v56 = vpop.f32.mrf.mxu2  ;;  %v1459_v59 = vpop.f32.mrf.mxu0 }
 0x1d5   : > { %v1964_v57 = vpop.f32.mrf.mxu3  ;;  %v1796_v58 = vadd.f32 %v1795_v56, %v1627_v55  ;;  %v1628_v60 = vpop.f32.mrf.mxu1 }
 0x1d6   : > { %v1629_v8 = vadd.f32 %v1628_v60, %v1459_v59  ;;  %v2894_v59 = vld [vmem:[%s3796_s7 + $0x2e0] sm:$0xf]  ;;  %v3294_v60 = vld [vmem:[%s3796_s7 + $0x2ec] sm:$0xf0] }
 0x1d7   : > { %v1965_v62 = vadd.f32 %v1964_v57, %v1796_v58  ;;  %v392_v57 = vld [vmem:[%s3806_s10 + $0xe0] sm:$0xff]  ;;  %v2895_v7 = vor.u32 %v3294_v60, %v2894_v59  ;;  %v2928_v59 = vld [vmem:[%s3796_s7 + $0x330] sm:$0xf0]  ;;  %v2934_v60 = vld [vmem:[%s3796_s7 + $0x328] sm:$0xf] }
 0x1d9   : > { %v2088_v1 = vadd.f32 %v1965_v62, %v388_v61  ;;  %v3292_v62 = vld [vmem:[%s3796_s7 + $0x2e4] sm:$0xf] }
 0x1db   : > { %2152 = vst [vmem:[%s3806_s10 + $0xc0] sm:$0xff] %v2088_v1  ;;  %v3295_v1 = vld [vmem:[%s3796_s7 + $0x2f4] sm:$0xf0] }
 0x1dc   : > { %v1797_v9 = vpop.f32.mrf.mxu2  ;;  %v1462_v14 = vpop.f32.mrf.mxu0 }
 0x1dd   : > { %v1966_v10 = vpop.f32.mrf.mxu3  ;;  %v1798_v13 = vadd.f32 %v1797_v9, %v1629_v8  ;;  %v1631_v15 = vpop.f32.mrf.mxu1  ;;  %v2899_v8 = vor.u32 %v3292_v62, %v2896_v63  ;;  %v3301_v62 = vld [vmem:[%s3796_s7 + $0x32c] sm:$0xf]  ;;  %v2936_v63 = vld [vmem:[%s3796_s7 + $0x338] sm:$0xf0] }
 0x1de   : > { %v1632_v21 = vadd.f32 %v1631_v15, %v1462_v14  ;;  %v393_v14 = vld [vmem:[%s3806_s10 + $0xe8] sm:$0xff] }
 0x1df   : > { %v1967_v19 = vadd.f32 %v1966_v10, %v1798_v13  ;;  %1501 = vmatmul.bf16.gmra.mxu0 %v2863_v11  ;;  %v2907_v13 = vor.u32 %v3293_v2, %v2904_v3 }
 0x1e0   : > { %1670 = vmatmul.bf16.gmra.mxu1 %v2867_v12  ;;  %v2903_v12 = vor.u32 %v3295_v1, %v2902_v0 }
 0x1e1   : > { %v2089_v20 = vadd.f32 %v1967_v19, %v389_v18  ;;  %1839 = vmatmul.bf16.gmra.mxu2 %v2871_v16 }
 0x1e2   : > { %2008 = vmatmul.bf16.gmra.mxu3 %v2875_v17 }
 0x1e3   : > { %2153 = vst [vmem:[%s3806_s10 + $0xc8] sm:$0xff] %v2089_v20 }
 0x1e4   : > { %v1800_v22 = vpop.f32.mrf.mxu2  ;;  %v1464_v25 = vpop.f32.mrf.mxu0 }
 0x1e5   : > { %v1969_v23 = vpop.f32.mrf.mxu3  ;;  %v1801_v24 = vadd.f32 %v1800_v22, %v1632_v21  ;;  %v1633_v26 = vpop.f32.mrf.mxu1 }
 0x1e6   : > { %v1634_v38 = vadd.f32 %v1633_v26, %v1464_v25  ;;  %v2910_v25 = vld [vmem:[%s3796_s7 + $0x300] sm:$0xf]  ;;  %v3298_v26 = vld [vmem:[%s3796_s7 + $0x30c] sm:$0xf0] }
 0x1e7   : > { %v1970_v28 = vadd.f32 %v1969_v23, %v1801_v24  ;;  %v394_v23 = vld [vmem:[%s3806_s10 + $0xf0] sm:$0xff]  ;;  %v2911_v37 = vor.u32 %v3298_v26, %v2910_v25  ;;  %v2950_v26 = vld [vmem:[%s3796_s7 + $0x348] sm:$0xf] }
 0x1e8   : > { %v2944_v25 = vld [vmem:[%s3796_s7 + $0x350] sm:$0xf0] }
 0x1e9   : > { %v2090_v31 = vadd.f32 %v1970_v28, %v390_v27  ;;  %v3296_v28 = vld [vmem:[%s3796_s7 + $0x304] sm:$0xf] }
 0x1eb   : > { %2154 = vst [vmem:[%s3806_s10 + $0xd0] sm:$0xff] %v2090_v31  ;;  %v3299_v31 = vld [vmem:[%s3796_s7 + $0x314] sm:$0xf0] }
 0x1ec   : > { %v1802_v39 = vpop.f32.mrf.mxu2  ;;  %v1467_v44 = vpop.f32.mrf.mxu0 }
 0x1ed   : > { %v1971_v40 = vpop.f32.mrf.mxu3  ;;  %v1803_v43 = vadd.f32 %v1802_v39, %v1634_v38  ;;  %v1636_v45 = vpop.f32.mrf.mxu1  ;;  %v2915_v38 = vor.u32 %v3296_v28, %v2912_v29  ;;  %v3305_v28 = vld [vmem:[%s3796_s7 + $0x34c] sm:$0xf]  ;;  %v2952_v29 = vld [vmem:[%s3796_s7 + $0x358] sm:$0xf0] }
 0x1ee   : > { %v1637_v51 = vadd.f32 %v1636_v45, %v1467_v44  ;;  %v395_v44 = vld [vmem:[%s3806_s10 + $0xf8] sm:$0xff] }
 0x1ef   : > { %v1972_v49 = vadd.f32 %v1971_v40, %v1803_v43  ;;  %1506 = vmatmul.bf16.gmra.mxu0 %v2879_v41  ;;  %v2923_v43 = vor.u32 %v3297_v32, %v2920_v33 }
 0x1f0   : > { %1675 = vmatmul.bf16.gmra.mxu1 %v2883_v42  ;;  %v2919_v42 = vor.u32 %v3299_v31, %v2918_v30 }
 0x1f1   : > { %v2091_v50 = vadd.f32 %v1972_v49, %v391_v48  ;;  %1844 = vmatmul.bf16.gmra.mxu2 %v2887_v46 }
 0x1f2   : > { %2013 = vmatmul.bf16.gmra.mxu3 %v2891_v47 }
 0x1f3   : > { %2155 = vst [vmem:[%s3806_s10 + $0xd8] sm:$0xff] %v2091_v50 }
 0x1f4   : > { %v1805_v52 = vpop.f32.mrf.mxu2  ;;  %v1469_v55 = vpop.f32.mrf.mxu0 }
 0x1f5   : > { %v1974_v53 = vpop.f32.mrf.mxu3  ;;  %v1806_v54 = vadd.f32 %v1805_v52, %v1637_v51  ;;  %v1638_v56 = vpop.f32.mrf.mxu1 }
 0x1f6   : > { %v1639_v4 = vadd.f32 %v1638_v56, %v1469_v55  ;;  %v2926_v55 = vld [vmem:[%s3796_s7 + $0x320] sm:$0xf]  ;;  %v3302_v56 = vld [vmem:[%s3796_s7 + $0x32c] sm:$0xf0] }
 0x1f7   : > { %v1975_v58 = vadd.f32 %v1974_v53, %v1806_v54  ;;  %v396_v53 = vld [vmem:[%s3806_s10 + $0x100] sm:$0xff]  ;;  %v2927_v3 = vor.u32 %v3302_v56, %v2926_v55  ;;  %v2960_v55 = vld [vmem:[%s3796_s7 + $0x370] sm:$0xf0]  ;;  %v2966_v56 = vld [vmem:[%s3796_s7 + $0x368] sm:$0xf] }
 0x1f9   : > { %v2092_v61 = vadd.f32 %v1975_v58, %v392_v57  ;;  %v3300_v58 = vld [vmem:[%s3796_s7 + $0x324] sm:$0xf] }
 0x1fb   : > { %2156 = vst [vmem:[%s3806_s10 + $0xe0] sm:$0xff] %v2092_v61  ;;  %v3303_v61 = vld [vmem:[%s3796_s7 + $0x334] sm:$0xf0] }
 0x1fc   : > { %v1807_v5 = vpop.f32.mrf.mxu2  ;;  %v1472_v10 = vpop.f32.mrf.mxu0 }
 0x1fd   : > { %v1976_v6 = vpop.f32.mrf.mxu3  ;;  %v1808_v9 = vadd.f32 %v1807_v5, %v1639_v4  ;;  %v1641_v11 = vpop.f32.mrf.mxu1  ;;  %v2931_v4 = vor.u32 %v3300_v58, %v2928_v59  ;;  %v3309_v58 = vld [vmem:[%s3796_s7 + $0x36c] sm:$0xf]  ;;  %v2968_v59 = vld [vmem:[%s3796_s7 + $0x378] sm:$0xf0] }
 0x1fe   : > { %v1642_v17 = vadd.f32 %v1641_v11, %v1472_v10  ;;  %v397_v10 = vld [vmem:[%s3806_s10 + $0x108] sm:$0xff] }
 0x1ff   : > { %v1977_v15 = vadd.f32 %v1976_v6, %v1808_v9  ;;  %1511 = vmatmul.bf16.gmra.mxu0 %v2895_v7  ;;  %v2939_v9 = vor.u32 %v3301_v62, %v2936_v63 }
 0x200   : > { %1680 = vmatmul.bf16.gmra.mxu1 %v2899_v8  ;;  %v2935_v8 = vor.u32 %v3303_v61, %v2934_v60 }
 0x201   : > { %v2093_v16 = vadd.f32 %v1977_v15, %v393_v14  ;;  %1849 = vmatmul.bf16.gmra.mxu2 %v2903_v12 }
 0x202   : > { %2018 = vmatmul.bf16.gmra.mxu3 %v2907_v13 }
 0x203   : > { %2157 = vst [vmem:[%s3806_s10 + $0xe8] sm:$0xff] %v2093_v16 }
 0x204   : > { %v1810_v18 = vpop.f32.mrf.mxu2  ;;  %v1474_v21 = vpop.f32.mrf.mxu0 }
 0x205   : > { %v1979_v19 = vpop.f32.mrf.mxu3  ;;  %v1811_v20 = vadd.f32 %v1810_v18, %v1642_v17  ;;  %v1643_v22 = vpop.f32.mrf.mxu1 }
 0x206   : > { %v1644_v34 = vadd.f32 %v1643_v22, %v1474_v21  ;;  %v2942_v21 = vld [vmem:[%s3796_s7 + $0x340] sm:$0xf]  ;;  %v3306_v22 = vld [vmem:[%s3796_s7 + $0x34c] sm:$0xf0] }
 0x207   : > { %v1980_v24 = vadd.f32 %v1979_v19, %v1811_v20  ;;  %v398_v19 = vld [vmem:[%s3806_s10 + $0x110] sm:$0xff]  ;;  %v2943_v33 = vor.u32 %v3306_v22, %v2942_v21  ;;  %v2982_v22 = vld [vmem:[%s3796_s7 + $0x388] sm:$0xf] }
 0x208   : > { %v2976_v21 = vld [vmem:[%s3796_s7 + $0x390] sm:$0xf0] }
 0x209   : > { %v2094_v27 = vadd.f32 %v1980_v24, %v394_v23  ;;  %v3304_v24 = vld [vmem:[%s3796_s7 + $0x344] sm:$0xf] }
 0x20b   : > { %2158 = vst [vmem:[%s3806_s10 + $0xf0] sm:$0xff] %v2094_v27  ;;  %v3307_v27 = vld [vmem:[%s3796_s7 + $0x354] sm:$0xf0] }
 0x20c   : > { %v1812_v35 = vpop.f32.mrf.mxu2  ;;  %v1477_v40 = vpop.f32.mrf.mxu0 }
 0x20d   : > { %v1981_v36 = vpop.f32.mrf.mxu3  ;;  %v1813_v39 = vadd.f32 %v1812_v35, %v1644_v34  ;;  %v1646_v41 = vpop.f32.mrf.mxu1  ;;  %v2947_v34 = vor.u32 %v3304_v24, %v2944_v25  ;;  %v3313_v24 = vld [vmem:[%s3796_s7 + $0x38c] sm:$0xf]  ;;  %v2984_v25 = vld [vmem:[%s3796_s7 + $0x398] sm:$0xf0] }
 0x20e   : > { %v1647_v47 = vadd.f32 %v1646_v41, %v1477_v40  ;;  %v399_v40 = vld [vmem:[%s3806_s10 + $0x118] sm:$0xff] }
 0x20f   : > { %v1982_v45 = vadd.f32 %v1981_v36, %v1813_v39  ;;  %1516 = vmatmul.bf16.gmra.mxu0 %v2911_v37  ;;  %v2955_v39 = vor.u32 %v3305_v28, %v2952_v29 }
 0x210   : > { %1685 = vmatmul.bf16.gmra.mxu1 %v2915_v38  ;;  %v2951_v38 = vor.u32 %v3307_v27, %v2950_v26 }
 0x211   : > { %v2095_v46 = vadd.f32 %v1982_v45, %v395_v44  ;;  %1854 = vmatmul.bf16.gmra.mxu2 %v2919_v42 }
 0x212   : > { %2023 = vmatmul.bf16.gmra.mxu3 %v2923_v43 }
 0x213   : > { %2159 = vst [vmem:[%s3806_s10 + $0xf8] sm:$0xff] %v2095_v46 }
 0x214   : > { %v1815_v48 = vpop.f32.mrf.mxu2  ;;  %v1479_v51 = vpop.f32.mrf.mxu0 }
 0x215   : > { %v1984_v49 = vpop.f32.mrf.mxu3  ;;  %v1816_v50 = vadd.f32 %v1815_v48, %v1647_v47  ;;  %v1648_v52 = vpop.f32.mrf.mxu1 }
 0x216   : > { %v1649_v0 = vadd.f32 %v1648_v52, %v1479_v51  ;;  %v2958_v51 = vld [vmem:[%s3796_s7 + $0x360] sm:$0xf]  ;;  %v3310_v52 = vld [vmem:[%s3796_s7 + $0x36c] sm:$0xf0] }
 0x217   : > { %v1985_v54 = vadd.f32 %v1984_v49, %v1816_v50  ;;  %v400_v49 = vld [vmem:[%s3806_s10 + $0x120] sm:$0xff]  ;;  %v2959_v63 = vor.u32 %v3310_v52, %v2958_v51  ;;  %v2992_v51 = vld [vmem:[%s3796_s7 + $0x3b0] sm:$0xf0]  ;;  %v2998_v52 = vld [vmem:[%s3796_s7 + $0x3a8] sm:$0xf] }
 0x219   : > { %v2096_v57 = vadd.f32 %v1985_v54, %v396_v53  ;;  %v3308_v54 = vld [vmem:[%s3796_s7 + $0x364] sm:$0xf] }
 0x21b   : > { %2160 = vst [vmem:[%s3806_s10 + $0x100] sm:$0xff] %v2096_v57  ;;  %v3311_v57 = vld [vmem:[%s3796_s7 + $0x374] sm:$0xf0] }
 0x21c   : > { %v1817_v1 = vpop.f32.mrf.mxu2  ;;  %v1482_v6 = vpop.f32.mrf.mxu0 }
 0x21d   : > { %v1986_v2 = vpop.f32.mrf.mxu3  ;;  %v1818_v5 = vadd.f32 %v1817_v1, %v1649_v0  ;;  %v1651_v7 = vpop.f32.mrf.mxu1  ;;  %v2963_v0 = vor.u32 %v3308_v54, %v2960_v55  ;;  %v3317_v54 = vld [vmem:[%s3796_s7 + $0x3ac] sm:$0xf]  ;;  %v3000_v55 = vld [vmem:[%s3796_s7 + $0x3b8] sm:$0xf0] }
 0x21e   : > { %v1652_v13 = vadd.f32 %v1651_v7, %v1482_v6  ;;  %v401_v6 = vld [vmem:[%s3806_s10 + $0x128] sm:$0xff] }
 0x21f   : > { %v1987_v11 = vadd.f32 %v1986_v2, %v1818_v5  ;;  %1521 = vmatmul.bf16.gmra.mxu0 %v2927_v3  ;;  %v2971_v5 = vor.u32 %v3309_v58, %v2968_v59 }
 0x220   : > { %1690 = vmatmul.bf16.gmra.mxu1 %v2931_v4  ;;  %v2967_v4 = vor.u32 %v3311_v57, %v2966_v56 }
 0x221   : > { %v2097_v12 = vadd.f32 %v1987_v11, %v397_v10  ;;  %1859 = vmatmul.bf16.gmra.mxu2 %v2935_v8 }
 0x222   : > { %2028 = vmatmul.bf16.gmra.mxu3 %v2939_v9 }
 0x223   : > { %2161 = vst [vmem:[%s3806_s10 + $0x108] sm:$0xff] %v2097_v12 }
 0x224   : > { %v1820_v14 = vpop.f32.mrf.mxu2  ;;  %v1484_v17 = vpop.f32.mrf.mxu0 }
 0x225   : > { %v1989_v15 = vpop.f32.mrf.mxu3  ;;  %v1821_v16 = vadd.f32 %v1820_v14, %v1652_v13  ;;  %v1653_v18 = vpop.f32.mrf.mxu1 }
 0x226   : > { %v1654_v30 = vadd.f32 %v1653_v18, %v1484_v17  ;;  %v2974_v17 = vld [vmem:[%s3796_s7 + $0x380] sm:$0xf]  ;;  %v3314_v18 = vld [vmem:[%s3796_s7 + $0x38c] sm:$0xf0] }
 0x227   : > { %v1990_v20 = vadd.f32 %v1989_v15, %v1821_v16  ;;  %v402_v15 = vld [vmem:[%s3806_s10 + $0x130] sm:$0xff]  ;;  %v2975_v29 = vor.u32 %v3314_v18, %v2974_v17  ;;  %v3014_v18 = vld [vmem:[%s3796_s7 + $0x3c8] sm:$0xf] }
 0x228   : > { %v3008_v17 = vld [vmem:[%s3796_s7 + $0x3d0] sm:$0xf0] }
 0x229   : > { %v2098_v23 = vadd.f32 %v1990_v20, %v398_v19  ;;  %v3312_v20 = vld [vmem:[%s3796_s7 + $0x384] sm:$0xf] }
 0x22b   : > { %2162 = vst [vmem:[%s3806_s10 + $0x110] sm:$0xff] %v2098_v23  ;;  %v3315_v23 = vld [vmem:[%s3796_s7 + $0x394] sm:$0xf0] }
 0x22c   : > { %v1822_v31 = vpop.f32.mrf.mxu2  ;;  %v1487_v36 = vpop.f32.mrf.mxu0 }
 0x22d   : > { %v1991_v32 = vpop.f32.mrf.mxu3  ;;  %v1823_v35 = vadd.f32 %v1822_v31, %v1654_v30  ;;  %v1656_v37 = vpop.f32.mrf.mxu1  ;;  %v2979_v30 = vor.u32 %v3312_v20, %v2976_v21  ;;  %v3321_v20 = vld [vmem:[%s3796_s7 + $0x3cc] sm:$0xf]  ;;  %v3016_v21 = vld [vmem:[%s3796_s7 + $0x3d8] sm:$0xf0] }
 0x22e   : > { %v1657_v43 = vadd.f32 %v1656_v37, %v1487_v36  ;;  %v403_v36 = vld [vmem:[%s3806_s10 + $0x138] sm:$0xff] }
 0x22f   : > { %v1992_v41 = vadd.f32 %v1991_v32, %v1823_v35  ;;  %1526 = vmatmul.bf16.gmra.mxu0 %v2943_v33  ;;  %v2987_v35 = vor.u32 %v3313_v24, %v2984_v25 }
 0x230   : > { %1695 = vmatmul.bf16.gmra.mxu1 %v2947_v34  ;;  %v2983_v34 = vor.u32 %v3315_v23, %v2982_v22 }
 0x231   : > { %v2099_v42 = vadd.f32 %v1992_v41, %v399_v40  ;;  %1864 = vmatmul.bf16.gmra.mxu2 %v2951_v38 }
 0x232   : > { %2033 = vmatmul.bf16.gmra.mxu3 %v2955_v39 }
 0x233   : > { %2163 = vst [vmem:[%s3806_s10 + $0x118] sm:$0xff] %v2099_v42 }
 0x234   : > { %v1825_v44 = vpop.f32.mrf.mxu2  ;;  %v1489_v47 = vpop.f32.mrf.mxu0 }
 0x235   : > { %v1994_v45 = vpop.f32.mrf.mxu3  ;;  %v1826_v46 = vadd.f32 %v1825_v44, %v1657_v43  ;;  %v1658_v48 = vpop.f32.mrf.mxu1 }
 0x236   : > { %v1659_v60 = vadd.f32 %v1658_v48, %v1489_v47  ;;  %v2990_v47 = vld [vmem:[%s3796_s7 + $0x3a0] sm:$0xf]  ;;  %v3318_v48 = vld [vmem:[%s3796_s7 + $0x3ac] sm:$0xf0] }
 0x237   : > { %v1995_v50 = vadd.f32 %v1994_v45, %v1826_v46  ;;  %v404_v45 = vld [vmem:[%s3806_s10 + $0x140] sm:$0xff]  ;;  %v2991_v59 = vor.u32 %v3318_v48, %v2990_v47  ;;  %v3024_v47 = vld [vmem:[%s3796_s7 + $0x3f0] sm:$0xf0]  ;;  %v3030_v48 = vld [vmem:[%s3796_s7 + $0x3e8] sm:$0xf] }
 0x239   : > { %v2100_v53 = vadd.f32 %v1995_v50, %v400_v49  ;;  %v3316_v50 = vld [vmem:[%s3796_s7 + $0x3a4] sm:$0xf] }
 0x23b   : > { %2164 = vst [vmem:[%s3806_s10 + $0x120] sm:$0xff] %v2100_v53  ;;  %v3319_v53 = vld [vmem:[%s3796_s7 + $0x3b4] sm:$0xf0] }
 0x23c   : > { %v1827_v61 = vpop.f32.mrf.mxu2  ;;  %v1492_v2 = vpop.f32.mrf.mxu0 }
 0x23d   : > { %v1996_v62 = vpop.f32.mrf.mxu3  ;;  %v1828_v1 = vadd.f32 %v1827_v61, %v1659_v60  ;;  %v1661_v3 = vpop.f32.mrf.mxu1  ;;  %v2995_v60 = vor.u32 %v3316_v50, %v2992_v51  ;;  %v3325_v50 = vld [vmem:[%s3796_s7 + $0x3ec] sm:$0xf]  ;;  %v3032_v51 = vld [vmem:[%s3796_s7 + $0x3f8] sm:$0xf0] }
 0x23e   : > { %v1662_v9 = vadd.f32 %v1661_v3, %v1492_v2  ;;  %v405_v2 = vld [vmem:[%s3806_s10 + $0x148] sm:$0xff] }
 0x23f   : > { %v1997_v7 = vadd.f32 %v1996_v62, %v1828_v1  ;;  %1531 = vmatmul.bf16.gmra.mxu0 %v2959_v63  ;;  %v3003_v1 = vor.u32 %v3317_v54, %v3000_v55 }
 0x240   : > { %1700 = vmatmul.bf16.gmra.mxu1 %v2963_v0  ;;  %v2999_v0 = vor.u32 %v3319_v53, %v2998_v52 }
 0x241   : > { %v2101_v8 = vadd.f32 %v1997_v7, %v401_v6  ;;  %1869 = vmatmul.bf16.gmra.mxu2 %v2967_v4 }
 0x242   : > { %2038 = vmatmul.bf16.gmra.mxu3 %v2971_v5 }
 0x243   : > { %2165 = vst [vmem:[%s3806_s10 + $0x128] sm:$0xff] %v2101_v8 }
 0x244   : > { %v1830_v10 = vpop.f32.mrf.mxu2  ;;  %v1494_v13 = vpop.f32.mrf.mxu0 }
 0x245   : > { %v1999_v11 = vpop.f32.mrf.mxu3  ;;  %v1831_v12 = vadd.f32 %v1830_v10, %v1662_v9  ;;  %v1663_v14 = vpop.f32.mrf.mxu1 }
 0x246   : > { %v1664_v26 = vadd.f32 %v1663_v14, %v1494_v13  ;;  %v3006_v13 = vld [vmem:[%s3796_s7 + $0x3c0] sm:$0xf]  ;;  %v3322_v14 = vld [vmem:[%s3796_s7 + $0x3cc] sm:$0xf0] }
 0x247   : > { %v2000_v16 = vadd.f32 %v1999_v11, %v1831_v12  ;;  %v406_v11 = vld [vmem:[%s3806_s10 + $0x150] sm:$0xff]  ;;  %v3007_v25 = vor.u32 %v3322_v14, %v3006_v13 }
 0x249   : > { %v2102_v19 = vadd.f32 %v2000_v16, %v402_v15  ;;  %v3320_v16 = vld [vmem:[%s3796_s7 + $0x3c4] sm:$0xf] }
 0x24b   : > { %2166 = vst [vmem:[%s3806_s10 + $0x130] sm:$0xff] %v2102_v19  ;;  %v3323_v19 = vld [vmem:[%s3796_s7 + $0x3d4] sm:$0xf0] }
 0x24c   : > { %v1832_v27 = vpop.f32.mrf.mxu2  ;;  %v1497_v32 = vpop.f32.mrf.mxu0 }
 0x24d   : > { %v2001_v28 = vpop.f32.mrf.mxu3  ;;  %v1833_v31 = vadd.f32 %v1832_v27, %v1664_v26  ;;  %v1666_v33 = vpop.f32.mrf.mxu1  ;;  %v3011_v26 = vor.u32 %v3320_v16, %v3008_v17  ;;  %v411_v16 = vld [vmem:[%s3806_s10 + $0x178] sm:$0xff] }
 0x24e   : > { %v1667_v39 = vadd.f32 %v1666_v33, %v1497_v32  ;;  %v407_v32 = vld [vmem:[%s3806_s10 + $0x158] sm:$0xff] }
 0x24f   : > { %v2002_v37 = vadd.f32 %v2001_v28, %v1833_v31  ;;  %1536 = vmatmul.bf16.gmra.mxu0 %v2975_v29  ;;  %v3019_v31 = vor.u32 %v3321_v20, %v3016_v21 }
 0x250   : > { %1705 = vmatmul.bf16.gmra.mxu1 %v2979_v30  ;;  %v3015_v30 = vor.u32 %v3323_v19, %v3014_v18 }
 0x251   : > { %v2103_v38 = vadd.f32 %v2002_v37, %v403_v36  ;;  %1874 = vmatmul.bf16.gmra.mxu2 %v2983_v34 }
 0x252   : > { %2043 = vmatmul.bf16.gmra.mxu3 %v2987_v35 }
 0x253   : > { %2167 = vst [vmem:[%s3806_s10 + $0x138] sm:$0xff] %v2103_v38 }
 0x254   : > { %v1835_v40 = vpop.f32.mrf.mxu2  ;;  %v1499_v43 = vpop.f32.mrf.mxu0 }
 0x255   : > { %v2004_v41 = vpop.f32.mrf.mxu3  ;;  %v1836_v42 = vadd.f32 %v1835_v40, %v1667_v39  ;;  %v1668_v44 = vpop.f32.mrf.mxu1 }
 0x256   : > { %v1669_v56 = vadd.f32 %v1668_v44, %v1499_v43  ;;  %v3022_v43 = vld [vmem:[%s3796_s7 + $0x3e0] sm:$0xf]  ;;  %v3326_v44 = vld [vmem:[%s3796_s7 + $0x3ec] sm:$0xf0] }
 0x257   : > { %v2005_v46 = vadd.f32 %v2004_v41, %v1836_v42  ;;  %v408_v41 = vld [vmem:[%s3806_s10 + $0x160] sm:$0xff]  ;;  %v3023_v55 = vor.u32 %v3326_v44, %v3022_v43  ;;  %v414_v43 = vld [vmem:[%s3806_s10 + $0x190] sm:$0xff] }
 0x259   : > { %v2104_v49 = vadd.f32 %v2005_v46, %v404_v45  ;;  %v3324_v46 = vld [vmem:[%s3796_s7 + $0x3e4] sm:$0xf] }
 0x25b   : > { %2168 = vst [vmem:[%s3806_s10 + $0x140] sm:$0xff] %v2104_v49  ;;  %v3327_v49 = vld [vmem:[%s3796_s7 + $0x3f4] sm:$0xf0] }
 0x25c   : > { %v1837_v57 = vpop.f32.mrf.mxu2  ;;  %v1502_v62 = vpop.f32.mrf.mxu0 }
 0x25d   : > { %v2006_v58 = vpop.f32.mrf.mxu3  ;;  %v1838_v61 = vadd.f32 %v1837_v57, %v1669_v56  ;;  %v1671_v63 = vpop.f32.mrf.mxu1  ;;  %v3027_v56 = vor.u32 %v3324_v46, %v3024_v47 }
 0x25e   : > { %v1672_v5 = vadd.f32 %v1671_v63, %v1502_v62  ;;  %v409_v62 = vld [vmem:[%s3806_s10 + $0x168] sm:$0xff] }
 0x25f   : > { %v2007_v3 = vadd.f32 %v2006_v58, %v1838_v61  ;;  %1541 = vmatmul.bf16.gmra.mxu0 %v2991_v59  ;;  %v3035_v61 = vor.u32 %v3325_v50, %v3032_v51 }
 0x260   : > { %1710 = vmatmul.bf16.gmra.mxu1 %v2995_v60  ;;  %v3031_v60 = vor.u32 %v3327_v49, %v3030_v48 }
 0x261   : > { %v2105_v4 = vadd.f32 %v2007_v3, %v405_v2  ;;  %1879 = vmatmul.bf16.gmra.mxu2 %v2999_v0 }
 0x262   : > { %2048 = vmatmul.bf16.gmra.mxu3 %v3003_v1 }
 0x263   : > { %2169 = vst [vmem:[%s3806_s10 + $0x148] sm:$0xff] %v2105_v4 }
 0x264   : > { %v1840_v6 = vpop.f32.mrf.mxu2  ;;  %v1504_v9 = vpop.f32.mrf.mxu0 }
 0x265   : > { %v2009_v7 = vpop.f32.mrf.mxu3  ;;  %v1841_v8 = vadd.f32 %v1840_v6, %v1672_v5  ;;  %v1673_v10 = vpop.f32.mrf.mxu1 }
 0x266   : > { %v1674_v22 = vadd.f32 %v1673_v10, %v1504_v9 }
 0x267   : > { %v2010_v12 = vadd.f32 %v2009_v7, %v1841_v8  ;;  %v410_v7 = vld [vmem:[%s3806_s10 + $0x170] sm:$0xff] }
 0x269   : > { %v2106_v15 = vadd.f32 %v2010_v12, %v406_v11 }
 0x26b   : > { %2170 = vst [vmem:[%s3806_s10 + $0x150] sm:$0xff] %v2106_v15 }
 0x26c   : > { %v1842_v23 = vpop.f32.mrf.mxu2  ;;  %v1507_v28 = vpop.f32.mrf.mxu0 }
 0x26d   : > { %v2011_v24 = vpop.f32.mrf.mxu3  ;;  %v1843_v27 = vadd.f32 %v1842_v23, %v1674_v22  ;;  %v1676_v29 = vpop.f32.mrf.mxu1 }
 0x26e   : > { %v1677_v35 = vadd.f32 %v1676_v29, %v1507_v28 }
 0x26f   : > { %v2012_v33 = vadd.f32 %v2011_v24, %v1843_v27  ;;  %1546 = vmatmul.bf16.gmra.mxu0 %v3007_v25  ;;  %v412_v25 = vld [vmem:[%s3806_s10 + $0x180] sm:$0xff] }
 0x270   : > { %1715 = vmatmul.bf16.gmra.mxu1 %v3011_v26 }
 0x271   : > { %v2107_v34 = vadd.f32 %v2012_v33, %v407_v32  ;;  %1884 = vmatmul.bf16.gmra.mxu2 %v3015_v30 }
 0x272   : > { %2053 = vmatmul.bf16.gmra.mxu3 %v3019_v31 }
 0x273   : > { %2171 = vst [vmem:[%s3806_s10 + $0x158] sm:$0xff] %v2107_v34  ;;  %v413_v34 = vld [vmem:[%s3806_s10 + $0x188] sm:$0xff] }
 0x274   : > { %v1845_v36 = vpop.f32.mrf.mxu2  ;;  %v1509_v39 = vpop.f32.mrf.mxu0 }
 0x275   : > { %v2014_v37 = vpop.f32.mrf.mxu3  ;;  %v1846_v38 = vadd.f32 %v1845_v36, %v1677_v35  ;;  %v1678_v40 = vpop.f32.mrf.mxu1 }
 0x276   : > { %v1679_v52 = vadd.f32 %v1678_v40, %v1509_v39 }
 0x277   : > { %v2015_v42 = vadd.f32 %v2014_v37, %v1846_v38 }
 0x279   : > { %v2108_v45 = vadd.f32 %v2015_v42, %v408_v41 }
 0x27b   : > { %2172 = vst [vmem:[%s3806_s10 + $0x160] sm:$0xff] %v2108_v45 }
 0x27c   : > { %v1847_v53 = vpop.f32.mrf.mxu2  ;;  %v1512_v58 = vpop.f32.mrf.mxu0 }
 0x27d   : > { %v2016_v54 = vpop.f32.mrf.mxu3  ;;  %v1848_v57 = vadd.f32 %v1847_v53, %v1679_v52  ;;  %v1681_v59 = vpop.f32.mrf.mxu1  ;;  %v415_v52 = vld [vmem:[%s3806_s10 + $0x198] sm:$0xff] }
 0x27e   : > { %v1682_v1 = vadd.f32 %v1681_v59, %v1512_v58 }
 0x27f   : > { %v2017_v63 = vadd.f32 %v2016_v54, %v1848_v57  ;;  %1551 = vmatmul.bf16.gmra.mxu0 %v3023_v55 }
 0x280   : > { %1720 = vmatmul.bf16.gmra.mxu1 %v3027_v56 }
 0x281   : > { %v2109_v0 = vadd.f32 %v2017_v63, %v409_v62  ;;  %1889 = vmatmul.bf16.gmra.mxu2 %v3031_v60 }
 0x282   : > { %2058 = vmatmul.bf16.gmra.mxu3 %v3035_v61  ;;  %v416_v61 = vld [vmem:[%s3806_s10 + $0x1a0] sm:$0xff] }
 0x283   : > { %2173 = vst [vmem:[%s3806_s10 + $0x168] sm:$0xff] %v2109_v0 }
 0x284   : > { %v1850_v2 = vpop.f32.mrf.mxu2  ;;  %v1514_v5 = vpop.f32.mrf.mxu0 }
 0x285   : > { %v2019_v3 = vpop.f32.mrf.mxu3  ;;  %v1851_v4 = vadd.f32 %v1850_v2, %v1682_v1  ;;  %v1683_v6 = vpop.f32.mrf.mxu1 }
 0x286   : > { %v1684_v10 = vadd.f32 %v1683_v6, %v1514_v5  ;;  %v417_v6 = vld [vmem:[%s3806_s10 + $0x1a8] sm:$0xff] }
 0x287   : > { %v2020_v8 = vadd.f32 %v2019_v3, %v1851_v4 }
 0x289   : > { %v2110_v9 = vadd.f32 %v2020_v8, %v410_v7 }
 0x28b   : > { %2174 = vst [vmem:[%s3806_s10 + $0x170] sm:$0xff] %v2110_v9 }
 0x28c   : > { %v1852_v11 = vpop.f32.mrf.mxu2  ;;  %v1517_v14 = vpop.f32.mrf.mxu0 }
 0x28d   : > { %v2021_v12 = vpop.f32.mrf.mxu3  ;;  %v1853_v13 = vadd.f32 %v1852_v11, %v1684_v10  ;;  %v1686_v15 = vpop.f32.mrf.mxu1 }
 0x28e   : > { %v1687_v19 = vadd.f32 %v1686_v15, %v1517_v14  ;;  %v418_v15 = vld [vmem:[%s3806_s10 + $0x1b0] sm:$0xff] }
 0x28f   : > { %v2022_v17 = vadd.f32 %v2021_v12, %v1853_v13 }
 0x291   : > { %v2111_v18 = vadd.f32 %v2022_v17, %v411_v16 }
 0x293   : > { %2175 = vst [vmem:[%s3806_s10 + $0x178] sm:$0xff] %v2111_v18 }
 0x294   : > { %v1855_v20 = vpop.f32.mrf.mxu2  ;;  %v1519_v23 = vpop.f32.mrf.mxu0 }
 0x295   : > { %v2024_v21 = vpop.f32.mrf.mxu3  ;;  %v1856_v22 = vadd.f32 %v1855_v20, %v1687_v19  ;;  %v1688_v24 = vpop.f32.mrf.mxu1 }
 0x296   : > { %v1689_v28 = vadd.f32 %v1688_v24, %v1519_v23  ;;  %v419_v24 = vld [vmem:[%s3806_s10 + $0x1b8] sm:$0xff] }
 0x297   : > { %v2025_v26 = vadd.f32 %v2024_v21, %v1856_v22 }
 0x299   : > { %v2112_v27 = vadd.f32 %v2025_v26, %v412_v25 }
 0x29b   : > { %2176 = vst [vmem:[%s3806_s10 + $0x180] sm:$0xff] %v2112_v27 }
 0x29c   : > { %v1857_v29 = vpop.f32.mrf.mxu2  ;;  %v1522_v32 = vpop.f32.mrf.mxu0 }
 0x29d   : > { %v2026_v30 = vpop.f32.mrf.mxu3  ;;  %v1858_v31 = vadd.f32 %v1857_v29, %v1689_v28  ;;  %v1691_v33 = vpop.f32.mrf.mxu1 }
 0x29e   : > { %v1692_v37 = vadd.f32 %v1691_v33, %v1522_v32  ;;  %v420_v33 = vld [vmem:[%s3806_s10 + $0x1c0] sm:$0xff] }
 0x29f   : > { %v2027_v35 = vadd.f32 %v2026_v30, %v1858_v31 }
 0x2a1   : > { %v2113_v36 = vadd.f32 %v2027_v35, %v413_v34 }
 0x2a3   : > { %2177 = vst [vmem:[%s3806_s10 + $0x188] sm:$0xff] %v2113_v36 }
 0x2a4   : > { %v1860_v38 = vpop.f32.mrf.mxu2  ;;  %v1524_v41 = vpop.f32.mrf.mxu0 }
 0x2a5   : > { %v2029_v39 = vpop.f32.mrf.mxu3  ;;  %v1861_v40 = vadd.f32 %v1860_v38, %v1692_v37  ;;  %v1693_v42 = vpop.f32.mrf.mxu1 }
 0x2a6   : > { %v1694_v46 = vadd.f32 %v1693_v42, %v1524_v41  ;;  %v421_v42 = vld [vmem:[%s3806_s10 + $0x1c8] sm:$0xff] }
 0x2a7   : > { %v2030_v44 = vadd.f32 %v2029_v39, %v1861_v40 }
 0x2a9   : > { %v2114_v45 = vadd.f32 %v2030_v44, %v414_v43 }
 0x2ab   : > { %2178 = vst [vmem:[%s3806_s10 + $0x190] sm:$0xff] %v2114_v45 }
 0x2ac   : > { %v1862_v47 = vpop.f32.mrf.mxu2  ;;  %v1527_v50 = vpop.f32.mrf.mxu0 }
 0x2ad   : > { %v2031_v48 = vpop.f32.mrf.mxu3  ;;  %v1863_v49 = vadd.f32 %v1862_v47, %v1694_v46  ;;  %v1696_v51 = vpop.f32.mrf.mxu1 }
 0x2ae   : > { %v1697_v55 = vadd.f32 %v1696_v51, %v1527_v50  ;;  %v422_v51 = vld [vmem:[%s3806_s10 + $0x1d0] sm:$0xff] }
 0x2af   : > { %v2032_v53 = vadd.f32 %v2031_v48, %v1863_v49 }
 0x2b1   : > { %v2115_v54 = vadd.f32 %v2032_v53, %v415_v52 }
 0x2b3   : > { %2179 = vst [vmem:[%s3806_s10 + $0x198] sm:$0xff] %v2115_v54 }
 0x2b4   : > { %v1865_v56 = vpop.f32.mrf.mxu2  ;;  %v1529_v59 = vpop.f32.mrf.mxu0 }
 0x2b5   : > { %v2034_v57 = vpop.f32.mrf.mxu3  ;;  %v1866_v58 = vadd.f32 %v1865_v56, %v1697_v55  ;;  %v1698_v60 = vpop.f32.mrf.mxu1 }
 0x2b6   : > { %v1699_v0 = vadd.f32 %v1698_v60, %v1529_v59  ;;  %v423_v60 = vld [vmem:[%s3806_s10 + $0x1d8] sm:$0xff] }
 0x2b7   : > { %v2035_v62 = vadd.f32 %v2034_v57, %v1866_v58 }
 0x2b9   : > { %v2116_v63 = vadd.f32 %v2035_v62, %v416_v61 }
 0x2bb   : > { %2180 = vst [vmem:[%s3806_s10 + $0x1a0] sm:$0xff] %v2116_v63 }
 0x2bc   : > { %v1867_v1 = vpop.f32.mrf.mxu2  ;;  %v1532_v4 = vpop.f32.mrf.mxu0 }
 0x2bd   : > { %v2036_v2 = vpop.f32.mrf.mxu3  ;;  %v1868_v3 = vadd.f32 %v1867_v1, %v1699_v0  ;;  %v1701_v5 = vpop.f32.mrf.mxu1 }
 0x2be   : > { %v1702_v9 = vadd.f32 %v1701_v5, %v1532_v4  ;;  %v424_v5 = vld [vmem:[%s3806_s10 + $0x1e0] sm:$0xff] }
 0x2bf   : > { %v2037_v7 = vadd.f32 %v2036_v2, %v1868_v3 }
 0x2c1   : > { %v2117_v8 = vadd.f32 %v2037_v7, %v417_v6 }
 0x2c3   : > { %2181 = vst [vmem:[%s3806_s10 + $0x1a8] sm:$0xff] %v2117_v8 }
 0x2c4   : > { %v1870_v10 = vpop.f32.mrf.mxu2  ;;  %v1534_v13 = vpop.f32.mrf.mxu0 }
 0x2c5   : > { %v2039_v11 = vpop.f32.mrf.mxu3  ;;  %v1871_v12 = vadd.f32 %v1870_v10, %v1702_v9  ;;  %v1703_v14 = vpop.f32.mrf.mxu1 }
 0x2c6   : > { %v1704_v18 = vadd.f32 %v1703_v14, %v1534_v13 }
 0x2c7   : > { %v2040_v16 = vadd.f32 %v2039_v11, %v1871_v12  ;;  %v425_v12 = vld [vmem:[%s3806_s10 + $0x1e8] sm:$0xff] }
 0x2c9   : > { %v2118_v17 = vadd.f32 %v2040_v16, %v418_v15 }
 0x2cb   : > { %2182 = vst [vmem:[%s3806_s10 + $0x1b0] sm:$0xff] %v2118_v17 }
 0x2cc   : > { %v1872_v19 = vpop.f32.mrf.mxu2  ;;  %v1537_v22 = vpop.f32.mrf.mxu0 }
 0x2cd   : > { %v2041_v20 = vpop.f32.mrf.mxu3  ;;  %v1873_v21 = vadd.f32 %v1872_v19, %v1704_v18  ;;  %v1706_v23 = vpop.f32.mrf.mxu1 }
 0x2ce   : > { %v1707_v27 = vadd.f32 %v1706_v23, %v1537_v22 }
 0x2cf   : > { %v2042_v25 = vadd.f32 %v2041_v20, %v1873_v21  ;;  %v426_v21 = vld [vmem:[%s3806_s10 + $0x1f0] sm:$0xff] }
 0x2d1   : > { %v2119_v26 = vadd.f32 %v2042_v25, %v419_v24 }
 0x2d3   : > { %2183 = vst [vmem:[%s3806_s10 + $0x1b8] sm:$0xff] %v2119_v26 }
 0x2d4   : > { %v1875_v28 = vpop.f32.mrf.mxu2  ;;  %v1539_v31 = vpop.f32.mrf.mxu0 }
 0x2d5   : > { %v2044_v29 = vpop.f32.mrf.mxu3  ;;  %v1876_v30 = vadd.f32 %v1875_v28, %v1707_v27  ;;  %v1708_v32 = vpop.f32.mrf.mxu1 }
 0x2d6   : > { %v1709_v36 = vadd.f32 %v1708_v32, %v1539_v31 }
 0x2d7   : > { %v2045_v34 = vadd.f32 %v2044_v29, %v1876_v30  ;;  %v427_v29 = vld [vmem:[%s3806_s10 + $0x1f8] sm:$0xff] }
 0x2d9   : > { %v2120_v35 = vadd.f32 %v2045_v34, %v420_v33 }
 0x2db   : > { %2184 = vst [vmem:[%s3806_s10 + $0x1c0] sm:$0xff] %v2120_v35 }
 0x2dc   : > { %v1877_v37 = vpop.f32.mrf.mxu2  ;;  %v1542_v40 = vpop.f32.mrf.mxu0 }
 0x2dd   : > { %v2046_v38 = vpop.f32.mrf.mxu3  ;;  %v1878_v39 = vadd.f32 %v1877_v37, %v1709_v36  ;;  %v1711_v41 = vpop.f32.mrf.mxu1 }
 0x2de   : > { %v1712_v45 = vadd.f32 %v1711_v41, %v1542_v40 }
 0x2df   : > { %v2047_v43 = vadd.f32 %v2046_v38, %v1878_v39 }
 0x2e1   : > { %v2121_v44 = vadd.f32 %v2047_v43, %v421_v42 }
 0x2e3   : > { %2185 = vst [vmem:[%s3806_s10 + $0x1c8] sm:$0xff] %v2121_v44 }
 0x2e4   : > { %v1880_v46 = vpop.f32.mrf.mxu2  ;;  %v1544_v49 = vpop.f32.mrf.mxu0 }
 0x2e5   : > { %v2049_v47 = vpop.f32.mrf.mxu3  ;;  %v1881_v48 = vadd.f32 %v1880_v46, %v1712_v45  ;;  %v1713_v50 = vpop.f32.mrf.mxu1 }
 0x2e6   : > { %v1714_v54 = vadd.f32 %v1713_v50, %v1544_v49 }
 0x2e7   : > { %v2050_v52 = vadd.f32 %v2049_v47, %v1881_v48 }
 0x2e9   : > { %v2122_v53 = vadd.f32 %v2050_v52, %v422_v51 }
 0x2eb   : > { %2186 = vst [vmem:[%s3806_s10 + $0x1d0] sm:$0xff] %v2122_v53 }
 0x2ec   : > { %v1882_v55 = vpop.f32.mrf.mxu2  ;;  %v1547_v58 = vpop.f32.mrf.mxu0 }
 0x2ed   : > { %v2051_v56 = vpop.f32.mrf.mxu3  ;;  %v1883_v57 = vadd.f32 %v1882_v55, %v1714_v54  ;;  %v1716_v59 = vpop.f32.mrf.mxu1 }
 0x2ee   : > { %v1717_v63 = vadd.f32 %v1716_v59, %v1547_v58 }
 0x2ef   : > { %v2052_v61 = vadd.f32 %v2051_v56, %v1883_v57 }
 0x2f1   : > { %v2123_v62 = vadd.f32 %v2052_v61, %v423_v60 }
 0x2f3   : > { %2187 = vst [vmem:[%s3806_s10 + $0x1d8] sm:$0xff] %v2123_v62 }
 0x2f4   : > { %v1885_v0 = vpop.f32.mrf.mxu2  ;;  %v1549_v3 = vpop.f32.mrf.mxu0 }
 0x2f5   : > { %v2054_v1 = vpop.f32.mrf.mxu3  ;;  %v1886_v2 = vadd.f32 %v1885_v0, %v1717_v63  ;;  %v1718_v4 = vpop.f32.mrf.mxu1 }
 0x2f6   : > { %v1719_v8 = vadd.f32 %v1718_v4, %v1549_v3 }
 0x2f7   : > { %v2055_v6 = vadd.f32 %v2054_v1, %v1886_v2 }
 0x2f9   : > { %v2124_v7 = vadd.f32 %v2055_v6, %v424_v5 }
 0x2fb   : > { %2188 = vst [vmem:[%s3806_s10 + $0x1e0] sm:$0xff] %v2124_v7 }
 0x2fc   : > { %v1887_v9 = vpop.f32.mrf.mxu2  ;;  %v1552_v13 = vpop.f32.mrf.mxu0 }
 0x2fd   : > { %v2056_v10 = vpop.f32.mrf.mxu3  ;;  %v1888_v11 = vadd.f32 %v1887_v9, %v1719_v8  ;;  %v1721_v14 = vpop.f32.mrf.mxu1 }
 0x2fe   : > { %v1722_v17 = vadd.f32 %v1721_v14, %v1552_v13 }
 0x2ff   : > { %v2057_v15 = vadd.f32 %v2056_v10, %v1888_v11 }
 0x301   : > { %v2125_v16 = vadd.f32 %v2057_v15, %v425_v12 }
 0x303   : > { %2189 = vst [vmem:[%s3806_s10 + $0x1e8] sm:$0xff] %v2125_v16 }
 0x304   : > { %v1890_v18 = vpop.f32.mrf.mxu2  ;;  %v1554_v23 = vpop.f32.mrf.mxu0 }
 0x305   : > { %v2059_v19 = vpop.f32.mrf.mxu3  ;;  %v1891_v20 = vadd.f32 %v1890_v18, %v1722_v17  ;;  %v1723_v24 = vpop.f32.mrf.mxu1 }
 0x306   : > { %v1724_v26 = vadd.f32 %v1723_v24, %v1554_v23 }
 0x307   : > { %v2060_v22 = vadd.f32 %v2059_v19, %v1891_v20 }
 0x309   : > { %v2126_v25 = vadd.f32 %v2060_v22, %v426_v21 }
 0x30b   : > { %2190 = vst [vmem:[%s3806_s10 + $0x1f0] sm:$0xff] %v2126_v25 }
 0x30c   : > { %v1892_v27 = vpop.f32.mrf.mxu2 }
 0x30d   : > { %v1893_v28 = vadd.f32 %v1892_v27, %v1724_v26  ;;  %v2061_v30 = vpop.f32.mrf.mxu3 }
 0x30f   : > { %v2062_v31 = vadd.f32 %v2061_v30, %v1893_v28  ;;  %2195 = sbr.rel (%p3164_p2) target bundleno = 823 (0x337), region = 40 }
 0x311   : > { %v2127_v32 = vadd.f32 %v2062_v31, %v427_v29 }
 0x313   : > { %2191 = vst [vmem:[%s3806_s10 + $0x1f8] sm:$0xff] %v2127_v32 }
 0x314   : > { %v2196_v33 = vld [vmem:[%s3806_s10] sm:$0xff]  ;;  %v2197_v34 = vld [vmem:[%s3806_s10 + $0x8] sm:$0xff]  ;;  %v2198_v35 = vld [vmem:[%s3806_s10 + $0x10] sm:$0xff] }
 0x315   : > { %v3331_v36 = vpack.c.bf16 %v2197_v34, %v2196_v33  ;;  %v2199_v37 = vld [vmem:[%s3806_s10 + $0x18] sm:$0xff]  ;;  %v2200_v38 = vld [vmem:[%s3806_s10 + $0x20] sm:$0xff]  ;;  %v2201_v39 = vld [vmem:[%s3806_s10 + $0x28] sm:$0xff] }
 0x316   : > { %v3336_v40 = vpack.c.bf16 %v2199_v37, %v2198_v35  ;;  %v3341_v41 = vpack.c.bf16 %v2201_v39, %v2200_v38  ;;  %v2202_v42 = vld [vmem:[%s3806_s10 + $0x30] sm:$0xff]  ;;  %v2203_v43 = vld [vmem:[%s3806_s10 + $0x38] sm:$0xff]  ;;  %v2204_v44 = vld [vmem:[%s3806_s10 + $0x40] sm:$0xff] }
 0x317   : > { %3332 = vst [vmem:[%s3811_s20] sm:$0xff] %v3331_v36   ;;  %v3346_v45 = vpack.c.bf16 %v2203_v43, %v2202_v42  ;;  %v2205_v46 = vld [vmem:[%s3806_s10 + $0x48] sm:$0xff]  ;;  %v2206_v47 = vld [vmem:[%s3806_s10 + $0x50] sm:$0xff]  ;;  %v2207_v48 = vld [vmem:[%s3806_s10 + $0x58] sm:$0xff] }
 0x318   : > { %3488 = vst [vmem:[%s3811_s20 + $0x8] sm:$0xff] %v3336_v40   ;;  %v3351_v49 = vpack.c.bf16 %v2205_v46, %v2204_v44  ;;  %v3356_v50 = vpack.c.bf16 %v2207_v48, %v2206_v47  ;;  %v2208_v51 = vld [vmem:[%s3806_s10 + $0x60] sm:$0xff]  ;;  %v2209_v52 = vld [vmem:[%s3806_s10 + $0x68] sm:$0xff]  ;;  %v2210_v53 = vld [vmem:[%s3806_s10 + $0x70] sm:$0xff] }
 0x319   : > { %3489 = vst [vmem:[%s3811_s20 + $0x10] sm:$0xff] %v3341_v41   ;;  %v3361_v54 = vpack.c.bf16 %v2209_v52, %v2208_v51  ;;  %v2211_v55 = vld [vmem:[%s3806_s10 + $0x78] sm:$0xff]  ;;  %v2212_v56 = vld [vmem:[%s3806_s10 + $0x80] sm:$0xff]  ;;  %v2213_v57 = vld [vmem:[%s3806_s10 + $0x88] sm:$0xff] }
 0x31a   : > { %3490 = vst [vmem:[%s3811_s20 + $0x18] sm:$0xff] %v3346_v45   ;;  %v3366_v58 = vpack.c.bf16 %v2211_v55, %v2210_v53  ;;  %v2214_v59 = vld [vmem:[%s3806_s10 + $0x90] sm:$0xff]  ;;  %v2215_v60 = vld [vmem:[%s3806_s10 + $0x98] sm:$0xff]  ;;  %v2216_v61 = vld [vmem:[%s3806_s10 + $0xa0] sm:$0xff]  ;;  %v3371_v62 = vpack.c.bf16 %v2213_v57, %v2212_v56 }
 0x31b   : > { %3491 = vst [vmem:[%s3811_s20 + $0x20] sm:$0xff] %v3351_v49   ;;  %v2217_v63 = vld [vmem:[%s3806_s10 + $0xa8] sm:$0xff]  ;;  %v2218_v0 = vld [vmem:[%s3806_s10 + $0xb0] sm:$0xff]  ;;  %v2219_v1 = vld [vmem:[%s3806_s10 + $0xb8] sm:$0xff]  ;;  %v3376_v2 = vpack.c.bf16 %v2215_v60, %v2214_v59 }
 0x31c   : > { %3492 = vst [vmem:[%s3811_s20 + $0x28] sm:$0xff] %v3356_v50   ;;  %v2220_v3 = vld [vmem:[%s3806_s10 + $0xc0] sm:$0xff]  ;;  %v2221_v4 = vld [vmem:[%s3806_s10 + $0xc8] sm:$0xff]  ;;  %v3381_v5 = vpack.c.bf16 %v2217_v63, %v2216_v61  ;;  %v2222_v6 = vld [vmem:[%s3806_s10 + $0xd0] sm:$0xff]  ;;  %v3386_v8 = vpack.c.bf16 %v2219_v1, %v2218_v0 }
 0x31d   : > { %3493 = vst [vmem:[%s3811_s20 + $0x30] sm:$0xff] %v3361_v54   ;;  %v2223_v7 = vld [vmem:[%s3806_s10 + $0xd8] sm:$0xff]  ;;  %v2224_v9 = vld [vmem:[%s3806_s10 + $0xe0] sm:$0xff]  ;;  %v2225_v10 = vld [vmem:[%s3806_s10 + $0xe8] sm:$0xff]  ;;  %v3391_v11 = vpack.c.bf16 %v2221_v4, %v2220_v3 }
 0x31e   : > { %3494 = vst [vmem:[%s3811_s20 + $0x38] sm:$0xff] %v3366_v58   ;;  %v2226_v12 = vld [vmem:[%s3806_s10 + $0xf0] sm:$0xff]  ;;  %v2227_v13 = vld [vmem:[%s3806_s10 + $0xf8] sm:$0xff]  ;;  %v3396_v14 = vpack.c.bf16 %v2223_v7, %v2222_v6  ;;  %v2228_v15 = vld [vmem:[%s3806_s10 + $0x100] sm:$0xff]  ;;  %v3401_v17 = vpack.c.bf16 %v2225_v10, %v2224_v9 }
 0x31f   : > { %3495 = vst [vmem:[%s3811_s20 + $0x40] sm:$0xff] %v3371_v62   ;;  %v2229_v16 = vld [vmem:[%s3806_s10 + $0x108] sm:$0xff]  ;;  %v2230_v18 = vld [vmem:[%s3806_s10 + $0x110] sm:$0xff]  ;;  %v2231_v19 = vld [vmem:[%s3806_s10 + $0x118] sm:$0xff]  ;;  %v3406_v20 = vpack.c.bf16 %v2227_v13, %v2226_v12 }
 0x320   : > { %3496 = vst [vmem:[%s3811_s20 + $0x48] sm:$0xff] %v3376_v2   ;;  %v2232_v21 = vld [vmem:[%s3806_s10 + $0x120] sm:$0xff]  ;;  %v2233_v22 = vld [vmem:[%s3806_s10 + $0x128] sm:$0xff]  ;;  %v3411_v23 = vpack.c.bf16 %v2229_v16, %v2228_v15  ;;  %v2234_v24 = vld [vmem:[%s3806_s10 + $0x130] sm:$0xff]  ;;  %v3416_v26 = vpack.c.bf16 %v2231_v19, %v2230_v18 }
 0x321   : > { %3497 = vst [vmem:[%s3811_s20 + $0x50] sm:$0xff] %v3381_v5   ;;  %v2235_v25 = vld [vmem:[%s3806_s10 + $0x138] sm:$0xff]  ;;  %v2236_v27 = vld [vmem:[%s3806_s10 + $0x140] sm:$0xff]  ;;  %v2237_v28 = vld [vmem:[%s3806_s10 + $0x148] sm:$0xff]  ;;  %v3421_v29 = vpack.c.bf16 %v2233_v22, %v2232_v21 }
 0x322   : > { %3498 = vst [vmem:[%s3811_s20 + $0x58] sm:$0xff] %v3386_v8   ;;  %v2238_v30 = vld [vmem:[%s3806_s10 + $0x150] sm:$0xff]  ;;  %v2239_v31 = vld [vmem:[%s3806_s10 + $0x158] sm:$0xff]  ;;  %v3426_v32 = vpack.c.bf16 %v2235_v25, %v2234_v24  ;;  %v2240_v33 = vld [vmem:[%s3806_s10 + $0x160] sm:$0xff]  ;;  %v3431_v35 = vpack.c.bf16 %v2237_v28, %v2236_v27 }
 0x323   : > { %3499 = vst [vmem:[%s3811_s20 + $0x60] sm:$0xff] %v3391_v11   ;;  %v2241_v34 = vld [vmem:[%s3806_s10 + $0x168] sm:$0xff]  ;;  %v2242_v36 = vld [vmem:[%s3806_s10 + $0x170] sm:$0xff]  ;;  %v2243_v37 = vld [vmem:[%s3806_s10 + $0x178] sm:$0xff]  ;;  %v3436_v38 = vpack.c.bf16 %v2239_v31, %v2238_v30 }
 0x324   : > { %3500 = vst [vmem:[%s3811_s20 + $0x68] sm:$0xff] %v3396_v14   ;;  %v2244_v39 = vld [vmem:[%s3806_s10 + $0x180] sm:$0xff]  ;;  %v2245_v40 = vld [vmem:[%s3806_s10 + $0x188] sm:$0xff]  ;;  %v3441_v41 = vpack.c.bf16 %v2241_v34, %v2240_v33  ;;  %v2246_v42 = vld [vmem:[%s3806_s10 + $0x190] sm:$0xff]  ;;  %v3446_v44 = vpack.c.bf16 %v2243_v37, %v2242_v36 }
 0x325   : > { %3501 = vst [vmem:[%s3811_s20 + $0x70] sm:$0xff] %v3401_v17   ;;  %v2247_v43 = vld [vmem:[%s3806_s10 + $0x198] sm:$0xff]  ;;  %v2248_v45 = vld [vmem:[%s3806_s10 + $0x1a0] sm:$0xff]  ;;  %v2249_v46 = vld [vmem:[%s3806_s10 + $0x1a8] sm:$0xff]  ;;  %v3451_v47 = vpack.c.bf16 %v2245_v40, %v2244_v39 }
 0x326   : > { %3502 = vst [vmem:[%s3811_s20 + $0x78] sm:$0xff] %v3406_v20   ;;  %v2250_v48 = vld [vmem:[%s3806_s10 + $0x1b0] sm:$0xff]  ;;  %v2251_v49 = vld [vmem:[%s3806_s10 + $0x1b8] sm:$0xff]  ;;  %v3456_v50 = vpack.c.bf16 %v2247_v43, %v2246_v42  ;;  %v2252_v51 = vld [vmem:[%s3806_s10 + $0x1c0] sm:$0xff]  ;;  %v3461_v53 = vpack.c.bf16 %v2249_v46, %v2248_v45 }
 0x327   : > { %3503 = vst [vmem:[%s3811_s20 + $0x80] sm:$0xff] %v3411_v23   ;;  %v2253_v52 = vld [vmem:[%s3806_s10 + $0x1c8] sm:$0xff]  ;;  %v2254_v54 = vld [vmem:[%s3806_s10 + $0x1d0] sm:$0xff]  ;;  %v2255_v55 = vld [vmem:[%s3806_s10 + $0x1d8] sm:$0xff]  ;;  %v3466_v56 = vpack.c.bf16 %v2251_v49, %v2250_v48 }
 0x328   : > { %3504 = vst [vmem:[%s3811_s20 + $0x88] sm:$0xff] %v3416_v26   ;;  %v2256_v57 = vld [vmem:[%s3806_s10 + $0x1e0] sm:$0xff]  ;;  %v2257_v58 = vld [vmem:[%s3806_s10 + $0x1e8] sm:$0xff]  ;;  %v3471_v59 = vpack.c.bf16 %v2253_v52, %v2252_v51  ;;  %v2258_v60 = vld [vmem:[%s3806_s10 + $0x1f0] sm:$0xff]  ;;  %v3476_v62 = vpack.c.bf16 %v2255_v55, %v2254_v54 }
 0x329   : > { %3505 = vst [vmem:[%s3811_s20 + $0x90] sm:$0xff] %v3421_v29   ;;  %v2259_v61 = vld [vmem:[%s3806_s10 + $0x1f8] sm:$0xff]  ;;  %v3481_v63 = vpack.c.bf16 %v2257_v58, %v2256_v57 }
 0x32a   : > { %3506 = vst [vmem:[%s3811_s20 + $0x98] sm:$0xff] %v3426_v32   ;;  %v3486_v0 = vpack.c.bf16 %v2259_v61, %v2258_v60 }
 0x32b   : > { %3507 = vst [vmem:[%s3811_s20 + $0xa0] sm:$0xff] %v3431_v35  }
 0x32c   : > { %3508 = vst [vmem:[%s3811_s20 + $0xa8] sm:$0xff] %v3436_v38  }
 0x32d   : > { %3509 = vst [vmem:[%s3811_s20 + $0xb0] sm:$0xff] %v3441_v41  }
 0x32e   : > { %3510 = vst [vmem:[%s3811_s20 + $0xb8] sm:$0xff] %v3446_v44  }
 0x32f   : > { %3511 = vst [vmem:[%s3811_s20 + $0xc0] sm:$0xff] %v3451_v47  }
 0x330   : > { %3512 = vst [vmem:[%s3811_s20 + $0xc8] sm:$0xff] %v3456_v50  }
 0x331   : > { %3513 = vst [vmem:[%s3811_s20 + $0xd0] sm:$0xff] %v3461_v53  }
 0x332   : > { %3514 = vst [vmem:[%s3811_s20 + $0xd8] sm:$0xff] %v3466_v56  }
 0x333   : > { %3515 = vst [vmem:[%s3811_s20 + $0xe0] sm:$0xff] %v3471_v59  }
 0x334   : > { %3516 = vst [vmem:[%s3811_s20 + $0xe8] sm:$0xff] %v3476_v62  }
 0x335   : > { %3517 = vst [vmem:[%s3811_s20 + $0xf0] sm:$0xff] %v3481_v63  }
 0x336   : > { %3518 = vst [vmem:[%s3811_s20 + $0xf8] sm:$0xff] %v3486_v0  }
 0x337 PF: > { %s17_s19 = sadd.s32 1, %s3690_s19   ;;  %s4493_s30 = sld [smem:[#allocation5_spill]] }
 0x338   : > { %p14_p3 = scmp.ge.s32.totalorder %s17_s19, 6   ;;  %s4494_s12 = smov %s3666_s13 }
 0x339   : > { %s4495_s13 = smov %s3670_s14  ;;  %s4496_s14 = smov %s3783_s5 }
 0x33a   : > { %s4497_s15 = smov %s3682_s17  ;;  %s4498_s16 = smov %s3686_s18 }
 0x33b   : > { %s4499_s17 = smov %s4502_s21  ;;  %16 = sbr.rel (!%p14_p3) target bundleno = 5 (0x5), region = 89 }
 0x33d   : > { %s4500_s18 = smov %s4493_s30 }
 0x340   :  { %2427 = vsyncpa [#allocation3], 1 }
 0x341   :  { %2429 = vsyncpa [#allocation3 + $0x1], 1 }

// kernel: graph_item2vec_forward.5
= control target key start
LH: loop header
LB: loop body
LE: loop exit
PB: predicated region body
PF: predicated region fallthrough
CT: control target
= control target key end

     0   :  { %vm681_vm0 = vcmask 130112   ;;  %vm685_vm1 = vcmask 195712   ;;  %vm689_vm2 = vcmask 261312   ;;  %vm693_vm3 = vcmask 326912   ;;  %s1794_s0 = inlined_call_operand.vmem [shape: f32[8,128], index: 0, kind: input, shape index: {}]   ;;  %s1795_s1 = inlined_call_operand.vmem [shape: f32[8,128,128], index: 1, kind: input, shape index: {}]   ;;  %s1796_s2 = inlined_call_operand.vmem [shape: f32[8,128], index: 2, kind: output, shape index: {}]  }
   0x1   :  { %v995_v0 = vld [vmem:[%s1794_s0] sm:$0xff]  ;;  %v14_v1 = vld [vmem:[%s1795_s1 + $0x10] sm:$0xff]  ;;  %v15_v8 = vld [vmem:[%s1795_s1 + $0x18] sm:$0xff]  ;;  %vm697_vm4 = vcmask 392512   ;;  %vm701_vm5 = vcmask 458112   ;;  %vm705_vm6 = vcmask 523712  }
   0x2   :  { %v12_v2 = vld [vmem:[%s1795_s1] sm:$0xff]  ;;  %v148_v3 = vperm.slane %v995_v0, 0  ;;  %v13_v9 = vld [vmem:[%s1795_s1 + $0x8] sm:$0xff]  ;;  %v19_v14 = vld [vmem:[%s1795_s1 + $0x38] sm:$0xff]  ;;  %v141_v31 = vrot.slane %v995_v0, 1  ;;  %vm709_vm7 = vcmask 589312  }
   0x3   :  { %v16_v4 = vld [vmem:[%s1795_s1 + $0x20] sm:$0xff]  ;;  %v17_v10 = vld [vmem:[%s1795_s1 + $0x28] sm:$0xff]  ;;  %v18_v15 = vld [vmem:[%s1795_s1 + $0x30] sm:$0xff]  ;;  %vm713_vm8 = vcmask 654912   ;;  %vm717_vm9 = vcmask 720512   ;;  %vm721_vm10 = vcmask 786112  }
   0x4   :  { %v166_v5 = vmul.f32 %v148_v3, %v14_v1  ;;  %v164_v6 = vmul.f32 %v148_v3, %v12_v2  ;;  %v168_v7 = vmul.f32 %v148_v3, %v16_v4  ;;  %v167_v11 = vmul.f32 %v148_v3, %v15_v8  ;;  %v20_v16 = vld [vmem:[%s1795_s1 + $0x40] sm:$0xff]  ;;  %v22_v20 = vld [vmem:[%s1795_s1 + $0x50] sm:$0xff]  ;;  %v21_v21 = vld [vmem:[%s1795_s1 + $0x48] sm:$0xff] }
   0x5   :  { %v165_v12 = vmul.f32 %v148_v3, %v13_v9  ;;  %v169_v13 = vmul.f32 %v148_v3, %v17_v10  ;;  %v171_v17 = vmul.f32 %v148_v3, %v19_v14  ;;  %v170_v18 = vmul.f32 %v148_v3, %v18_v15  ;;  %v23_v22 = vld [vmem:[%s1795_s1 + $0x58] sm:$0xff]  ;;  %v25_v26 = vld [vmem:[%s1795_s1 + $0x68] sm:$0xff]  ;;  %v24_v27 = vld [vmem:[%s1795_s1 + $0x60] sm:$0xff] }
   0x6   :  { %296 = vadd.xlane.f32.xlu1 %v166_v5  ;;  %292 = vadd.xlane.f32.xlu0 %v164_v6  ;;  %v172_v19 = vmul.f32 %v148_v3, %v20_v16  ;;  %v174_v23 = vmul.f32 %v148_v3, %v22_v20  ;;  %v173_v24 = vmul.f32 %v148_v3, %v21_v21  ;;  %v26_v28 = vld [vmem:[%s1795_s1 + $0x70] sm:$0xff]  ;;  %v149_v33 = vperm.slane %v141_v31, 0  ;;  %v27_v34 = vld [vmem:[%s1795_s1 + $0x78] sm:$0xff]  ;;  %v28_v35 = vld [vmem:[%s1795_s1 + $0x80] sm:$0xff] }
   0x7   :  { %300 = vadd.xlane.f32.xlu2 %v168_v7  ;;  %v175_v25 = vmul.f32 %v148_v3, %v23_v22  ;;  %v177_v29 = vmul.f32 %v148_v3, %v25_v26  ;;  %v176_v30 = vmul.f32 %v148_v3, %v24_v27  ;;  %v178_v32 = vmul.f32 %v148_v3, %v26_v28  ;;  %v29_v36 = vld [vmem:[%s1795_s1 + $0x88] sm:$0xff]  ;;  %v30_v40 = vld [vmem:[%s1795_s1 + $0x90] sm:$0xff]  ;;  %v31_v41 = vld [vmem:[%s1795_s1 + $0x98] sm:$0xff] }
   0x8   :  { %v179_v37 = vmul.f32 %v148_v3, %v27_v34  ;;  %v180_v38 = vmul.f32 %v149_v33, %v28_v35  ;;  %v181_v39 = vmul.f32 %v149_v33, %v29_v36  ;;  %v32_v42 = vld [vmem:[%s1795_s1 + $0xa0] sm:$0xff]  ;;  %v182_v43 = vmul.f32 %v149_v33, %v30_v40  ;;  %v33_v46 = vld [vmem:[%s1795_s1 + $0xa8] sm:$0xff]  ;;  %v34_v47 = vld [vmem:[%s1795_s1 + $0xb0] sm:$0xff] }
   0x9   :  { %v183_v44 = vmul.f32 %v149_v33, %v31_v41  ;;  %v184_v45 = vmul.f32 %v149_v33, %v32_v42  ;;  %v35_v48 = vld [vmem:[%s1795_s1 + $0xb8] sm:$0xff]  ;;  %v185_v49 = vmul.f32 %v149_v33, %v33_v46  ;;  %v186_v50 = vmul.f32 %v149_v33, %v34_v47  ;;  %v36_v52 = vld [vmem:[%s1795_s1 + $0xc0] sm:$0xff]  ;;  %v37_v53 = vld [vmem:[%s1795_s1 + $0xc8] sm:$0xff] }
   0xa   :  { %v187_v51 = vmul.f32 %v149_v33, %v35_v48  ;;  %v38_v54 = vld [vmem:[%s1795_s1 + $0xd0] sm:$0xff]  ;;  %v188_v55 = vmul.f32 %v149_v33, %v36_v52  ;;  %v189_v56 = vmul.f32 %v149_v33, %v37_v53  ;;  %v39_v58 = vld [vmem:[%s1795_s1 + $0xd8] sm:$0xff]  ;;  %v40_v59 = vld [vmem:[%s1795_s1 + $0xe0] sm:$0xff]  ;;  %v142_v1 = vrot.slane %v995_v0, 2 }
   0xb   :  { %v190_v57 = vmul.f32 %v149_v33, %v38_v54  ;;  %v41_v60 = vld [vmem:[%s1795_s1 + $0xe8] sm:$0xff]  ;;  %v191_v61 = vmul.f32 %v149_v33, %v39_v58  ;;  %v192_v62 = vmul.f32 %v149_v33, %v40_v59  ;;  %v42_v2 = vld [vmem:[%s1795_s1 + $0xf0] sm:$0xff]  ;;  %v43_v3 = vld [vmem:[%s1795_s1 + $0xf8] sm:$0xff]  ;;  %vm725_vm11 = vcmask 851712  }
   0xc   :  { %v193_v63 = vmul.f32 %v149_v33, %v41_v60  ;;  %v150_v4 = vperm.slane %v142_v1, 0  ;;  %v44_v5 = vld [vmem:[%s1795_s1 + $0x100] sm:$0xff]  ;;  %v194_v6 = vmul.f32 %v149_v33, %v42_v2  ;;  %v195_v7 = vmul.f32 %v149_v33, %v43_v3  ;;  %v45_v9 = vld [vmem:[%s1795_s1 + $0x108] sm:$0xff]  ;;  %v46_v10 = vld [vmem:[%s1795_s1 + $0x110] sm:$0xff] }
   0xd   :  { %v48_v15 = vld [vmem:[%s1795_s1 + $0x120] sm:$0xff]  ;;  %v49_v16 = vld [vmem:[%s1795_s1 + $0x128] sm:$0xff]  ;;  %v51_v21 = vld [vmem:[%s1795_s1 + $0x138] sm:$0xff]  ;;  %v676_v33 = vlaneseq  ;;  %vm729_vm12 = vcmask 917312   ;;  %vm733_vm13 = vcmask 982912   ;;  %vm737_vm14 = vcmask 1048512  }
   0xe   :  { %298 = vadd.xlane.f32.xlu1 %v167_v11  ;;  %294 = vadd.xlane.f32.xlu0 %v165_v12  ;;  %v196_v8 = vmul.f32 %v150_v4, %v44_v5  ;;  %v47_v11 = vld [vmem:[%s1795_s1 + $0x118] sm:$0xff]  ;;  %v197_v12 = vmul.f32 %v150_v4, %v45_v9  ;;  %v52_v22 = vld [vmem:[%s1795_s1 + $0x140] sm:$0xff]  ;;  %v54_v27 = vld [vmem:[%s1795_s1 + $0x150] sm:$0xff]  ;;  %vm956_vm15 = vcmask 1041409  }
   0xf   :  { %302 = vadd.xlane.f32.xlu2 %v169_v13  ;;  %v198_v13 = vmul.f32 %v150_v4, %v46_v10  ;;  %v199_v14 = vmul.f32 %v150_v4, %v47_v11  ;;  %v55_v28 = vld [vmem:[%s1795_s1 + $0x158] sm:$0xff]  ;;  %v57_v34 = vld [vmem:[%s1795_s1 + $0x168] sm:$0xff]  ;;  %v58_v35 = vld [vmem:[%s1795_s1 + $0x170] sm:$0xff] }
  0x10   :  { %v207_v31 = vmul.f32 %v150_v4, %v55_v28  ;;  %v59_v36 = vld [vmem:[%s1795_s1 + $0x178] sm:$0xff]  ;;  %v209_v41 = vmul.f32 %v150_v4, %v57_v34  ;;  %v210_v42 = vmul.f32 %v150_v4, %v58_v35  ;;  %v60_v48 = vld [vmem:[%s1795_s1 + $0x180] sm:$0xff]  ;;  %v62_v52 = vld [vmem:[%s1795_s1 + $0x190] sm:$0xff] }
  0x11   :  { %v63_v10 = vld [vmem:[%s1795_s1 + $0x198] sm:$0xff]  ;;  %v64_v11 = vld [vmem:[%s1795_s1 + $0x1a0] sm:$0xff] }
  0x16   :  { %306 = vadd.xlane.f32.xlu1 %v171_v17  ;;  %304 = vadd.xlane.f32.xlu0 %v170_v18  ;;  %v50_v17 = vld [vmem:[%s1795_s1 + $0x130] sm:$0xff]  ;;  %v200_v18 = vmul.f32 %v150_v4, %v48_v15 }
  0x17   :  { %308 = vadd.xlane.f32.xlu2 %v172_v19  ;;  %v201_v19 = vmul.f32 %v150_v4, %v49_v16  ;;  %v202_v20 = vmul.f32 %v150_v4, %v50_v17 }
  0x1e   :  { %312 = vadd.xlane.f32.xlu1 %v174_v23  ;;  %310 = vadd.xlane.f32.xlu0 %v173_v24  ;;  %v53_v23 = vld [vmem:[%s1795_s1 + $0x148] sm:$0xff]  ;;  %v203_v24 = vmul.f32 %v150_v4, %v51_v21 }
  0x1f   :  { %314 = vadd.xlane.f32.xlu2 %v175_v25  ;;  %v204_v25 = vmul.f32 %v150_v4, %v52_v22  ;;  %v205_v26 = vmul.f32 %v150_v4, %v53_v23 }
  0x26   :  { %318 = vadd.xlane.f32.xlu1 %v177_v29  ;;  %316 = vadd.xlane.f32.xlu0 %v176_v30  ;;  %v56_v29 = vld [vmem:[%s1795_s1 + $0x160] sm:$0xff]  ;;  %v206_v30 = vmul.f32 %v150_v4, %v54_v27 }
  0x27   :  { %320 = vadd.xlane.f32.xlu2 %v178_v32  ;;  %v208_v32 = vmul.f32 %v150_v4, %v56_v29  ;;  %v66_v29 = vld [vmem:[%s1795_s1 + $0x1b0] sm:$0xff] }
  0x2e   :  { %322 = vadd.xlane.f32.xlu0 %v179_v37  ;;  %324 = vadd.xlane.f32.xlu1 %v180_v38 }
  0x2f   :  { %326 = vadd.xlane.f32.xlu2 %v181_v39  ;;  %v143_v39 = vrot.slane %v995_v0, 3 }
  0x36   :  { %328 = vadd.xlane.f32.xlu0 %v182_v43  ;;  %330 = vadd.xlane.f32.xlu1 %v183_v44  ;;  %v1145_v43 = vand.u32 127, %v676_v33  ;;  %v211_v44 = vmul.f32 %v150_v4, %v59_v36 }
  0x37   :  { %332 = vadd.xlane.f32.xlu2 %v184_v45  ;;  %v1147_v45 = vperm.slane %v143_v39, 0 }
  0x38   :  { %v1150_v46 = vadd.s32 4294967272, %v1145_v43  ;;  %v1153_v47 = vadd.s32 4294967288, %v1145_v43  ;;  %v1171_v53 = vadd.s32 4294967264, %v1145_v43  ;;  %v1193_v9 = vadd.s32 4294967232, %v1145_v43 }
  0x39   :  { %v1218_v27 = vadd.s32 4294967224, %v1145_v43  ;;  %v1221_v28 = vadd.s32 4294967208, %v1145_v43 }
  0x3e   :  { %334 = vadd.xlane.f32.xlu0 %v185_v49  ;;  %336 = vadd.xlane.f32.xlu1 %v186_v50  ;;  %v1159_v49 = vadd.s32 4294967280, %v1145_v43  ;;  %v61_v50 = vld [vmem:[%s1795_s1 + $0x188] sm:$0xff] }
  0x3f   :  { %338 = vadd.xlane.f32.xlu2 %v187_v51  ;;  %v1165_v51 = vadd.s32 4294967256, %v1145_v43 }
  0x46   :  { %340 = vadd.xlane.f32.xlu0 %v188_v55  ;;  %342 = vadd.xlane.f32.xlu1 %v189_v56  ;;  %v212_v56 = vmul.f32 %v1147_v45, %v60_v48  ;;  %v1242_v48 = vadd.s32 4294967192, %v1145_v43 }
  0x47   :  { %344 = vadd.xlane.f32.xlu2 %v190_v57 }
  0x4e   :  { %346 = vadd.xlane.f32.xlu0 %v191_v61  ;;  %348 = vadd.xlane.f32.xlu1 %v192_v62  ;;  %v213_v61 = vmul.f32 %v1147_v45, %v61_v50  ;;  %v1245_v50 = vadd.s32 4294967200, %v1145_v43 }
  0x4f   :  { %350 = vadd.xlane.f32.xlu2 %v193_v63  ;;  %v214_v63 = vmul.f32 %v1147_v45, %v62_v52  ;;  %v1248_v52 = vadd.s32 4294967184, %v1145_v43 }
  0x56   :  { %352 = vadd.xlane.f32.xlu0 %v194_v6  ;;  %354 = vadd.xlane.f32.xlu1 %v195_v7  ;;  %v1186_v6 = vadd.s32 4294967240, %v1145_v43  ;;  %v1189_v7 = vadd.s32 4294967248, %v1145_v43 }
  0x57   :  { %356 = vadd.xlane.f32.xlu2 %v196_v8 }
  0x5e   :  { %358 = vadd.xlane.f32.xlu0 %v197_v12  ;;  %360 = vadd.xlane.f32.xlu1 %v198_v13  ;;  %v65_v13 = vld [vmem:[%s1795_s1 + $0x1a8] sm:$0xff] }
  0x5f   :  { %362 = vadd.xlane.f32.xlu2 %v199_v14  ;;  %v217_v22 = vmul.f32 %v1147_v45, %v65_v13 }
  0x66   :  { %364 = vadd.xlane.f32.xlu0 %v200_v18  ;;  %366 = vadd.xlane.f32.xlu1 %v201_v19  ;;  %v215_v19 = vmul.f32 %v1147_v45, %v63_v10  ;;  %v72_v10 = vld [vmem:[%s1795_s1 + $0x1e0] sm:$0xff] }
  0x67   :  { %368 = vadd.xlane.f32.xlu2 %v202_v20  ;;  %v216_v20 = vmul.f32 %v1147_v45, %v64_v11  ;;  %v73_v11 = vld [vmem:[%s1795_s1 + $0x1e8] sm:$0xff] }
  0x6e   :  { %370 = vadd.xlane.f32.xlu0 %v203_v24  ;;  %372 = vadd.xlane.f32.xlu1 %v204_v25 }
  0x6f   :  { %374 = vadd.xlane.f32.xlu2 %v205_v26  ;;  %v1215_v26 = vadd.s32 4294967216, %v1145_v43 }
  0x76   :  { %376 = vadd.xlane.f32.xlu0 %v206_v30  ;;  %378 = vadd.xlane.f32.xlu1 %v207_v31  ;;  %v67_v30 = vld [vmem:[%s1795_s1 + $0x1b8] sm:$0xff]  ;;  %v68_v31 = vld [vmem:[%s1795_s1 + $0x1c0] sm:$0xff] }
  0x77   :  { %380 = vadd.xlane.f32.xlu2 %v208_v32 }
  0x79   :  { %v297_v37 = vpop.xlane.xlu1 %296  ;;  %v293_v38 = vpop.xlane.xlu0 %292 }
  0x7a   :  { %v301_v40 = vpop.xlane.xlu2 %300  ;;  %v678_v57 = vperm.slane %v293_v38, %v1145_v43  ;;  %v684_v62 = vperm.slane %v297_v37, %v1159_v49  ;;  %v218_v37 = vmul.f32 %v1147_v45, %v66_v29  ;;  %v219_v38 = vmul.f32 %v1147_v45, %v67_v30  ;;  %v75_v29 = vld [vmem:[%s1795_s1 + $0x1f8] sm:$0xff]  ;;  %v76_v30 = vld [vmem:[%s1795_s1 + $0x200] sm:$0xff] }
  0x7b   :  { %v692_v3 = vperm.slane %v301_v40, %v1171_v53  ;;  %v220_v40 = vmul.f32 %v1147_v45, %v68_v31  ;;  %v77_v31 = vld [vmem:[%s1795_s1 + $0x208] sm:$0xff] }
  0x7e   :  { %382 = vadd.xlane.f32.xlu0 %v209_v41  ;;  %384 = vadd.xlane.f32.xlu1 %v210_v42 }
  0x7f   :  { %386 = vadd.xlane.f32.xlu2 %v211_v44 }
  0x81   :  { %v299_v54 = vpop.xlane.xlu1 %298  ;;  %v295_v55 = vpop.xlane.xlu0 %294 }
  0x82   :  { %v688_v58 = vperm.slane %v299_v54, %v1150_v46  ;;  %v680_v59 = vperm.slane %v295_v55, %v1153_v47  ;;  %v303_v60 = vpop.xlane.xlu2 %302  ;;  %v69_v54 = vld [vmem:[%s1795_s1 + $0x1c8] sm:$0xff]  ;;  %v70_v55 = vld [vmem:[%s1795_s1 + $0x1d0] sm:$0xff] }
  0x83   :  { %v696_v2 = vperm.slane %v303_v60, %v1165_v51 }
  0x84   :  { %v682_v1 = vsel %vm681_vm0, %v680_v59, %v678_v57 }
  0x85   :  { %v686_v4 = vsel %vm685_vm1, %v684_v62, %v682_v1  ;;  %v221_v62 = vmul.f32 %v1147_v45, %v69_v54  ;;  %v78_v54 = vld [vmem:[%s1795_s1 + $0x210] sm:$0xff] }
  0x86   :  { %v690_v5 = vsel %vm689_vm2, %v688_v58, %v686_v4  ;;  %388 = vadd.xlane.f32.xlu0 %v212_v56  ;;  %390 = vadd.xlane.f32.xlu1 %v213_v61  ;;  %v71_v56 = vld [vmem:[%s1795_s1 + $0x1d8] sm:$0xff] }
  0x87   :  { %v694_v8 = vsel %vm693_vm3, %v692_v3, %v690_v5  ;;  %392 = vadd.xlane.f32.xlu2 %v214_v63  ;;  %v222_v63 = vmul.f32 %v1147_v45, %v70_v55  ;;  %v80_v55 = vld [vmem:[%s1795_s1 + $0x220] sm:$0xff] }
  0x88   :  { %v698_v12 = vsel %vm697_vm4, %v696_v2, %v694_v8  ;;  %v223_v2 = vmul.f32 %v1147_v45, %v71_v56  ;;  %v1269_v8 = vadd.s32 4294967176, %v1145_v43 }
  0x89   :  { %v307_v14 = vpop.xlane.xlu1 %306  ;;  %v305_v15 = vpop.xlane.xlu0 %304 }
  0x8a   :  { %v704_v16 = vperm.slane %v307_v14, %v1186_v6  ;;  %v700_v17 = vperm.slane %v305_v15, %v1189_v7  ;;  %v309_v18 = vpop.xlane.xlu2 %308  ;;  %v224_v15 = vmul.f32 %v1147_v45, %v72_v10  ;;  %v82_v10 = vld [vmem:[%s1795_s1 + $0x230] sm:$0xff] }
  0x8b   :  { %v708_v21 = vperm.slane %v309_v18, %v1193_v9 }
  0x8c   :  { %v702_v23 = vsel %vm701_vm5, %v700_v17, %v698_v12  ;;  %v74_v12 = vld [vmem:[%s1795_s1 + $0x1f0] sm:$0xff] }
  0x8d   :  { %v706_v24 = vsel %vm705_vm6, %v704_v16, %v702_v23 }
  0x8e   :  { %v710_v25 = vsel %vm709_vm7, %v708_v21, %v706_v24  ;;  %394 = vadd.xlane.f32.xlu0 %v215_v19  ;;  %396 = vadd.xlane.f32.xlu1 %v216_v20  ;;  %v225_v19 = vmul.f32 %v1147_v45, %v73_v11  ;;  %v144_v20 = vrot.slane %v995_v0, 4  ;;  %v83_v11 = vld [vmem:[%s1795_s1 + $0x238] sm:$0xff] }
  0x8f   :  { %398 = vadd.xlane.f32.xlu2 %v217_v22  ;;  %v226_v22 = vmul.f32 %v1147_v45, %v74_v12 }
  0x91   :  { %v313_v32 = vpop.xlane.xlu1 %312  ;;  %v311_v33 = vpop.xlane.xlu0 %310 }
  0x92   :  { %v716_v34 = vperm.slane %v313_v32, %v1215_v26  ;;  %v712_v35 = vperm.slane %v311_v33, %v1218_v27  ;;  %v315_v36 = vpop.xlane.xlu2 %314 }
  0x93   :  { %v720_v39 = vperm.slane %v315_v36, %v1221_v28 }
  0x94   :  { %v714_v41 = vsel %vm713_vm8, %v712_v35, %v710_v25  ;;  %v1291_v25 = vperm.slane %v144_v20, 0 }
  0x95   :  { %v718_v42 = vsel %vm717_vm9, %v716_v34, %v714_v41 }
  0x96   :  { %v722_v44 = vsel %vm721_vm10, %v720_v39, %v718_v42  ;;  %400 = vadd.xlane.f32.xlu0 %v218_v37  ;;  %402 = vadd.xlane.f32.xlu1 %v219_v38  ;;  %v227_v37 = vmul.f32 %v1147_v45, %v75_v29  ;;  %v228_v38 = vmul.f32 %v1291_v25, %v76_v30  ;;  %v79_v45 = vld [vmem:[%s1795_s1 + $0x218] sm:$0xff]  ;;  %v84_v29 = vld [vmem:[%s1795_s1 + $0x240] sm:$0xff]  ;;  %v85_v30 = vld [vmem:[%s1795_s1 + $0x248] sm:$0xff] }
  0x97   :  { %404 = vadd.xlane.f32.xlu2 %v220_v40  ;;  %v229_v40 = vmul.f32 %v1291_v25, %v77_v31  ;;  %v235_v20 = vmul.f32 %v1291_v25, %v83_v11  ;;  %v86_v31 = vld [vmem:[%s1795_s1 + $0x250] sm:$0xff] }
  0x99   :  { %v319_v57 = vpop.xlane.xlu1 %318  ;;  %v317_v58 = vpop.xlane.xlu0 %316 }
  0x9a   :  { %v728_v59 = vperm.slane %v319_v57, %v1242_v48  ;;  %v724_v60 = vperm.slane %v317_v58, %v1245_v50  ;;  %v321_v61 = vpop.xlane.xlu2 %320 }
  0x9b   :  { %v732_v1 = vperm.slane %v321_v61, %v1248_v52  ;;  %v230_v61 = vmul.f32 %v1291_v25, %v78_v54  ;;  %v87_v54 = vld [vmem:[%s1795_s1 + $0x258] sm:$0xff] }
  0x9c   :  { %v726_v3 = vsel %vm725_vm11, %v724_v60, %v722_v44 }
  0x9d   :  { %v730_v4 = vsel %vm729_vm12, %v728_v59, %v726_v3 }
  0x9e   :  { %v734_v5 = vsel %vm733_vm13, %v732_v1, %v730_v4  ;;  %406 = vadd.xlane.f32.xlu0 %v221_v62  ;;  %408 = vadd.xlane.f32.xlu1 %v222_v63  ;;  %v231_v62 = vmul.f32 %v1291_v25, %v79_v45  ;;  %v232_v1 = vmul.f32 %v1291_v25, %v80_v55  ;;  %v88_v45 = vld [vmem:[%s1795_s1 + $0x260] sm:$0xff]  ;;  %v89_v55 = vld [vmem:[%s1795_s1 + $0x268] sm:$0xff] }
  0x9f   :  { %410 = vadd.xlane.f32.xlu2 %v223_v2 }
  0xa1   :  { %v323_v13 = vpop.xlane.xlu0 %322  ;;  %v325_v14 = vpop.xlane.xlu1 %324 }
  0xa2   :  { %v736_v16 = vperm.slane %v323_v13, %v1269_v8  ;;  %v739_v17 = vperm.slane %v325_v14, %v1145_v43  ;;  %v327_v18 = vpop.xlane.xlu2 %326 }
  0xa3   :  { %v740_v21 = vperm.slane %v327_v18, %v1153_v47  ;;  %v234_v18 = vmul.f32 %v1291_v25, %v82_v10  ;;  %v91_v10 = vld [vmem:[%s1795_s1 + $0x278] sm:$0xff] }
  0xa4   :  { %v1288_v23 = vsel %vm737_vm14, %v736_v16, %v734_v5  ;;  %v81_v5 = vld [vmem:[%s1795_s1 + $0x228] sm:$0xff] }
  0xa5   :  { %v741_v24 = vsel %vm681_vm0, %v740_v21, %v739_v17  ;;  %v233_v17 = vmul.f32 %v1291_v25, %v81_v5  ;;  %v90_v5 = vld [vmem:[%s1795_s1 + $0x270] sm:$0xff] }
  0xa6   :  { %412 = vadd.xlane.f32.xlu0 %v224_v15  ;;  %414 = vadd.xlane.f32.xlu1 %v225_v19 }
  0xa7   :  { %416 = vadd.xlane.f32.xlu2 %v226_v22 }
  0xa9   :  { %v329_v32 = vpop.xlane.xlu0 %328  ;;  %v331_v33 = vpop.xlane.xlu1 %330 }
  0xaa   :  { %v742_v34 = vperm.slane %v329_v32, %v1159_v49  ;;  %v744_v35 = vperm.slane %v331_v33, %v1150_v46  ;;  %v333_v36 = vpop.xlane.xlu2 %332 }
  0xab   :  { %v746_v39 = vperm.slane %v333_v36, %v1171_v53 }
  0xac   :  { %v743_v41 = vsel %vm685_vm1, %v742_v34, %v741_v24 }
  0xad   :  { %v745_v42 = vsel %vm689_vm2, %v744_v35, %v743_v41 }
  0xae   :  { %v747_v44 = vsel %vm693_vm3, %v746_v39, %v745_v42  ;;  %418 = vadd.xlane.f32.xlu0 %v227_v37  ;;  %420 = vadd.xlane.f32.xlu1 %v228_v38  ;;  %v236_v37 = vmul.f32 %v1291_v25, %v84_v29  ;;  %v237_v38 = vmul.f32 %v1291_v25, %v85_v30  ;;  %v93_v30 = vld [vmem:[%s1795_s1 + $0x288] sm:$0xff] }
  0xaf   :  { %422 = vadd.xlane.f32.xlu2 %v229_v40  ;;  %v238_v40 = vmul.f32 %v1291_v25, %v86_v31  ;;  %v95_v31 = vld [vmem:[%s1795_s1 + $0x298] sm:$0xff] }
  0xb1   :  { %v335_v56 = vpop.xlane.xlu0 %334  ;;  %v337_v57 = vpop.xlane.xlu1 %336 }
  0xb2   :  { %v748_v58 = vperm.slane %v335_v56, %v1165_v51  ;;  %v750_v59 = vperm.slane %v337_v57, %v1189_v7  ;;  %v339_v60 = vpop.xlane.xlu2 %338 }
  0xb3   :  { %v752_v63 = vperm.slane %v339_v60, %v1186_v6 }
  0xb4   :  { %v749_v2 = vsel %vm697_vm4, %v748_v58, %v747_v44 }
  0xb5   :  { %v751_v3 = vsel %vm701_vm5, %v750_v59, %v749_v2 }
  0xb6   :  { %v753_v4 = vsel %vm705_vm6, %v752_v63, %v751_v3  ;;  %424 = vadd.xlane.f32.xlu0 %v230_v61  ;;  %426 = vadd.xlane.f32.xlu1 %v231_v62  ;;  %v239_v61 = vmul.f32 %v1291_v25, %v87_v54  ;;  %v240_v62 = vmul.f32 %v1291_v25, %v88_v45  ;;  %v96_v54 = vld [vmem:[%s1795_s1 + $0x2a0] sm:$0xff]  ;;  %v97_v45 = vld [vmem:[%s1795_s1 + $0x2a8] sm:$0xff] }
  0xb7   :  { %428 = vadd.xlane.f32.xlu2 %v232_v1  ;;  %v241_v63 = vmul.f32 %v1291_v25, %v89_v55  ;;  %v145_v1 = vrot.slane %v995_v0, 5  ;;  %v98_v55 = vld [vmem:[%s1795_s1 + $0x2b0] sm:$0xff] }
  0xb9   :  { %v341_v12 = vpop.xlane.xlu0 %340  ;;  %v343_v13 = vpop.xlane.xlu1 %342  ;;  %v1391_v11 = vperm.slane %v145_v1, 0 }
  0xba   :  { %v754_v14 = vperm.slane %v341_v12, %v1193_v9  ;;  %v756_v15 = vperm.slane %v343_v13, %v1218_v27  ;;  %v345_v16 = vpop.xlane.xlu2 %344 }
  0xbb   :  { %v758_v19 = vperm.slane %v345_v16, %v1215_v26  ;;  %v250_v1 = vmul.f32 %v1391_v11, %v98_v55  ;;  %v106_v55 = vld [vmem:[%s1795_s1 + $0x2f0] sm:$0xff] }
  0xbc   :  { %v755_v21 = vsel %vm709_vm7, %v754_v14, %v753_v4 }
  0xbd   :  { %v757_v22 = vsel %vm713_vm8, %v756_v15, %v755_v21 }
  0xbe   :  { %v759_v24 = vsel %vm717_vm9, %v758_v19, %v757_v22  ;;  %430 = vadd.xlane.f32.xlu0 %v233_v17  ;;  %432 = vadd.xlane.f32.xlu1 %v234_v18  ;;  %v242_v18 = vmul.f32 %v1291_v25, %v90_v5  ;;  %v243_v19 = vmul.f32 %v1291_v25, %v91_v10  ;;  %v94_v25 = vld [vmem:[%s1795_s1 + $0x290] sm:$0xff]  ;;  %v99_v10 = vld [vmem:[%s1795_s1 + $0x2b8] sm:$0xff] }
  0xbf   :  { %434 = vadd.xlane.f32.xlu2 %v235_v20 }
  0xc1   :  { %v347_v32 = vpop.xlane.xlu0 %346  ;;  %v349_v33 = vpop.xlane.xlu1 %348 }
  0xc2   :  { %v760_v34 = vperm.slane %v347_v32, %v1221_v28  ;;  %v762_v35 = vperm.slane %v349_v33, %v1245_v50  ;;  %v351_v36 = vpop.xlane.xlu2 %350 }
  0xc3   :  { %v764_v39 = vperm.slane %v351_v36, %v1242_v48 }
  0xc4   :  { %v761_v41 = vsel %vm721_vm10, %v760_v34, %v759_v24 }
  0xc5   :  { %v763_v42 = vsel %vm725_vm11, %v762_v35, %v761_v41 }
  0xc6   :  { %v765_v44 = vsel %vm729_vm12, %v764_v39, %v763_v42  ;;  %436 = vadd.xlane.f32.xlu0 %v236_v37  ;;  %438 = vadd.xlane.f32.xlu1 %v237_v38  ;;  %v245_v37 = vmul.f32 %v1391_v11, %v93_v30  ;;  %v246_v38 = vmul.f32 %v1391_v11, %v94_v25  ;;  %v102_v30 = vld [vmem:[%s1795_s1 + $0x2d0] sm:$0xff]  ;;  %v103_v25 = vld [vmem:[%s1795_s1 + $0x2d8] sm:$0xff] }
  0xc7   :  { %440 = vadd.xlane.f32.xlu2 %v238_v40  ;;  %v247_v40 = vmul.f32 %v1391_v11, %v95_v31  ;;  %v104_v31 = vld [vmem:[%s1795_s1 + $0x2e0] sm:$0xff] }
  0xc9   :  { %v353_v56 = vpop.xlane.xlu0 %352  ;;  %v355_v57 = vpop.xlane.xlu1 %354 }
  0xca   :  { %v766_v58 = vperm.slane %v353_v56, %v1248_v52  ;;  %v768_v59 = vperm.slane %v355_v57, %v1269_v8  ;;  %v357_v60 = vpop.xlane.xlu2 %356 }
  0xcb   :  { %v770_v12 = vperm.slane %v357_v60, %v1145_v43 }
  0xcc   :  { %v767_v2 = vsel %vm733_vm13, %v766_v58, %v765_v44 }
  0xcd   :  { %v769_v3 = vsel %vm737_vm14, %v768_v59, %v767_v2 }
  0xce   :  { %v1383_v4 = vsel %vm956_vm15, %v769_v3, %v1288_v23  ;;  %442 = vadd.xlane.f32.xlu0 %v239_v61  ;;  %444 = vadd.xlane.f32.xlu1 %v240_v62  ;;  %v92_v23 = vld [vmem:[%s1795_s1 + $0x280] sm:$0xff]  ;;  %v248_v61 = vmul.f32 %v1391_v11, %v96_v54  ;;  %v249_v62 = vmul.f32 %v1391_v11, %v97_v45  ;;  %vm958_vm15 = vcmask 1042434   ;;  %v105_v54 = vld [vmem:[%s1795_s1 + $0x2e8] sm:$0xff] }
  0xcf   :  { %446 = vadd.xlane.f32.xlu2 %v241_v63  ;;  %v244_v21 = vmul.f32 %v1391_v11, %v92_v23  ;;  %v101_v23 = vld [vmem:[%s1795_s1 + $0x2c8] sm:$0xff] }
  0xd1   :  { %v359_v13 = vpop.xlane.xlu0 %358  ;;  %v361_v14 = vpop.xlane.xlu1 %360 }
  0xd2   :  { %v771_v15 = vperm.slane %v359_v13, %v1153_v47  ;;  %v773_v16 = vperm.slane %v361_v14, %v1159_v49  ;;  %v363_v17 = vpop.xlane.xlu2 %362 }
  0xd3   :  { %v775_v20 = vperm.slane %v363_v17, %v1150_v46 }
  0xd4   :  { %v772_v22 = vsel %vm681_vm0, %v771_v15, %v770_v12  ;;  %v100_v12 = vld [vmem:[%s1795_s1 + $0x2c0] sm:$0xff] }
  0xd5   :  { %v774_v24 = vsel %vm685_vm1, %v773_v16, %v772_v22 }
  0xd6   :  { %v776_v29 = vsel %vm689_vm2, %v775_v20, %v774_v24  ;;  %448 = vadd.xlane.f32.xlu0 %v242_v18  ;;  %450 = vadd.xlane.f32.xlu1 %v243_v19  ;;  %v251_v18 = vmul.f32 %v1391_v11, %v99_v10  ;;  %v252_v19 = vmul.f32 %v1391_v11, %v100_v12  ;;  %v108_v12 = vld [vmem:[%s1795_s1 + $0x300] sm:$0xff] }
  0xd7   :  { %452 = vadd.xlane.f32.xlu2 %v244_v21  ;;  %v253_v21 = vmul.f32 %v1391_v11, %v101_v23 }
  0xd9   :  { %v365_v32 = vpop.xlane.xlu0 %364  ;;  %v367_v33 = vpop.xlane.xlu1 %366 }
  0xda   :  { %v777_v34 = vperm.slane %v365_v32, %v1171_v53  ;;  %v779_v35 = vperm.slane %v367_v33, %v1165_v51  ;;  %v369_v36 = vpop.xlane.xlu2 %368 }
  0xdb   :  { %v781_v39 = vperm.slane %v369_v36, %v1189_v7 }
  0xdc   :  { %v778_v41 = vsel %vm693_vm3, %v777_v34, %v776_v29 }
  0xdd   :  { %v780_v42 = vsel %vm697_vm4, %v779_v35, %v778_v41 }
  0xde   :  { %v782_v44 = vsel %vm701_vm5, %v781_v39, %v780_v42  ;;  %454 = vadd.xlane.f32.xlu0 %v245_v37  ;;  %456 = vadd.xlane.f32.xlu1 %v246_v38  ;;  %v254_v37 = vmul.f32 %v1391_v11, %v102_v30  ;;  %v255_v38 = vmul.f32 %v1391_v11, %v103_v25  ;;  %v112_v30 = vld [vmem:[%s1795_s1 + $0x320] sm:$0xff]  ;;  %v113_v25 = vld [vmem:[%s1795_s1 + $0x328] sm:$0xff] }
  0xdf   :  { %458 = vadd.xlane.f32.xlu2 %v247_v40  ;;  %v256_v40 = vmul.f32 %v1391_v11, %v104_v31 }
  0xe1   :  { %v371_v56 = vpop.xlane.xlu0 %370  ;;  %v373_v57 = vpop.xlane.xlu1 %372 }
  0xe2   :  { %v783_v58 = vperm.slane %v371_v56, %v1186_v6  ;;  %v785_v59 = vperm.slane %v373_v57, %v1193_v9  ;;  %v375_v60 = vpop.xlane.xlu2 %374  ;;  %v107_v56 = vld [vmem:[%s1795_s1 + $0x2f8] sm:$0xff] }
  0xe3   :  { %v787_v63 = vperm.slane %v375_v60, %v1218_v27 }
  0xe4   :  { %v784_v2 = vsel %vm705_vm6, %v783_v58, %v782_v44 }
  0xe5   :  { %v786_v3 = vsel %vm709_vm7, %v785_v59, %v784_v2  ;;  %v257_v59 = vmul.f32 %v1391_v11, %v105_v54  ;;  %v259_v2 = vmul.f32 %v1391_v11, %v107_v56  ;;  %v115_v54 = vld [vmem:[%s1795_s1 + $0x338] sm:$0xff] }
  0xe6   :  { %v788_v5 = vsel %vm713_vm8, %v787_v63, %v786_v3  ;;  %460 = vadd.xlane.f32.xlu0 %v248_v61  ;;  %462 = vadd.xlane.f32.xlu1 %v249_v62  ;;  %v146_v63 = vrot.slane %v995_v0, 6  ;;  %v109_v0 = vld [vmem:[%s1795_s1 + $0x308] sm:$0xff] }
  0xe7   :  { %464 = vadd.xlane.f32.xlu2 %v250_v1 }
  0xe8   :  { %v1499_v10 = vperm.slane %v146_v63, 0 }
  0xe9   :  { %v377_v13 = vpop.xlane.xlu0 %376  ;;  %v379_v14 = vpop.xlane.xlu1 %378 }
  0xea   :  { %v789_v15 = vperm.slane %v377_v13, %v1215_v26  ;;  %v791_v16 = vperm.slane %v379_v14, %v1221_v28  ;;  %v381_v17 = vpop.xlane.xlu2 %380 }
  0xeb   :  { %v793_v20 = vperm.slane %v381_v17, %v1245_v50  ;;  %v260_v17 = vmul.f32 %v1499_v10, %v108_v12  ;;  %v118_v12 = vld [vmem:[%s1795_s1 + $0x350] sm:$0xff] }
  0xec   :  { %v790_v22 = vsel %vm717_vm9, %v789_v15, %v788_v5 }
  0xed   :  { %v792_v24 = vsel %vm721_vm10, %v791_v16, %v790_v22 }
  0xee   :  { %v794_v29 = vsel %vm725_vm11, %v793_v20, %v792_v24  ;;  %466 = vadd.xlane.f32.xlu0 %v251_v18  ;;  %468 = vadd.xlane.f32.xlu1 %v252_v19  ;;  %v261_v18 = vmul.f32 %v1499_v10, %v109_v0  ;;  %v119_v0 = vld [vmem:[%s1795_s1 + $0x358] sm:$0xff] }
  0xef   :  { %470 = vadd.xlane.f32.xlu2 %v253_v21 }
  0xf1   :  { %v383_v32 = vpop.xlane.xlu0 %382  ;;  %v385_v33 = vpop.xlane.xlu1 %384 }
  0xf2   :  { %v795_v34 = vperm.slane %v383_v32, %v1242_v48  ;;  %v797_v35 = vperm.slane %v385_v33, %v1248_v52  ;;  %v387_v36 = vpop.xlane.xlu2 %386 }
  0xf3   :  { %v799_v39 = vperm.slane %v387_v36, %v1269_v8 }
  0xf4   :  { %v796_v41 = vsel %vm729_vm12, %v795_v34, %v794_v29  ;;  %v111_v29 = vld [vmem:[%s1795_s1 + $0x318] sm:$0xff] }
  0xf5   :  { %v798_v42 = vsel %vm733_vm13, %v797_v35, %v796_v41  ;;  %v263_v36 = vmul.f32 %v1499_v10, %v111_v29 }
  0xf6   :  { %v800_v44 = vsel %vm737_vm14, %v799_v39, %v798_v42  ;;  %472 = vadd.xlane.f32.xlu0 %v254_v37  ;;  %474 = vadd.xlane.f32.xlu1 %v255_v38  ;;  %v264_v37 = vmul.f32 %v1499_v10, %v112_v30  ;;  %v265_v39 = vmul.f32 %v1499_v10, %v113_v25  ;;  %v120_v25 = vld [vmem:[%s1795_s1 + $0x360] sm:$0xff] }
  0xf7   :  { %v1482_v45 = vsel %vm958_vm15, %v800_v44, %v1383_v4  ;;  %476 = vadd.xlane.f32.xlu2 %v256_v40  ;;  %v258_v4 = vmul.f32 %v1391_v11, %v106_v55  ;;  %v110_v11 = vld [vmem:[%s1795_s1 + $0x310] sm:$0xff]  ;;  %v116_v55 = vld [vmem:[%s1795_s1 + $0x340] sm:$0xff]  ;;  %vm960_vm15 = vcmask 1043459  }
  0xf8   :  { %v262_v20 = vmul.f32 %v1499_v10, %v110_v11  ;;  %v114_v44 = vld [vmem:[%s1795_s1 + $0x330] sm:$0xff]  ;;  %v268_v63 = vmul.f32 %v1499_v10, %v116_v55 }
  0xf9   :  { %v389_v57 = vpop.xlane.xlu0 %388  ;;  %v391_v58 = vpop.xlane.xlu1 %390  ;;  %v126_v55 = vld [vmem:[%s1795_s1 + $0x390] sm:$0xff] }
  0xfa   :  { %v801_v60 = vperm.slane %v389_v57, %v1145_v43  ;;  %v802_v61 = vperm.slane %v391_v58, %v1153_v47  ;;  %v393_v62 = vpop.xlane.xlu2 %392 }
  0xfb   :  { %v804_v1 = vperm.slane %v393_v62, %v1159_v49  ;;  %v267_v62 = vmul.f32 %v1499_v10, %v115_v54 }
  0xfc   :  { %v803_v3 = vsel %vm681_vm0, %v802_v61, %v801_v60  ;;  %v266_v61 = vmul.f32 %v1499_v10, %v114_v44 }
  0xfd   :  { %v805_v5 = vsel %vm685_vm1, %v804_v1, %v803_v3 }
  0xfe   :  { %478 = vadd.xlane.f32.xlu0 %v257_v59  ;;  %480 = vadd.xlane.f32.xlu1 %v258_v4 }
  0xff   :  { %482 = vadd.xlane.f32.xlu2 %v259_v2 }
 0x101   :  { %v395_v23 = vpop.xlane.xlu0 %394  ;;  %v397_v13 = vpop.xlane.xlu1 %396 }
 0x102   :  { %v806_v14 = vperm.slane %v395_v23, %v1150_v46  ;;  %v808_v15 = vperm.slane %v397_v13, %v1171_v53  ;;  %v399_v16 = vpop.xlane.xlu2 %398 }
 0x103   :  { %v810_v19 = vperm.slane %v399_v16, %v1165_v51 }
 0x104   :  { %v807_v21 = vsel %vm689_vm2, %v806_v14, %v805_v5  ;;  %v117_v5 = vld [vmem:[%s1795_s1 + $0x348] sm:$0xff] }
 0x105   :  { %v809_v22 = vsel %vm693_vm3, %v808_v15, %v807_v21  ;;  %v269_v13 = vmul.f32 %v1499_v10, %v117_v5  ;;  %v271_v21 = vmul.f32 %v1499_v10, %v119_v0  ;;  %v130_v0 = vld [vmem:[%s1795_s1 + $0x3b0] sm:$0xff] }
 0x106   :  { %v811_v24 = vsel %vm697_vm4, %v810_v19, %v809_v22  ;;  %484 = vadd.xlane.f32.xlu0 %v260_v17  ;;  %486 = vadd.xlane.f32.xlu1 %v261_v18  ;;  %v270_v17 = vmul.f32 %v1499_v10, %v118_v12  ;;  %v976_v18 = vld [vmem:[%s1794_s0] sm:$0xff]  ;;  %v129_v12 = vld [vmem:[%s1795_s1 + $0x3a8] sm:$0xff] }
 0x107   :  { %488 = vadd.xlane.f32.xlu2 %v262_v20  ;;  %v147_v19 = vrot.slane %v976_v18, 7 }
 0x109   :  { %v401_v31 = vpop.xlane.xlu0 %400  ;;  %v403_v32 = vpop.xlane.xlu1 %402  ;;  %v1576_v30 = vperm.slane %v147_v19, 0 }
 0x10a   :  { %v812_v33 = vperm.slane %v401_v31, %v1189_v7  ;;  %v814_v34 = vperm.slane %v403_v32, %v1186_v6  ;;  %v405_v35 = vpop.xlane.xlu2 %404  ;;  %v124_v31 = vld [vmem:[%s1795_s1 + $0x380] sm:$0xff]  ;;  %v125_v32 = vld [vmem:[%s1795_s1 + $0x388] sm:$0xff] }
 0x10b   :  { %v816_v38 = vperm.slane %v405_v35, %v1193_v9  ;;  %v282_v18 = vmul.f32 %v1576_v30, %v130_v0  ;;  %v137_v0 = vld [vmem:[%s1795_s1 + $0x3e8] sm:$0xff] }
 0x10c   :  { %v813_v40 = vsel %vm701_vm5, %v812_v33, %v811_v24 }
 0x10d   :  { %v815_v41 = vsel %vm705_vm6, %v814_v34, %v813_v40 }
 0x10e   :  { %v817_v42 = vsel %vm709_vm7, %v816_v38, %v815_v41  ;;  %490 = vadd.xlane.f32.xlu0 %v263_v36  ;;  %492 = vadd.xlane.f32.xlu1 %v264_v37  ;;  %v272_v38 = vmul.f32 %v1499_v10, %v120_v25  ;;  %v277_v41 = vmul.f32 %v1576_v30, %v125_v32  ;;  %v133_v25 = vld [vmem:[%s1795_s1 + $0x3c8] sm:$0xff] }
 0x10f   :  { %494 = vadd.xlane.f32.xlu2 %v265_v39  ;;  %v276_v39 = vmul.f32 %v1576_v30, %v124_v31  ;;  %v134_v31 = vld [vmem:[%s1795_s1 + $0x3d0] sm:$0xff] }
 0x111   :  { %v407_v56 = vpop.xlane.xlu0 %406  ;;  %v409_v57 = vpop.xlane.xlu1 %408 }
 0x112   :  { %v818_v58 = vperm.slane %v407_v56, %v1218_v27  ;;  %v820_v59 = vperm.slane %v409_v57, %v1215_v26  ;;  %v411_v60 = vpop.xlane.xlu2 %410  ;;  %v127_v56 = vld [vmem:[%s1795_s1 + $0x398] sm:$0xff]  ;;  %v128_v57 = vld [vmem:[%s1795_s1 + $0x3a0] sm:$0xff] }
 0x113   :  { %v822_v4 = vperm.slane %v411_v60, %v1221_v28 }
 0x114   :  { %v819_v1 = vsel %vm713_vm8, %v818_v58, %v817_v42 }
 0x115   :  { %v821_v2 = vsel %vm717_vm9, %v820_v59, %v819_v1  ;;  %v280_v1 = vmul.f32 %v1576_v30, %v128_v57  ;;  %v136_v57 = vld [vmem:[%s1795_s1 + $0x3e0] sm:$0xff] }
 0x116   :  { %v823_v3 = vsel %vm721_vm10, %v822_v4, %v821_v2  ;;  %496 = vadd.xlane.f32.xlu0 %v266_v61  ;;  %498 = vadd.xlane.f32.xlu1 %v267_v62  ;;  %v278_v62 = vmul.f32 %v1576_v30, %v126_v55  ;;  %v279_v4 = vmul.f32 %v1576_v30, %v127_v56  ;;  %v135_v55 = vld [vmem:[%s1795_s1 + $0x3d8] sm:$0xff]  ;;  %v121_v56 = vld [vmem:[%s1795_s1 + $0x368] sm:$0xff] }
 0x117   :  { %500 = vadd.xlane.f32.xlu2 %v268_v63 }
 0x119   :  { %v413_v11 = vpop.xlane.xlu0 %412  ;;  %v415_v23 = vpop.xlane.xlu1 %414 }
 0x11a   :  { %v824_v14 = vperm.slane %v413_v11, %v1245_v50  ;;  %v826_v15 = vperm.slane %v415_v23, %v1242_v48  ;;  %v417_v16 = vpop.xlane.xlu2 %416  ;;  %v131_v11 = vld [vmem:[%s1795_s1 + $0x3b8] sm:$0xff] }
 0x11b   :  { %v828_v20 = vperm.slane %v417_v16, %v1248_v52 }
 0x11c   :  { %v825_v22 = vsel %vm725_vm11, %v824_v14, %v823_v3 }
 0x11d   :  { %v827_v24 = vsel %vm729_vm12, %v826_v15, %v825_v22 }
 0x11e   :  { %v829_v29 = vsel %vm733_vm13, %v828_v20, %v827_v24  ;;  %502 = vadd.xlane.f32.xlu0 %v269_v13  ;;  %504 = vadd.xlane.f32.xlu1 %v270_v17  ;;  %v281_v17 = vmul.f32 %v1576_v30, %v129_v12  ;;  %v283_v20 = vmul.f32 %v1576_v30, %v131_v11  ;;  %v122_v12 = vld [vmem:[%s1795_s1 + $0x370] sm:$0xff]  ;;  %v123_v11 = vld [vmem:[%s1795_s1 + $0x378] sm:$0xff] }
 0x11f   :  { %506 = vadd.xlane.f32.xlu2 %v271_v21 }
 0x121   :  { %v419_v33 = vpop.xlane.xlu0 %418  ;;  %v421_v34 = vpop.xlane.xlu1 %420 }
 0x122   :  { %v830_v35 = vperm.slane %v419_v33, %v1269_v8  ;;  %v832_v36 = vperm.slane %v421_v34, %v1145_v43  ;;  %v423_v37 = vpop.xlane.xlu2 %422 }
 0x123   :  { %v833_v40 = vperm.slane %v423_v37, %v1153_v47 }
 0x124   :  { %v831_v42 = vsel %vm737_vm14, %v830_v35, %v829_v29  ;;  %v132_v29 = vld [vmem:[%s1795_s1 + $0x3c0] sm:$0xff] }
 0x125   :  { %v1595_v44 = vsel %vm960_vm15, %v831_v42, %v1482_v45  ;;  %v834_v54 = vsel %vm681_vm0, %v833_v40, %v832_v36  ;;  %v284_v37 = vmul.f32 %v1576_v30, %v132_v29  ;;  %v286_v40 = vmul.f32 %v1576_v30, %v134_v31  ;;  %v139_v29 = vld [vmem:[%s1795_s1 + $0x3f8] sm:$0xff] }
 0x126   :  { %508 = vadd.xlane.f32.xlu0 %v272_v38  ;;  %516 = vadd.xlane.f32.xlu1 %v276_v39  ;;  %v285_v38 = vmul.f32 %v1576_v30, %v133_v25  ;;  %vm962_vm15 = vcmask 1044484  }
 0x127   :  { %518 = vadd.xlane.f32.xlu2 %v277_v41 }
 0x129   :  { %v425_v58 = vpop.xlane.xlu0 %424  ;;  %v427_v45 = vpop.xlane.xlu1 %426 }
 0x12a   :  { %v835_v59 = vperm.slane %v425_v58, %v1159_v49  ;;  %v837_v60 = vperm.slane %v427_v45, %v1150_v46  ;;  %v429_v61 = vpop.xlane.xlu2 %428 }
 0x12b   :  { %v839_v63 = vperm.slane %v429_v61, %v1171_v53 }
 0x12c   :  { %v836_v2 = vsel %vm685_vm1, %v835_v59, %v834_v54 }
 0x12d   :  { %v838_v3 = vsel %vm689_vm2, %v837_v60, %v836_v2 }
 0x12e   :  { %v840_v5 = vsel %vm693_vm3, %v839_v63, %v838_v3  ;;  %520 = vadd.xlane.f32.xlu0 %v278_v62  ;;  %522 = vadd.xlane.f32.xlu1 %v279_v4  ;;  %v287_v62 = vmul.f32 %v1576_v30, %v135_v55  ;;  %v273_v4 = vmul.f32 %v1499_v10, %v121_v56 }
 0x12f   :  { %524 = vadd.xlane.f32.xlu2 %v280_v1  ;;  %v288_v1 = vmul.f32 %v1576_v30, %v136_v57 }
 0x131   :  { %v431_v23 = vpop.xlane.xlu0 %430  ;;  %v433_v13 = vpop.xlane.xlu1 %432 }
 0x132   :  { %v841_v14 = vperm.slane %v431_v23, %v1165_v51  ;;  %v843_v15 = vperm.slane %v433_v13, %v1189_v7  ;;  %v435_v16 = vpop.xlane.xlu2 %434 }
 0x133   :  { %v845_v19 = vperm.slane %v435_v16, %v1186_v6 }
 0x134   :  { %v842_v21 = vsel %vm697_vm4, %v841_v14, %v840_v5 }
 0x135   :  { %v844_v22 = vsel %vm701_vm5, %v843_v15, %v842_v21 }
 0x136   :  { %v846_v24 = vsel %vm705_vm6, %v845_v19, %v844_v22  ;;  %526 = vadd.xlane.f32.xlu0 %v281_v17  ;;  %528 = vadd.xlane.f32.xlu1 %v282_v18  ;;  %v274_v17 = vmul.f32 %v1499_v10, %v122_v12  ;;  %v289_v18 = vmul.f32 %v1576_v30, %v137_v0 }
 0x137   :  { %530 = vadd.xlane.f32.xlu2 %v283_v20  ;;  %v275_v19 = vmul.f32 %v1499_v10, %v123_v11 }
 0x139   :  { %v437_v32 = vpop.xlane.xlu0 %436  ;;  %v439_v33 = vpop.xlane.xlu1 %438 }
 0x13a   :  { %v847_v34 = vperm.slane %v437_v32, %v1193_v9  ;;  %v849_v35 = vperm.slane %v439_v33, %v1218_v27  ;;  %v441_v36 = vpop.xlane.xlu2 %440 }
 0x13b   :  { %v851_v39 = vperm.slane %v441_v36, %v1215_v26 }
 0x13c   :  { %v848_v41 = vsel %vm709_vm7, %v847_v34, %v846_v24  ;;  %v138_v24 = vld [vmem:[%s1795_s1 + $0x3f0] sm:$0xff] }
 0x13d   :  { %v850_v42 = vsel %vm713_vm8, %v849_v35, %v848_v41  ;;  %v290_v34 = vmul.f32 %v1576_v30, %v138_v24  ;;  %v291_v35 = vmul.f32 %v1576_v30, %v139_v29 }
 0x13e   :  { %v852_v54 = vsel %vm717_vm9, %v851_v39, %v850_v42  ;;  %532 = vadd.xlane.f32.xlu0 %v284_v37  ;;  %534 = vadd.xlane.f32.xlu1 %v285_v38 }
 0x13f   :  { %536 = vadd.xlane.f32.xlu2 %v286_v40 }
 0x141   :  { %v443_v58 = vpop.xlane.xlu0 %442  ;;  %v445_v45 = vpop.xlane.xlu1 %444 }
 0x142   :  { %v853_v59 = vperm.slane %v443_v58, %v1221_v28  ;;  %v855_v60 = vperm.slane %v445_v45, %v1245_v50  ;;  %v447_v61 = vpop.xlane.xlu2 %446 }
 0x143   :  { %v857_v63 = vperm.slane %v447_v61, %v1242_v48 }
 0x144   :  { %v854_v2 = vsel %vm721_vm10, %v853_v59, %v852_v54 }
 0x145   :  { %v856_v3 = vsel %vm725_vm11, %v855_v60, %v854_v2 }
 0x146   :  { %v858_v5 = vsel %vm729_vm12, %v857_v63, %v856_v3  ;;  %538 = vadd.xlane.f32.xlu0 %v287_v62  ;;  %510 = vadd.xlane.f32.xlu1 %v273_v4 }
 0x147   :  { %540 = vadd.xlane.f32.xlu2 %v288_v1 }
 0x149   :  { %v449_v23 = vpop.xlane.xlu0 %448  ;;  %v451_v13 = vpop.xlane.xlu1 %450 }
 0x14a   :  { %v859_v14 = vperm.slane %v449_v23, %v1248_v52  ;;  %v861_v15 = vperm.slane %v451_v13, %v1269_v8  ;;  %v453_v16 = vpop.xlane.xlu2 %452 }
 0x14b   :  { %v863_v25 = vperm.slane %v453_v16, %v1145_v43 }
 0x14c   :  { %v860_v20 = vsel %vm733_vm13, %v859_v14, %v858_v5 }
 0x14d   :  { %v862_v21 = vsel %vm737_vm14, %v861_v15, %v860_v20 }
 0x14e   :  { %v963_v22 = vsel %vm962_vm15, %v862_v21, %v1595_v44  ;;  %512 = vadd.xlane.f32.xlu0 %v274_v17  ;;  %542 = vadd.xlane.f32.xlu1 %v289_v18  ;;  %vm964_vm15 = vcmask 1045509  }
 0x14f   :  { %514 = vadd.xlane.f32.xlu2 %v275_v19 }
 0x151   :  { %v455_v10 = vpop.xlane.xlu0 %454  ;;  %v457_v31 = vpop.xlane.xlu1 %456 }
 0x152   :  { %v864_v32 = vperm.slane %v455_v10, %v1153_v47  ;;  %v866_v33 = vperm.slane %v457_v31, %v1159_v49  ;;  %v459_v44 = vpop.xlane.xlu2 %458 }
 0x153   :  { %v868_v36 = vperm.slane %v459_v44, %v1150_v46 }
 0x154   :  { %v865_v37 = vsel %vm681_vm0, %v864_v32, %v863_v25 }
 0x155   :  { %v867_v38 = vsel %vm685_vm1, %v866_v33, %v865_v37 }
 0x156   :  { %v869_v39 = vsel %vm689_vm2, %v868_v36, %v867_v38  ;;  %544 = vadd.xlane.f32.xlu0 %v290_v34  ;;  %546 = vadd.xlane.f32.xlu1 %v291_v35 }
 0x159   :  { %v461_v40 = vpop.xlane.xlu0 %460  ;;  %v463_v41 = vpop.xlane.xlu1 %462 }
 0x15a   :  { %v870_v42 = vperm.slane %v461_v40, %v1171_v53  ;;  %v872_v54 = vperm.slane %v463_v41, %v1165_v51  ;;  %v465_v55 = vpop.xlane.xlu2 %464 }
 0x15b   :  { %v874_v56 = vperm.slane %v465_v55, %v1189_v7 }
 0x15c   :  { %v871_v30 = vsel %vm693_vm3, %v870_v42, %v869_v39 }
 0x15d   :  { %v873_v57 = vsel %vm697_vm4, %v872_v54, %v871_v30 }
 0x15e   :  { %v875_v58 = vsel %vm701_vm5, %v874_v56, %v873_v57 }
 0x161   :  { %v467_v45 = vpop.xlane.xlu0 %466  ;;  %v469_v59 = vpop.xlane.xlu1 %468 }
 0x162   :  { %v876_v60 = vperm.slane %v467_v45, %v1186_v6  ;;  %v878_v61 = vperm.slane %v469_v59, %v1193_v9  ;;  %v471_v62 = vpop.xlane.xlu2 %470 }
 0x163   :  { %v880_v4 = vperm.slane %v471_v62, %v1218_v27 }
 0x164   :  { %v877_v63 = vsel %vm705_vm6, %v876_v60, %v875_v58 }
 0x165   :  { %v879_v1 = vsel %vm709_vm7, %v878_v61, %v877_v63 }
 0x166   :  { %v881_v2 = vsel %vm713_vm8, %v880_v4, %v879_v1 }
 0x169   :  { %v473_v3 = vpop.xlane.xlu0 %472  ;;  %v475_v5 = vpop.xlane.xlu1 %474 }
 0x16a   :  { %v882_v12 = vperm.slane %v473_v3, %v1215_v26  ;;  %v884_v0 = vperm.slane %v475_v5, %v1221_v28  ;;  %v477_v11 = vpop.xlane.xlu2 %476 }
 0x16b   :  { %v886_v23 = vperm.slane %v477_v11, %v1245_v50 }
 0x16c   :  { %v883_v13 = vsel %vm717_vm9, %v882_v12, %v881_v2 }
 0x16d   :  { %v885_v14 = vsel %vm721_vm10, %v884_v0, %v883_v13 }
 0x16e   :  { %v887_v15 = vsel %vm725_vm11, %v886_v23, %v885_v14 }
 0x171   :  { %v479_v16 = vpop.xlane.xlu0 %478  ;;  %v481_v17 = vpop.xlane.xlu1 %480 }
 0x172   :  { %v888_v18 = vperm.slane %v479_v16, %v1242_v48  ;;  %v890_v19 = vperm.slane %v481_v17, %v1248_v52  ;;  %v483_v20 = vpop.xlane.xlu2 %482 }
 0x173   :  { %v892_v21 = vperm.slane %v483_v20, %v1269_v8 }
 0x174   :  { %v889_v24 = vsel %vm729_vm12, %v888_v18, %v887_v15 }
 0x175   :  { %v891_v29 = vsel %vm733_vm13, %v890_v19, %v889_v24 }
 0x176   :  { %v893_v25 = vsel %vm737_vm14, %v892_v21, %v891_v29 }
 0x177   :  { %v1726_v10 = vsel %vm964_vm15, %v893_v25, %v963_v22 }
 0x179   :  { %v485_v31 = vpop.xlane.xlu0 %484  ;;  %v487_v32 = vpop.xlane.xlu1 %486 }
 0x17a   :  { %v894_v33 = vperm.slane %v485_v31, %v1145_v43  ;;  %v895_v44 = vperm.slane %v487_v32, %v1153_v47  ;;  %v489_v34 = vpop.xlane.xlu2 %488 }
 0x17b   :  { %v897_v59 = vperm.slane %v489_v34, %v1159_v49 }
 0x17c   :  { %v896_v35 = vsel %vm681_vm0, %v895_v44, %v894_v33 }
 0x17d   :  { %v898_v63 = vsel %vm685_vm1, %v897_v59, %v896_v35 }
 0x181   :  { %v491_v36 = vpop.xlane.xlu0 %490  ;;  %v493_v37 = vpop.xlane.xlu1 %492 }
 0x182   :  { %v495_v38 = vpop.xlane.xlu2 %494  ;;  %v899_v60 = vperm.slane %v491_v36, %v1150_v46  ;;  %v901_v1 = vperm.slane %v493_v37, %v1171_v53 }
 0x183   :  { %v903_v0 = vperm.slane %v495_v38, %v1165_v51 }
 0x184   :  { %v900_v2 = vsel %vm689_vm2, %v899_v60, %v898_v63 }
 0x185   :  { %v902_v11 = vsel %vm693_vm3, %v901_v1, %v900_v2 }
 0x189   :  { %v497_v39 = vpop.xlane.xlu0 %496  ;;  %v499_v40 = vpop.xlane.xlu1 %498 }
 0x18a   :  { %v501_v41 = vpop.xlane.xlu2 %500  ;;  %v905_v23 = vperm.slane %v497_v39, %v1189_v7 }
 0x18b   :  { %v909_v24 = vperm.slane %v501_v41, %v1193_v9 }
 0x191   :  { %v503_v42 = vpop.xlane.xlu0 %502  ;;  %v505_v54 = vpop.xlane.xlu1 %504 }
 0x192   :  { %v507_v55 = vpop.xlane.xlu2 %506  ;;  %v911_v29 = vperm.slane %v503_v42, %v1218_v27  ;;  %v913_v34 = vperm.slane %v505_v54, %v1215_v26 }
 0x193   :  { %v915_v39 = vperm.slane %v507_v55, %v1221_v28 }
 0x199   :  { %v509_v22 = vpop.xlane.xlu0 %508  ;;  %v517_v56 = vpop.xlane.xlu1 %516 }
 0x19a   :  { %v519_v30 = vpop.xlane.xlu2 %518  ;;  %v925_v3 = vperm.slane %v517_v56, %v1145_v43  ;;  %v904_v43 = vsel %vm697_vm4, %v903_v0, %v902_v11 }
 0x19b   :  { %v926_v5 = vperm.slane %v519_v30, %v1153_v47  ;;  %v907_v47 = vperm.slane %v499_v40, %v1186_v6  ;;  %v917_v40 = vperm.slane %v509_v22, %v1245_v50 }
 0x19d   :  { %v927_v13 = vsel %vm681_vm0, %v926_v5, %v925_v3  ;;  %vm966_vm0 = vcmask 1046534  }
 0x1a1   :  { %v521_v57 = vpop.xlane.xlu0 %520  ;;  %v523_v58 = vpop.xlane.xlu1 %522 }
 0x1a2   :  { %v525_v45 = vpop.xlane.xlu2 %524  ;;  %v928_v12 = vperm.slane %v521_v57, %v1159_v49  ;;  %v930_v14 = vperm.slane %v523_v58, %v1150_v46  ;;  %v906_v49 = vsel %vm701_vm5, %v905_v23, %v904_v43 }
 0x1a3   :  { %v932_v19 = vperm.slane %v525_v45, %v1171_v53  ;;  %v908_v46 = vsel %vm705_vm6, %v907_v47, %v906_v49 }
 0x1a4   :  { %v929_v17 = vsel %vm685_vm1, %v928_v12, %v927_v13  ;;  %v910_v53 = vsel %vm709_vm7, %v909_v24, %v908_v46  ;;  %vm968_vm1 = vcmask 1047559  }
 0x1a5   :  { %v931_v20 = vsel %vm689_vm2, %v930_v14, %v929_v17 }
 0x1a6   :  { %v933_v25 = vsel %vm693_vm3, %v932_v19, %v931_v20 }
 0x1a9   :  { %v527_v61 = vpop.xlane.xlu0 %526  ;;  %v529_v62 = vpop.xlane.xlu1 %528 }
 0x1aa   :  { %v531_v4 = vpop.xlane.xlu2 %530  ;;  %v934_v21 = vperm.slane %v527_v61, %v1165_v51  ;;  %v936_v31 = vperm.slane %v529_v62, %v1189_v7  ;;  %v912_v51 = vsel %vm713_vm8, %v911_v29, %v910_v53 }
 0x1ab   :  { %v938_v36 = vperm.slane %v531_v4, %v1186_v6  ;;  %v914_v7 = vsel %vm717_vm9, %v913_v34, %v912_v51 }
 0x1ac   :  { %v935_v32 = vsel %vm697_vm4, %v934_v21, %v933_v25  ;;  %v916_v6 = vsel %vm721_vm10, %v915_v39, %v914_v7 }
 0x1ad   :  { %v937_v37 = vsel %vm701_vm5, %v936_v31, %v935_v32 }
 0x1ae   :  { %v939_v41 = vsel %vm705_vm6, %v938_v36, %v937_v37 }
 0x1b1   :  { %v533_v15 = vpop.xlane.xlu0 %532  ;;  %v535_v16 = vpop.xlane.xlu1 %534 }
 0x1b2   :  { %v537_v18 = vpop.xlane.xlu2 %536  ;;  %v940_v38 = vperm.slane %v533_v15, %v1193_v9  ;;  %v942_v42 = vperm.slane %v535_v16, %v1218_v27  ;;  %v918_v9 = vsel %vm725_vm11, %v917_v40, %v916_v6 }
 0x1b3   :  { %v944_v55 = vperm.slane %v537_v18, %v1215_v26 }
 0x1b4   :  { %v941_v56 = vsel %vm709_vm7, %v940_v38, %v939_v41 }
 0x1b5   :  { %v943_v45 = vsel %vm713_vm8, %v942_v42, %v941_v56 }
 0x1b6   :  { %v945_v4 = vsel %vm717_vm9, %v944_v55, %v943_v45 }
 0x1b9   :  { %v539_v33 = vpop.xlane.xlu0 %538  ;;  %v511_v44 = vpop.xlane.xlu1 %510 }
 0x1ba   :  { %v541_v35 = vpop.xlane.xlu2 %540  ;;  %v919_v54 = vperm.slane %v511_v44, %v1242_v48  ;;  %v946_v27 = vperm.slane %v539_v33, %v1221_v28 }
 0x1bb   :  { %v948_v26 = vperm.slane %v541_v35, %v1245_v50 }
 0x1bc   :  { %v920_v59 = vsel %vm729_vm12, %v919_v54, %v918_v9  ;;  %v947_v1 = vsel %vm721_vm10, %v946_v27, %v945_v4 }
 0x1bd   :  { %v949_v5 = vsel %vm725_vm11, %v948_v26, %v947_v1 }
 0x1c1   :  { %v513_v30 = vpop.xlane.xlu0 %512  ;;  %v543_v57 = vpop.xlane.xlu1 %542 }
 0x1c2   :  { %v921_v58 = vperm.slane %v513_v30, %v1248_v52  ;;  %v515_v22 = vpop.xlane.xlu2 %514  ;;  %v950_v2 = vperm.slane %v543_v57, %v1242_v48 }
 0x1c3   :  { %v923_v60 = vperm.slane %v515_v22, %v1269_v8 }
 0x1c4   :  { %v922_v61 = vsel %vm733_vm13, %v921_v58, %v920_v59  ;;  %v951_v11 = vsel %vm729_vm12, %v950_v2, %v949_v5 }
 0x1c5   :  { %v924_v62 = vsel %vm737_vm14, %v923_v60, %v922_v61 }
 0x1c6   :  { %v967_v63 = vsel %vm966_vm0, %v924_v62, %v1726_v10 }
 0x1c9   :  { %v545_v3 = vpop.xlane.xlu0 %544  ;;  %v547_v28 = vpop.xlane.xlu1 %546 }
 0x1ca   :  { %v952_v12 = vperm.slane %v545_v3, %v1248_v52  ;;  %v954_v0 = vperm.slane %v547_v28, %v1269_v8 }
 0x1cc   :  { %v953_v23 = vsel %vm733_vm13, %v952_v12, %v951_v11 }
 0x1cd   :  { %v955_v50 = vsel %vm737_vm14, %v954_v0, %v953_v23 }
 0x1ce   :  { %v969_v10 = vsel %vm968_vm1, %v955_v50, %v967_v63 }
 0x1cf   :  { %971 = vst [vmem:[%s1796_s2] sm:$0xff] %v969_v10 }

</bundles_post_ra>
